<compile_context>
chip_gen: v5e
topology: v5e:2x2
jax: 0.10.0
libtpu: 0.0.40
codegen_flags: <defaults>
</compile_context>

<pallas_src>
import functools

import numpy as np

import jax
import jax.numpy as jnp
from jax.experimental import pallas as pl
from jax.experimental.pallas import tpu as pltpu


LAYERS = ((6, 24, 5), (24, 12, 7), (12, 3, 9))   # (Cin, Cout, K) per conv
TOP = 16   # sublane row where the scratch interior starts (bf16 tile aligned)


def _fused_frame_kernel(x_ref, w1_ref, b1_ref, w2_ref, b2_ref, w3_ref, b3_ref,
                        o_ref, p1_ref, p2_ref, p3_ref, *, H):
    """Full 3-layer forward for one batch image, entirely VMEM resident.

    x_ref : (1, H, W*6) f32        input image, lanes = x-major / channel-minor
    wX_ref: (K, W*Cin, W*Cout) bf16 Toeplitz-expanded conv weights (per dy tap)
    bX_ref: (1, W*Cout) f32         lane-tiled biases
    o_ref : (1, H, W*3) f32         output image (same lane layout)
    pX_ref: (TOP+H+pad, W*Cin) bf16 row-padded activation scratch per layer
    """

    def conv_layer(src, p_ref, w_ref, b_ref, act):
        K = w_ref.shape[0]
        pad = (K - 1) // 2
        lanes = p_ref.shape[1]

        # Zero the 2*pad halo rows (tiny), then store the interior with a
        # sublane-aligned, full-lane-width store.  Rows < TOP-pad are never
        # read, so they need no initialization.
        p_ref[pl.ds(TOP - pad, pad), :] = jnp.zeros((pad, lanes), p_ref.dtype)
        p_ref[pl.ds(TOP + H, pad), :] = jnp.zeros((pad, lanes), p_ref.dtype)
        p_ref[pl.ds(TOP, H), :] = src.astype(p_ref.dtype)

        # K dy taps; dx taps + input channels are folded into the MXU
        # contraction (W*Cin) by the Toeplitz weight slab w_ref[i].
        acc = jnp.zeros((H, w_ref.shape[2]), jnp.float32)
        for i in range(K):                                   # static unroll
            slab = p_ref[pl.ds(TOP - pad + i, H), :]         # (H, W*Cin) bf16
            acc += jnp.dot(slab, w_ref[i],
                           preferred_element_type=jnp.float32)
        return act(acc + b_ref[...])                         # (H, W*Cout) f32

    relu = lambda v: jnp.maximum(v, 0.0)

    a1 = conv_layer(x_ref[0], p1_ref, w1_ref, b1_ref, relu)          # 6 -> 24
    a2 = conv_layer(a1, p2_ref, w2_ref, b2_ref, relu)                # 24 -> 12
    a3 = conv_layer(a2, p3_ref, w3_ref, b3_ref, jax.nn.sigmoid)      # 12 -> 3

    o_ref[0] = a3.astype(o_ref.dtype)


def frame_model_pallas(x_flat, prepared):
    """Fused 3-conv forward: (N, H, W*6) -> (N, H, W*3), lanes x-major/c-minor."""
    N, H, WC = x_flat.shape
    W = WC // 6
    (w1, b1), (w2, b2), (w3, b3) = prepared

    kernel = functools.partial(_fused_frame_kernel, H=H)
    return pl.pallas_call(
        kernel,
        out_shape=jax.ShapeDtypeStruct((N, H, W * 3), jnp.float32),
        grid=(N,),
        in_specs=[
            pl.BlockSpec((1, H, W * 6), lambda n: (n, 0, 0)),
            pl.BlockSpec(w1.shape, lambda n: (0, 0, 0)),
            pl.BlockSpec(b1.shape, lambda n: (0, 0)),
            pl.BlockSpec(w2.shape, lambda n: (0, 0, 0)),
            pl.BlockSpec(b2.shape, lambda n: (0, 0)),
            pl.BlockSpec(w3.shape, lambda n: (0, 0, 0)),
            pl.BlockSpec(b3.shape, lambda n: (0, 0)),
        ],
        out_specs=pl.BlockSpec((1, H, W * 3), lambda n: (n, 0, 0)),
        scratch_shapes=[
            pltpu.VMEM((TOP + H + 2, W * 6), jnp.bfloat16),   # layer-1 rows, K=5
            pltpu.VMEM((TOP + H + 3, W * 24), jnp.bfloat16),  # layer-2 rows, K=7
            pltpu.VMEM((TOP + H + 4, W * 12), jnp.bfloat16),  # layer-3 rows, K=9
        ],
        compiler_params=pltpu.CompilerParams(
            dimension_semantics=("parallel",),     # both TCs on v7x
            vmem_limit_bytes=16 * 1024 * 1024,     # actual usage ~4-5 MiB
        ),
    )(x_flat, w1, b1, w2, b2, w3, b3)


def init_params(key):
    """Deterministic init mirroring PyTorch Conv2d defaults (torch layout)."""
    params = []
    for i, (cin, cout, k) in enumerate(LAYERS):
        kw, kb = jax.random.split(jax.random.fold_in(key, i))
        fan_in = cin * k * k
        bound = 1.0 / (fan_in ** 0.5)
        w = jax.random.uniform(kw, (cout, cin, k, k), jnp.float32, -bound, bound)
        b = jax.random.uniform(kb, (cout,), jnp.float32, -bound, bound)
        params.append((w, b))
    return params


def prepare_params(params, W):
    """One-time host-side prep: Toeplitz-expand weights along dx and cast bf16.

    M[i, q*Cin + c, x*Cout + co] = w[co, c, i, q - x + pad]   (0 if tap o.o.r.)
    so that   out[y, x*Cout+co] = sum_i  P[TOP-pad+i+y, :] @ M[i]
    with P the row-padded, lane (x*Cin + c)-laid-out activation.
    """
    prepared = []
    for (w, b) in params:
        w_np = np.asarray(w, np.float32)
        cout, cin, K, _ = w_np.shape
        pad = (K - 1) // 2
        q = np.arange(W)[:, None]                     # padded-input column
        x = np.arange(W)[None, :]                     # output column
        j = q - x + pad                               # dx tap index
        valid = ((j >= 0) & (j < K)).astype(np.float32)
        jc = np.clip(j, 0, K - 1)
        wt = w_np[:, :, :, jc] * valid                # (Cout, Cin, K, W, W)
        m = np.transpose(wt, (2, 3, 1, 4, 0)).reshape(K, W * cin, W * cout)
        b_row = np.tile(np.asarray(b, np.float32), W).reshape(1, W * cout)
        prepared.append((jnp.asarray(m, jnp.bfloat16),
                         jnp.asarray(b_row, jnp.float32)))
    return prepared


@jax.jit
def frame_model_forward(x_nchw, prepared):
    """FrameModel.forward: (N, 6, H, W) -> (N, 3, H, W)."""
    N, C, H, W = x_nchw.shape
    x_flat = jnp.transpose(x_nchw, (0, 2, 3, 1)).reshape(N, H, W * C)
    y = frame_model_pallas(x_flat, prepared)
    return jnp.transpose(y.reshape(N, H, W, 3), (0, 3, 1, 2))


def reference_forward(x, params):
    """Pure-JAX f32 reference of the PyTorch module."""
    y = x
    for idx, (w, b) in enumerate(params):
        y = jax.lax.conv_general_dilated(
            y, w, (1, 1), "SAME",
            dimension_numbers=("NCHW", "OIHW", "NCHW"),
            precision=jax.lax.Precision.HIGHEST)
        y = y + b.reshape(1, -1, 1, 1)
        y = jax.nn.relu(y) if idx < 2 else jax.nn.sigmoid(y)
    return y


if __name__ == "__main__":
    key = jax.random.PRNGKey(0)
    k_params, k_x = jax.random.split(key)

    params = init_params(k_params)
    prepared = prepare_params(params, W=16)

    # Input: pair of frames stacked on the channel dim -> 6 channels.
    x = jax.random.normal(k_x, (2, 6, 16, 16), dtype=jnp.float32)

    out = frame_model_forward(x, prepared)
    out = jax.block_until_ready(out)

    assert out.shape == (2, 3, 16, 16), out.shape
    assert bool(jnp.all(jnp.isfinite(out)))
    assert bool(jnp.all(out >= 0.0)) and bool(jnp.all(out <= 1.0))  # sigmoid range

    ref = reference_forward(x, params)
    max_err = float(jnp.max(jnp.abs(out - ref)))
    assert max_err < 3e-2, f"max abs error vs f32 reference: {max_err}"  # bf16 operands

    print("KERNEL_OK")
</pallas_src>

<mosaic_0001>
module attributes {stable_mosaic.version = 11 : i64} {
  func.func @_fused_frame_kernel(%arg0: i32, %arg1: memref<1x16x96xf32, #tpu.memory_space<vmem>>, %arg2: memref<5x96x384xbf16, #tpu.memory_space<vmem>>, %arg3: memref<1x384xf32, #tpu.memory_space<vmem>>, %arg4: memref<7x384x192xbf16, #tpu.memory_space<vmem>>, %arg5: memref<1x192xf32, #tpu.memory_space<vmem>>, %arg6: memref<9x192x48xbf16, #tpu.memory_space<vmem>>, %arg7: memref<1x48xf32, #tpu.memory_space<vmem>>, %arg8: memref<1x16x48xf32, #tpu.memory_space<vmem>>, %arg9: memref<34x96xbf16, #tpu.memory_space<vmem>>, %arg10: memref<35x384xbf16, #tpu.memory_space<vmem>>, %arg11: memref<36x192xbf16, #tpu.memory_space<vmem>>) attributes {dimension_semantics = [#tpu.dimension_semantics<parallel>], iteration_bounds = array<i64: 2>, scalar_prefetch = 0 : i64, scratch_operands = 3 : i64, tpu.core_type = #tpu.core_type<tc>, window_params = [{transform_indices = @transform_0, window_bounds = array<i64: 1, 16, 96>}, {pipeline_mode = #tpu.pipeline_mode<synchronous>, transform_indices = @transform_1, window_bounds = array<i64: 5, 96, 384>}, {pipeline_mode = #tpu.pipeline_mode<synchronous>, transform_indices = @transform_2, window_bounds = array<i64: 1, 384>}, {pipeline_mode = #tpu.pipeline_mode<synchronous>, transform_indices = @transform_3, window_bounds = array<i64: 7, 384, 192>}, {pipeline_mode = #tpu.pipeline_mode<synchronous>, transform_indices = @transform_4, window_bounds = array<i64: 1, 192>}, {pipeline_mode = #tpu.pipeline_mode<synchronous>, transform_indices = @transform_5, window_bounds = array<i64: 9, 192, 48>}, {pipeline_mode = #tpu.pipeline_mode<synchronous>, transform_indices = @transform_6, window_bounds = array<i64: 1, 48>}, {transform_indices = @transform_7, window_bounds = array<i64: 1, 16, 48>}]} {
    %c0 = arith.constant 0 : index
    %c0_0 = arith.constant 0 : index
    %c0_1 = arith.constant 0 : index
    %0 = vector.load %arg1[%c0, %c0_0, %c0_1] : memref<1x16x96xf32, #tpu.memory_space<vmem>>, vector<1x16x96xf32>
    %1 = vector.shape_cast %0 : vector<1x16x96xf32> to vector<16x96xf32>
    %cst = arith.constant 0.000000e+00 : bf16
    %2 = vector.broadcast %cst : bf16 to vector<2x96xbf16>
    %c14 = arith.constant 14 : index
    %c0_2 = arith.constant 0 : index
    %3 = vector.load %arg9[%c14, %c0_2] : memref<34x96xbf16, #tpu.memory_space<vmem>>, vector<2x96xbf16>
    tpu.vector_store %arg9[%c14, %c0_2], %2 {strides = array<i32>} : memref<34x96xbf16, #tpu.memory_space<vmem>>, vector<2x96xbf16>,
    %cst_3 = arith.constant 0.000000e+00 : bf16
    %4 = vector.broadcast %cst_3 : bf16 to vector<2x96xbf16>
    %c32 = arith.constant 32 : index
    %c0_4 = arith.constant 0 : index
    %5 = vector.load %arg9[%c32, %c0_4] : memref<34x96xbf16, #tpu.memory_space<vmem>>, vector<2x96xbf16>
    tpu.vector_store %arg9[%c32, %c0_4], %4 {strides = array<i32>} : memref<34x96xbf16, #tpu.memory_space<vmem>>, vector<2x96xbf16>,
    %6 = arith.truncf %1 : vector<16x96xf32> to vector<16x96xbf16>
    %c16 = arith.constant 16 : index
    %c0_5 = arith.constant 0 : index
    %7 = vector.load %arg9[%c16, %c0_5] : memref<34x96xbf16, #tpu.memory_space<vmem>>, vector<16x96xbf16>
    tpu.vector_store %arg9[%c16, %c0_5], %6 {strides = array<i32>} : memref<34x96xbf16, #tpu.memory_space<vmem>>, vector<16x96xbf16>,
    %cst_6 = arith.constant 0.000000e+00 : f32
    %8 = vector.broadcast %cst_6 : f32 to vector<16x384xf32>
    %c14_7 = arith.constant 14 : index
    %c0_8 = arith.constant 0 : index
    %9 = vector.load %arg9[%c14_7, %c0_8] : memref<34x96xbf16, #tpu.memory_space<vmem>>, vector<16x96xbf16>
    %c0_9 = arith.constant 0 : index
    %c0_10 = arith.constant 0 : index
    %c0_11 = arith.constant 0 : index
    %10 = vector.load %arg2[%c0_9, %c0_10, %c0_11] : memref<5x96x384xbf16, #tpu.memory_space<vmem>>, vector<1x96x384xbf16>
    %11 = vector.shape_cast %10 : vector<1x96x384xbf16> to vector<96x384xbf16>
    %cst_12 = arith.constant dense<0.000000e+00> : vector<16x384xf32>
    %12 = tpu.matmul %9, %11, %cst_12 {dimension_numbers = #tpu.dot_dimension_numbers<[1], [0], [0], [1], [0, 0, 1, 1], [], []>} : vector<16x96xbf16>, vector<96x384xbf16>, vector<16x384xf32> -> vector<16x384xf32>
    %13 = arith.addf %8, %12 : vector<16x384xf32>
    %c15 = arith.constant 15 : index
    %c0_13 = arith.constant 0 : index
    %14 = vector.load %arg9[%c15, %c0_13] : memref<34x96xbf16, #tpu.memory_space<vmem>>, vector<16x96xbf16>
    %c1 = arith.constant 1 : index
    %c0_14 = arith.constant 0 : index
    %c0_15 = arith.constant 0 : index
    %15 = vector.load %arg2[%c1, %c0_14, %c0_15] : memref<5x96x384xbf16, #tpu.memory_space<vmem>>, vector<1x96x384xbf16>
    %16 = vector.shape_cast %15 : vector<1x96x384xbf16> to vector<96x384xbf16>
    %cst_16 = arith.constant dense<0.000000e+00> : vector<16x384xf32>
    %17 = tpu.matmul %14, %16, %cst_16 {dimension_numbers = #tpu.dot_dimension_numbers<[1], [0], [0], [1], [0, 0, 1, 1], [], []>} : vector<16x96xbf16>, vector<96x384xbf16>, vector<16x384xf32> -> vector<16x384xf32>
    %18 = arith.addf %13, %17 : vector<16x384xf32>
    %c16_17 = arith.constant 16 : index
    %c0_18 = arith.constant 0 : index
    %19 = vector.load %arg9[%c16_17, %c0_18] : memref<34x96xbf16, #tpu.memory_space<vmem>>, vector<16x96xbf16>
    %c2 = arith.constant 2 : index
    %c0_19 = arith.constant 0 : index
    %c0_20 = arith.constant 0 : index
    %20 = vector.load %arg2[%c2, %c0_19, %c0_20] : memref<5x96x384xbf16, #tpu.memory_space<vmem>>, vector<1x96x384xbf16>
    %21 = vector.shape_cast %20 : vector<1x96x384xbf16> to vector<96x384xbf16>
    %cst_21 = arith.constant dense<0.000000e+00> : vector<16x384xf32>
    %22 = tpu.matmul %19, %21, %cst_21 {dimension_numbers = #tpu.dot_dimension_numbers<[1], [0], [0], [1], [0, 0, 1, 1], [], []>} : vector<16x96xbf16>, vector<96x384xbf16>, vector<16x384xf32> -> vector<16x384xf32>
    %23 = arith.addf %18, %22 : vector<16x384xf32>
    %c17 = arith.constant 17 : index
    %c0_22 = arith.constant 0 : index
    %24 = vector.load %arg9[%c17, %c0_22] : memref<34x96xbf16, #tpu.memory_space<vmem>>, vector<16x96xbf16>
    %c3 = arith.constant 3 : index
    %c0_23 = arith.constant 0 : index
    %c0_24 = arith.constant 0 : index
    %25 = vector.load %arg2[%c3, %c0_23, %c0_24] : memref<5x96x384xbf16, #tpu.memory_space<vmem>>, vector<1x96x384xbf16>
    %26 = vector.shape_cast %25 : vector<1x96x384xbf16> to vector<96x384xbf16>
    %cst_25 = arith.constant dense<0.000000e+00> : vector<16x384xf32>
    %27 = tpu.matmul %24, %26, %cst_25 {dimension_numbers = #tpu.dot_dimension_numbers<[1], [0], [0], [1], [0, 0, 1, 1], [], []>} : vector<16x96xbf16>, vector<96x384xbf16>, vector<16x384xf32> -> vector<16x384xf32>
    %28 = arith.addf %23, %27 : vector<16x384xf32>
    %c18 = arith.constant 18 : index
    %c0_26 = arith.constant 0 : index
    %29 = vector.load %arg9[%c18, %c0_26] : memref<34x96xbf16, #tpu.memory_space<vmem>>, vector<16x96xbf16>
    %c4 = arith.constant 4 : index
    %c0_27 = arith.constant 0 : index
    %c0_28 = arith.constant 0 : index
    %30 = vector.load %arg2[%c4, %c0_27, %c0_28] : memref<5x96x384xbf16, #tpu.memory_space<vmem>>, vector<1x96x384xbf16>
    %31 = vector.shape_cast %30 : vector<1x96x384xbf16> to vector<96x384xbf16>
    %cst_29 = arith.constant dense<0.000000e+00> : vector<16x384xf32>
    %32 = tpu.matmul %29, %31, %cst_29 {dimension_numbers = #tpu.dot_dimension_numbers<[1], [0], [0], [1], [0, 0, 1, 1], [], []>} : vector<16x96xbf16>, vector<96x384xbf16>, vector<16x384xf32> -> vector<16x384xf32>
    %33 = arith.addf %28, %32 : vector<16x384xf32>
    %c0_30 = arith.constant 0 : index
    %c0_31 = arith.constant 0 : index
    %34 = vector.load %arg3[%c0_30, %c0_31] : memref<1x384xf32, #tpu.memory_space<vmem>>, vector<1x384xf32>
    %35 = vector.broadcast %34 : vector<1x384xf32> to vector<16x384xf32>
    %36 = arith.addf %33, %35 : vector<16x384xf32>
    %cst_32 = arith.constant 0.000000e+00 : f32
    %37 = vector.broadcast %cst_32 : f32 to vector<16x384xf32>
    %38 = arith.maximumf %36, %37 : vector<16x384xf32>
    %cst_33 = arith.constant 0.000000e+00 : bf16
    %39 = vector.broadcast %cst_33 : bf16 to vector<3x384xbf16>
    %c13 = arith.constant 13 : index
    %c0_34 = arith.constant 0 : index
    %40 = vector.load %arg10[%c13, %c0_34] : memref<35x384xbf16, #tpu.memory_space<vmem>>, vector<3x384xbf16>
    tpu.vector_store %arg10[%c13, %c0_34], %39 {strides = array<i32>} : memref<35x384xbf16, #tpu.memory_space<vmem>>, vector<3x384xbf16>,
    %cst_35 = arith.constant 0.000000e+00 : bf16
    %41 = vector.broadcast %cst_35 : bf16 to vector<3x384xbf16>
    %c32_36 = arith.constant 32 : index
    %c0_37 = arith.constant 0 : index
    %42 = vector.load %arg10[%c32_36, %c0_37] : memref<35x384xbf16, #tpu.memory_space<vmem>>, vector<3x384xbf16>
    tpu.vector_store %arg10[%c32_36, %c0_37], %41 {strides = array<i32>} : memref<35x384xbf16, #tpu.memory_space<vmem>>, vector<3x384xbf16>,
    %43 = arith.truncf %38 : vector<16x384xf32> to vector<16x384xbf16>
    %c16_38 = arith.constant 16 : index
    %c0_39 = arith.constant 0 : index
    %44 = vector.load %arg10[%c16_38, %c0_39] : memref<35x384xbf16, #tpu.memory_space<vmem>>, vector<16x384xbf16>
    tpu.vector_store %arg10[%c16_38, %c0_39], %43 {strides = array<i32>} : memref<35x384xbf16, #tpu.memory_space<vmem>>, vector<16x384xbf16>,
    %cst_40 = arith.constant 0.000000e+00 : f32
    %45 = vector.broadcast %cst_40 : f32 to vector<16x192xf32>
    %c13_41 = arith.constant 13 : index
    %c0_42 = arith.constant 0 : index
    %46 = vector.load %arg10[%c13_41, %c0_42] : memref<35x384xbf16, #tpu.memory_space<vmem>>, vector<16x384xbf16>
    %c0_43 = arith.constant 0 : index
    %c0_44 = arith.constant 0 : index
    %c0_45 = arith.constant 0 : index
    %47 = vector.load %arg4[%c0_43, %c0_44, %c0_45] : memref<7x384x192xbf16, #tpu.memory_space<vmem>>, vector<1x384x192xbf16>
    %48 = vector.shape_cast %47 : vector<1x384x192xbf16> to vector<384x192xbf16>
    %cst_46 = arith.constant dense<0.000000e+00> : vector<16x192xf32>
    %49 = tpu.matmul %46, %48, %cst_46 {dimension_numbers = #tpu.dot_dimension_numbers<[1], [0], [0], [1], [0, 0, 1, 1], [], []>} : vector<16x384xbf16>, vector<384x192xbf16>, vector<16x192xf32> -> vector<16x192xf32>
    %50 = arith.addf %45, %49 : vector<16x192xf32>
    %c14_47 = arith.constant 14 : index
    %c0_48 = arith.constant 0 : index
    %51 = vector.load %arg10[%c14_47, %c0_48] : memref<35x384xbf16, #tpu.memory_space<vmem>>, vector<16x384xbf16>
    %c1_49 = arith.constant 1 : index
    %c0_50 = arith.constant 0 : index
    %c0_51 = arith.constant 0 : index
    %52 = vector.load %arg4[%c1_49, %c0_50, %c0_51] : memref<7x384x192xbf16, #tpu.memory_space<vmem>>, vector<1x384x192xbf16>
    %53 = vector.shape_cast %52 : vector<1x384x192xbf16> to vector<384x192xbf16>
    %cst_52 = arith.constant dense<0.000000e+00> : vector<16x192xf32>
    %54 = tpu.matmul %51, %53, %cst_52 {dimension_numbers = #tpu.dot_dimension_numbers<[1], [0], [0], [1], [0, 0, 1, 1], [], []>} : vector<16x384xbf16>, vector<384x192xbf16>, vector<16x192xf32> -> vector<16x192xf32>
    %55 = arith.addf %50, %54 : vector<16x192xf32>
    %c15_53 = arith.constant 15 : index
    %c0_54 = arith.constant 0 : index
    %56 = vector.load %arg10[%c15_53, %c0_54] : memref<35x384xbf16, #tpu.memory_space<vmem>>, vector<16x384xbf16>
    %c2_55 = arith.constant 2 : index
    %c0_56 = arith.constant 0 : index
    %c0_57 = arith.constant 0 : index
    %57 = vector.load %arg4[%c2_55, %c0_56, %c0_57] : memref<7x384x192xbf16, #tpu.memory_space<vmem>>, vector<1x384x192xbf16>
    %58 = vector.shape_cast %57 : vector<1x384x192xbf16> to vector<384x192xbf16>
    %cst_58 = arith.constant dense<0.000000e+00> : vector<16x192xf32>
    %59 = tpu.matmul %56, %58, %cst_58 {dimension_numbers = #tpu.dot_dimension_numbers<[1], [0], [0], [1], [0, 0, 1, 1], [], []>} : vector<16x384xbf16>, vector<384x192xbf16>, vector<16x192xf32> -> vector<16x192xf32>
    %60 = arith.addf %55, %59 : vector<16x192xf32>
    %c16_59 = arith.constant 16 : index
    %c0_60 = arith.constant 0 : index
    %61 = vector.load %arg10[%c16_59, %c0_60] : memref<35x384xbf16, #tpu.memory_space<vmem>>, vector<16x384xbf16>
    %c3_61 = arith.constant 3 : index
    %c0_62 = arith.constant 0 : index
    %c0_63 = arith.constant 0 : index
    %62 = vector.load %arg4[%c3_61, %c0_62, %c0_63] : memref<7x384x192xbf16, #tpu.memory_space<vmem>>, vector<1x384x192xbf16>
    %63 = vector.shape_cast %62 : vector<1x384x192xbf16> to vector<384x192xbf16>
    %cst_64 = arith.constant dense<0.000000e+00> : vector<16x192xf32>
    %64 = tpu.matmul %61, %63, %cst_64 {dimension_numbers = #tpu.dot_dimension_numbers<[1], [0], [0], [1], [0, 0, 1, 1], [], []>} : vector<16x384xbf16>, vector<384x192xbf16>, vector<16x192xf32> -> vector<16x192xf32>
    %65 = arith.addf %60, %64 : vector<16x192xf32>
    %c17_65 = arith.constant 17 : index
    %c0_66 = arith.constant 0 : index
    %66 = vector.load %arg10[%c17_65, %c0_66] : memref<35x384xbf16, #tpu.memory_space<vmem>>, vector<16x384xbf16>
    %c4_67 = arith.constant 4 : index
    %c0_68 = arith.constant 0 : index
    %c0_69 = arith.constant 0 : index
    %67 = vector.load %arg4[%c4_67, %c0_68, %c0_69] : memref<7x384x192xbf16, #tpu.memory_space<vmem>>, vector<1x384x192xbf16>
    %68 = vector.shape_cast %67 : vector<1x384x192xbf16> to vector<384x192xbf16>
    %cst_70 = arith.constant dense<0.000000e+00> : vector<16x192xf32>
    %69 = tpu.matmul %66, %68, %cst_70 {dimension_numbers = #tpu.dot_dimension_numbers<[1], [0], [0], [1], [0, 0, 1, 1], [], []>} : vector<16x384xbf16>, vector<384x192xbf16>, vector<16x192xf32> -> vector<16x192xf32>
    %70 = arith.addf %65, %69 : vector<16x192xf32>
    %c18_71 = arith.constant 18 : index
    %c0_72 = arith.constant 0 : index
    %71 = vector.load %arg10[%c18_71, %c0_72] : memref<35x384xbf16, #tpu.memory_space<vmem>>, vector<16x384xbf16>
    %c5 = arith.constant 5 : index
    %c0_73 = arith.constant 0 : index
    %c0_74 = arith.constant 0 : index
    %72 = vector.load %arg4[%c5, %c0_73, %c0_74] : memref<7x384x192xbf16, #tpu.memory_space<vmem>>, vector<1x384x192xbf16>
    %73 = vector.shape_cast %72 : vector<1x384x192xbf16> to vector<384x192xbf16>
    %cst_75 = arith.constant dense<0.000000e+00> : vector<16x192xf32>
    %74 = tpu.matmul %71, %73, %cst_75 {dimension_numbers = #tpu.dot_dimension_numbers<[1], [0], [0], [1], [0, 0, 1, 1], [], []>} : vector<16x384xbf16>, vector<384x192xbf16>, vector<16x192xf32> -> vector<16x192xf32>
    %75 = arith.addf %70, %74 : vector<16x192xf32>
    %c19 = arith.constant 19 : index
    %c0_76 = arith.constant 0 : index
    %76 = vector.load %arg10[%c19, %c0_76] : memref<35x384xbf16, #tpu.memory_space<vmem>>, vector<16x384xbf16>
    %c6 = arith.constant 6 : index
    %c0_77 = arith.constant 0 : index
    %c0_78 = arith.constant 0 : index
    %77 = vector.load %arg4[%c6, %c0_77, %c0_78] : memref<7x384x192xbf16, #tpu.memory_space<vmem>>, vector<1x384x192xbf16>
    %78 = vector.shape_cast %77 : vector<1x384x192xbf16> to vector<384x192xbf16>
    %cst_79 = arith.constant dense<0.000000e+00> : vector<16x192xf32>
    %79 = tpu.matmul %76, %78, %cst_79 {dimension_numbers = #tpu.dot_dimension_numbers<[1], [0], [0], [1], [0, 0, 1, 1], [], []>} : vector<16x384xbf16>, vector<384x192xbf16>, vector<16x192xf32> -> vector<16x192xf32>
    %80 = arith.addf %75, %79 : vector<16x192xf32>
    %c0_80 = arith.constant 0 : index
    %c0_81 = arith.constant 0 : index
    %81 = vector.load %arg5[%c0_80, %c0_81] : memref<1x192xf32, #tpu.memory_space<vmem>>, vector<1x192xf32>
    %82 = vector.broadcast %81 : vector<1x192xf32> to vector<16x192xf32>
    %83 = arith.addf %80, %82 : vector<16x192xf32>
    %cst_82 = arith.constant 0.000000e+00 : f32
    %84 = vector.broadcast %cst_82 : f32 to vector<16x192xf32>
    %85 = arith.maximumf %83, %84 : vector<16x192xf32>
    %cst_83 = arith.constant 0.000000e+00 : bf16
    %86 = vector.broadcast %cst_83 : bf16 to vector<4x192xbf16>
    %c12 = arith.constant 12 : index
    %c0_84 = arith.constant 0 : index
    %87 = vector.load %arg11[%c12, %c0_84] : memref<36x192xbf16, #tpu.memory_space<vmem>>, vector<4x192xbf16>
    tpu.vector_store %arg11[%c12, %c0_84], %86 {strides = array<i32>} : memref<36x192xbf16, #tpu.memory_space<vmem>>, vector<4x192xbf16>,
    %cst_85 = arith.constant 0.000000e+00 : bf16
    %88 = vector.broadcast %cst_85 : bf16 to vector<4x192xbf16>
    %c32_86 = arith.constant 32 : index
    %c0_87 = arith.constant 0 : index
    %89 = vector.load %arg11[%c32_86, %c0_87] : memref<36x192xbf16, #tpu.memory_space<vmem>>, vector<4x192xbf16>
    tpu.vector_store %arg11[%c32_86, %c0_87], %88 {strides = array<i32>} : memref<36x192xbf16, #tpu.memory_space<vmem>>, vector<4x192xbf16>,
    %90 = arith.truncf %85 : vector<16x192xf32> to vector<16x192xbf16>
    %c16_88 = arith.constant 16 : index
    %c0_89 = arith.constant 0 : index
    %91 = vector.load %arg11[%c16_88, %c0_89] : memref<36x192xbf16, #tpu.memory_space<vmem>>, vector<16x192xbf16>
    tpu.vector_store %arg11[%c16_88, %c0_89], %90 {strides = array<i32>} : memref<36x192xbf16, #tpu.memory_space<vmem>>, vector<16x192xbf16>,
    %cst_90 = arith.constant 0.000000e+00 : f32
    %92 = vector.broadcast %cst_90 : f32 to vector<16x48xf32>
    %c12_91 = arith.constant 12 : index
    %c0_92 = arith.constant 0 : index
    %93 = vector.load %arg11[%c12_91, %c0_92] : memref<36x192xbf16, #tpu.memory_space<vmem>>, vector<16x192xbf16>
    %c0_93 = arith.constant 0 : index
    %c0_94 = arith.constant 0 : index
    %c0_95 = arith.constant 0 : index
    %94 = vector.load %arg6[%c0_93, %c0_94, %c0_95] : memref<9x192x48xbf16, #tpu.memory_space<vmem>>, vector<1x192x48xbf16>
    %95 = vector.shape_cast %94 : vector<1x192x48xbf16> to vector<192x48xbf16>
    %cst_96 = arith.constant dense<0.000000e+00> : vector<16x48xf32>
    %96 = tpu.matmul %93, %95, %cst_96 {dimension_numbers = #tpu.dot_dimension_numbers<[1], [0], [0], [1], [0, 0, 1, 1], [], []>} : vector<16x192xbf16>, vector<192x48xbf16>, vector<16x48xf32> -> vector<16x48xf32>
    %97 = arith.addf %92, %96 : vector<16x48xf32>
    %c13_97 = arith.constant 13 : index
    %c0_98 = arith.constant 0 : index
    %98 = vector.load %arg11[%c13_97, %c0_98] : memref<36x192xbf16, #tpu.memory_space<vmem>>, vector<16x192xbf16>
    %c1_99 = arith.constant 1 : index
    %c0_100 = arith.constant 0 : index
    %c0_101 = arith.constant 0 : index
    %99 = vector.load %arg6[%c1_99, %c0_100, %c0_101] : memref<9x192x48xbf16, #tpu.memory_space<vmem>>, vector<1x192x48xbf16>
    %100 = vector.shape_cast %99 : vector<1x192x48xbf16> to vector<192x48xbf16>
    %cst_102 = arith.constant dense<0.000000e+00> : vector<16x48xf32>
    %101 = tpu.matmul %98, %100, %cst_102 {dimension_numbers = #tpu.dot_dimension_numbers<[1], [0], [0], [1], [0, 0, 1, 1], [], []>} : vector<16x192xbf16>, vector<192x48xbf16>, vector<16x48xf32> -> vector<16x48xf32>
    %102 = arith.addf %97, %101 : vector<16x48xf32>
    %c14_103 = arith.constant 14 : index
    %c0_104 = arith.constant 0 : index
    %103 = vector.load %arg11[%c14_103, %c0_104] : memref<36x192xbf16, #tpu.memory_space<vmem>>, vector<16x192xbf16>
    %c2_105 = arith.constant 2 : index
    %c0_106 = arith.constant 0 : index
    %c0_107 = arith.constant 0 : index
    %104 = vector.load %arg6[%c2_105, %c0_106, %c0_107] : memref<9x192x48xbf16, #tpu.memory_space<vmem>>, vector<1x192x48xbf16>
    %105 = vector.shape_cast %104 : vector<1x192x48xbf16> to vector<192x48xbf16>
    %cst_108 = arith.constant dense<0.000000e+00> : vector<16x48xf32>
    %106 = tpu.matmul %103, %105, %cst_108 {dimension_numbers = #tpu.dot_dimension_numbers<[1], [0], [0], [1], [0, 0, 1, 1], [], []>} : vector<16x192xbf16>, vector<192x48xbf16>, vector<16x48xf32> -> vector<16x48xf32>
    %107 = arith.addf %102, %106 : vector<16x48xf32>
    %c15_109 = arith.constant 15 : index
    %c0_110 = arith.constant 0 : index
    %108 = vector.load %arg11[%c15_109, %c0_110] : memref<36x192xbf16, #tpu.memory_space<vmem>>, vector<16x192xbf16>
    %c3_111 = arith.constant 3 : index
    %c0_112 = arith.constant 0 : index
    %c0_113 = arith.constant 0 : index
    %109 = vector.load %arg6[%c3_111, %c0_112, %c0_113] : memref<9x192x48xbf16, #tpu.memory_space<vmem>>, vector<1x192x48xbf16>
    %110 = vector.shape_cast %109 : vector<1x192x48xbf16> to vector<192x48xbf16>
    %cst_114 = arith.constant dense<0.000000e+00> : vector<16x48xf32>
    %111 = tpu.matmul %108, %110, %cst_114 {dimension_numbers = #tpu.dot_dimension_numbers<[1], [0], [0], [1], [0, 0, 1, 1], [], []>} : vector<16x192xbf16>, vector<192x48xbf16>, vector<16x48xf32> -> vector<16x48xf32>
    %112 = arith.addf %107, %111 : vector<16x48xf32>
    %c16_115 = arith.constant 16 : index
    %c0_116 = arith.constant 0 : index
    %113 = vector.load %arg11[%c16_115, %c0_116] : memref<36x192xbf16, #tpu.memory_space<vmem>>, vector<16x192xbf16>
    %c4_117 = arith.constant 4 : index
    %c0_118 = arith.constant 0 : index
    %c0_119 = arith.constant 0 : index
    %114 = vector.load %arg6[%c4_117, %c0_118, %c0_119] : memref<9x192x48xbf16, #tpu.memory_space<vmem>>, vector<1x192x48xbf16>
    %115 = vector.shape_cast %114 : vector<1x192x48xbf16> to vector<192x48xbf16>
    %cst_120 = arith.constant dense<0.000000e+00> : vector<16x48xf32>
    %116 = tpu.matmul %113, %115, %cst_120 {dimension_numbers = #tpu.dot_dimension_numbers<[1], [0], [0], [1], [0, 0, 1, 1], [], []>} : vector<16x192xbf16>, vector<192x48xbf16>, vector<16x48xf32> -> vector<16x48xf32>
    %117 = arith.addf %112, %116 : vector<16x48xf32>
    %c17_121 = arith.constant 17 : index
    %c0_122 = arith.constant 0 : index
    %118 = vector.load %arg11[%c17_121, %c0_122] : memref<36x192xbf16, #tpu.memory_space<vmem>>, vector<16x192xbf16>
    %c5_123 = arith.constant 5 : index
    %c0_124 = arith.constant 0 : index
    %c0_125 = arith.constant 0 : index
    %119 = vector.load %arg6[%c5_123, %c0_124, %c0_125] : memref<9x192x48xbf16, #tpu.memory_space<vmem>>, vector<1x192x48xbf16>
    %120 = vector.shape_cast %119 : vector<1x192x48xbf16> to vector<192x48xbf16>
    %cst_126 = arith.constant dense<0.000000e+00> : vector<16x48xf32>
    %121 = tpu.matmul %118, %120, %cst_126 {dimension_numbers = #tpu.dot_dimension_numbers<[1], [0], [0], [1], [0, 0, 1, 1], [], []>} : vector<16x192xbf16>, vector<192x48xbf16>, vector<16x48xf32> -> vector<16x48xf32>
    %122 = arith.addf %117, %121 : vector<16x48xf32>
    %c18_127 = arith.constant 18 : index
    %c0_128 = arith.constant 0 : index
    %123 = vector.load %arg11[%c18_127, %c0_128] : memref<36x192xbf16, #tpu.memory_space<vmem>>, vector<16x192xbf16>
    %c6_129 = arith.constant 6 : index
    %c0_130 = arith.constant 0 : index
    %c0_131 = arith.constant 0 : index
    %124 = vector.load %arg6[%c6_129, %c0_130, %c0_131] : memref<9x192x48xbf16, #tpu.memory_space<vmem>>, vector<1x192x48xbf16>
    %125 = vector.shape_cast %124 : vector<1x192x48xbf16> to vector<192x48xbf16>
    %cst_132 = arith.constant dense<0.000000e+00> : vector<16x48xf32>
    %126 = tpu.matmul %123, %125, %cst_132 {dimension_numbers = #tpu.dot_dimension_numbers<[1], [0], [0], [1], [0, 0, 1, 1], [], []>} : vector<16x192xbf16>, vector<192x48xbf16>, vector<16x48xf32> -> vector<16x48xf32>
    %127 = arith.addf %122, %126 : vector<16x48xf32>
    %c19_133 = arith.constant 19 : index
    %c0_134 = arith.constant 0 : index
    %128 = vector.load %arg11[%c19_133, %c0_134] : memref<36x192xbf16, #tpu.memory_space<vmem>>, vector<16x192xbf16>
    %c7 = arith.constant 7 : index
    %c0_135 = arith.constant 0 : index
    %c0_136 = arith.constant 0 : index
    %129 = vector.load %arg6[%c7, %c0_135, %c0_136] : memref<9x192x48xbf16, #tpu.memory_space<vmem>>, vector<1x192x48xbf16>
    %130 = vector.shape_cast %129 : vector<1x192x48xbf16> to vector<192x48xbf16>
    %cst_137 = arith.constant dense<0.000000e+00> : vector<16x48xf32>
    %131 = tpu.matmul %128, %130, %cst_137 {dimension_numbers = #tpu.dot_dimension_numbers<[1], [0], [0], [1], [0, 0, 1, 1], [], []>} : vector<16x192xbf16>, vector<192x48xbf16>, vector<16x48xf32> -> vector<16x48xf32>
    %132 = arith.addf %127, %131 : vector<16x48xf32>
    %c20 = arith.constant 20 : index
    %c0_138 = arith.constant 0 : index
    %133 = vector.load %arg11[%c20, %c0_138] : memref<36x192xbf16, #tpu.memory_space<vmem>>, vector<16x192xbf16>
    %c8 = arith.constant 8 : index
    %c0_139 = arith.constant 0 : index
    %c0_140 = arith.constant 0 : index
    %134 = vector.load %arg6[%c8, %c0_139, %c0_140] : memref<9x192x48xbf16, #tpu.memory_space<vmem>>, vector<1x192x48xbf16>
    %135 = vector.shape_cast %134 : vector<1x192x48xbf16> to vector<192x48xbf16>
    %cst_141 = arith.constant dense<0.000000e+00> : vector<16x48xf32>
    %136 = tpu.matmul %133, %135, %cst_141 {dimension_numbers = #tpu.dot_dimension_numbers<[1], [0], [0], [1], [0, 0, 1, 1], [], []>} : vector<16x192xbf16>, vector<192x48xbf16>, vector<16x48xf32> -> vector<16x48xf32>
    %137 = arith.addf %132, %136 : vector<16x48xf32>
    %c0_142 = arith.constant 0 : index
    %c0_143 = arith.constant 0 : index
    %138 = vector.load %arg7[%c0_142, %c0_143] : memref<1x48xf32, #tpu.memory_space<vmem>>, vector<1x48xf32>
    %139 = vector.broadcast %138 : vector<1x48xf32> to vector<16x48xf32>
    %140 = arith.addf %137, %139 : vector<16x48xf32>
    %141 = arith.negf %140 : vector<16x48xf32>
    %142 = math.exp %141 : vector<16x48xf32>
    %cst_144 = arith.constant 1.000000e+00 : f32
    %143 = vector.broadcast %cst_144 : f32 to vector<16x48xf32>
    %144 = arith.addf %143, %142 : vector<16x48xf32>
    %145 = arith.divf %143, %144 : vector<16x48xf32>
    %c0_145 = arith.constant 0 : index
    %c0_146 = arith.constant 0 : index
    %c0_147 = arith.constant 0 : index
    %146 = vector.load %arg8[%c0_145, %c0_146, %c0_147] : memref<1x16x48xf32, #tpu.memory_space<vmem>>, vector<1x16x48xf32>
    %147 = vector.shape_cast %146 : vector<1x16x48xf32> to vector<16x48xf32>
    %148 = vector.shape_cast %145 : vector<16x48xf32> to vector<1x16x48xf32>
    tpu.vector_store %arg8[%c0_145, %c0_146, %c0_147], %148 {strides = array<i32>} : memref<1x16x48xf32, #tpu.memory_space<vmem>>, vector<1x16x48xf32>,
    return
  }
  func.func @transform_0(%arg0: i32) -> (i32, i32, i32) {
    %c0_i32 = arith.constant 0 : i32
    %c0_i32_0 = arith.constant 0 : i32
    %c0_i32_1 = arith.constant 0 : i32
    return %arg0, %c0_i32, %c0_i32_0 : i32, i32, i32
  }
  func.func @transform_1(%arg0: i32) -> (i32, i32, i32) {
    %c0_i32 = arith.constant 0 : i32
    %c0_i32_0 = arith.constant 0 : i32
    %c0_i32_1 = arith.constant 0 : i32
    %c0_i32_2 = arith.constant 0 : i32
    return %c0_i32, %c0_i32_0, %c0_i32_1 : i32, i32, i32
  }
  func.func @transform_2(%arg0: i32) -> (i32, i32) {
    %c0_i32 = arith.constant 0 : i32
    %c0_i32_0 = arith.constant 0 : i32
    %c0_i32_1 = arith.constant 0 : i32
    return %c0_i32, %c0_i32_0 : i32, i32
  }
  func.func @transform_3(%arg0: i32) -> (i32, i32, i32) {
    %c0_i32 = arith.constant 0 : i32
    %c0_i32_0 = arith.constant 0 : i32
    %c0_i32_1 = arith.constant 0 : i32
    %c0_i32_2 = arith.constant 0 : i32
    return %c0_i32, %c0_i32_0, %c0_i32_1 : i32, i32, i32
  }
  func.func @transform_4(%arg0: i32) -> (i32, i32) {
    %c0_i32 = arith.constant 0 : i32
    %c0_i32_0 = arith.constant 0 : i32
    %c0_i32_1 = arith.constant 0 : i32
    return %c0_i32, %c0_i32_0 : i32, i32
  }
  func.func @transform_5(%arg0: i32) -> (i32, i32, i32) {
    %c0_i32 = arith.constant 0 : i32
    %c0_i32_0 = arith.constant 0 : i32
    %c0_i32_1 = arith.constant 0 : i32
    %c0_i32_2 = arith.constant 0 : i32
    return %c0_i32, %c0_i32_0, %c0_i32_1 : i32, i32, i32
  }
  func.func @transform_6(%arg0: i32) -> (i32, i32) {
    %c0_i32 = arith.constant 0 : i32
    %c0_i32_0 = arith.constant 0 : i32
    %c0_i32_1 = arith.constant 0 : i32
    return %c0_i32, %c0_i32_0 : i32, i32
  }
  func.func @transform_7(%arg0: i32) -> (i32, i32, i32) {
    %c0_i32 = arith.constant 0 : i32
    %c0_i32_0 = arith.constant 0 : i32
    %c0_i32_1 = arith.constant 0 : i32
    return %arg0, %c0_i32, %c0_i32_0 : i32, i32, i32
  }
}

</mosaic_0001>

<bundles_post_ra>
// kernel: frame_model_forward.1
= control target key start
LH: loop header
LB: loop body
LE: loop exit
PB: predicated region body
PF: predicated region fallthrough
CT: control target
= control target key end

     0   :  { %s9111_s24 = smov 0   ;;  %s12661_s0 = inlined_call_operand.vmem [shape: f32[2,16,96], index: 0, kind: input, shape index: {}]   ;;  %s12662_s1 = inlined_call_operand.vmem [shape: bf16[5,96,384], index: 1, kind: input, shape index: {}]   ;;  %s12663_s2 = inlined_call_operand.vmem [shape: f32[1,384], index: 2, kind: input, shape index: {}]   ;;  %s12664_s3 = inlined_call_operand.vmem [shape: bf16[7,384,192], index: 3, kind: input, shape index: {}]   ;;  %s12665_s4 = inlined_call_operand.vmem [shape: f32[1,192], index: 4, kind: input, shape index: {}]   ;;  %s12666_s5 = inlined_call_operand.vmem [shape: bf16[9,192,48], index: 5, kind: input, shape index: {}]   ;;  %s12667_s6 = inlined_call_operand.vmem [shape: f32[1,48], index: 6, kind: input, shape index: {}]   ;;  %s12668_s7 = inlined_call_operand.vmem [shape: f32[2,16,48], index: 7, kind: output, shape index: {}]  }
   0x1 LB: > { %s5746_s25 = sadd.s32 4294967295, %s9068_s24   ;;  %p5750_p0 = scmp.ge.s32.totalorder %s9068_s24, 1  ;;  %s9068_s24 = sphi %s9111_s24, %s17_s24  }
   0x2   : > { %p237_p1 = scmp.lt.s32.totalorder %s9068_s24, 3 }
   0x4   : > { %p238_p2 = pnand %p5750_p0, %p237_p1 }
   0x5   : > { %p269_p3 = scmp.lt.s32.totalorder (!%p238_p2), %s5746_s25, 1 }
   0x6   : > { %241 = sbr.rel (%p238_p2) target bundleno = 986 (0x3da), region = 48 }
   0xb   : > { %v5841_v0 = vld [vmem:[%s12662_s1 + $0x108] sm:$0xf]  ;;  %v8531_v1 = vld [vmem:[%s12662_s1 + $0x110] sm:$0xf0]  ;;  %v8530_v2 = vld [vmem:[%s12662_s1 + $0x10c] sm:$0xf] }
   0xc   : > { %v5842_v3 = vor.u32 %v8531_v1, %v5841_v0  ;;  %v5843_v4 = vld [vmem:[%s12662_s1 + $0x114] sm:$0xf0]  ;;  %v5849_v5 = vld [vmem:[%s12662_s1 + $0x110] sm:$0xf]  ;;  %v8532_v6 = vld [vmem:[%s12662_s1 + $0x118] sm:$0xf0] }
   0xd   : > { %v5846_v7 = vor.u32 %v8530_v2, %v5843_v4  ;;  %v5850_v8 = vor.u32 %v8532_v6, %v5849_v5  ;;  %v5916_v9 = vld [vmem:[%s12662_s1 + $0x78] sm:$0xf]  ;;  %v8513_v10 = vld [vmem:[%s12662_s1 + $0x80] sm:$0xf0]  ;;  %v5829_v11 = vld [vmem:[%s12662_s1 + $0xf0] sm:$0xf] }
   0xe   : > { %472 = vmatpush.bf16.msra.mxu0 %v5842_v3  ;;  %v5917_v12 = vor.u32 %v8513_v10, %v5916_v9  ;;  %v8528_v13 = vld [vmem:[%s12662_s1 + $0xf8] sm:$0xf0]  ;;  %v8527_v14 = vld [vmem:[%s12662_s1 + $0xf4] sm:$0xf]  ;;  %v5831_v15 = vld [vmem:[%s12662_s1 + $0xfc] sm:$0xf0] }
   0xf   : > { %486 = vmatpush.bf16.msra.mxu1 %v5846_v7  ;;  %500 = vmatpush.bf16.msra.mxu2 %v5850_v8  ;;  %v5830_v16 = vor.u32 %v8528_v13, %v5829_v11  ;;  %v5834_v17 = vor.u32 %v8527_v14, %v5831_v15  ;;  %v5837_v18 = vld [vmem:[%s12662_s1 + $0xf8] sm:$0xf]  ;;  %v8529_v19 = vld [vmem:[%s12662_s1 + $0x100] sm:$0xf0]  ;;  %v5904_v20 = vld [vmem:[%s12662_s1 + $0x60] sm:$0xf] }
  0x10   : > { %620 = vmatpush.bf16.msra.mxu3 %v5917_v12  ;;  %v5838_v21 = vor.u32 %v8529_v19, %v5837_v18  ;;  %v8510_v22 = vld [vmem:[%s12662_s1 + $0x68] sm:$0xf0]  ;;  %v5817_v23 = vld [vmem:[%s12662_s1 + $0xd8] sm:$0xf]  ;;  %v8525_v24 = vld [vmem:[%s12662_s1 + $0xe0] sm:$0xf0] }
  0x11   : > { %v5905_v25 = vor.u32 %v8510_v22, %v5904_v20  ;;  %v8524_v26 = vld [vmem:[%s12662_s1 + $0xdc] sm:$0xf]  ;;  %v5819_v27 = vld [vmem:[%s12662_s1 + $0xe4] sm:$0xf0]  ;;  %v5825_v28 = vld [vmem:[%s12662_s1 + $0xe0] sm:$0xf]  ;;  %v5818_v29 = vor.u32 %v8525_v24, %v5817_v23 }
  0x12   : > { %473 = vmatpush.bf16.msra.mxu0 %v5830_v16  ;;  %v8526_v30 = vld [vmem:[%s12662_s1 + $0xe8] sm:$0xf0]  ;;  %v5892_v31 = vld [vmem:[%s12662_s1 + $0x48] sm:$0xf]  ;;  %v8507_v32 = vld [vmem:[%s12662_s1 + $0x50] sm:$0xf0]  ;;  %v5822_v33 = vor.u32 %v8524_v26, %v5819_v27 }
  0x13   : > { %487 = vmatpush.bf16.msra.mxu1 %v5834_v17  ;;  %501 = vmatpush.bf16.msra.mxu2 %v5838_v21  ;;  %v5826_v34 = vor.u32 %v8526_v30, %v5825_v28  ;;  %v5805_v35 = vld [vmem:[%s12662_s1 + $0xc0] sm:$0xf]  ;;  %v8522_v36 = vld [vmem:[%s12662_s1 + $0xc8] sm:$0xf0]  ;;  %v8521_v37 = vld [vmem:[%s12662_s1 + $0xc4] sm:$0xf]  ;;  %v5893_v38 = vor.u32 %v8507_v32, %v5892_v31 }
  0x14   : > { %621 = vmatpush.bf16.msra.mxu3 %v5905_v25  ;;  %v5807_v39 = vld [vmem:[%s12662_s1 + $0xcc] sm:$0xf0]  ;;  %v5813_v40 = vld [vmem:[%s12662_s1 + $0xc8] sm:$0xf]  ;;  %v8523_v41 = vld [vmem:[%s12662_s1 + $0xd0] sm:$0xf0]  ;;  %v5806_v44 = vor.u32 %v8522_v36, %v5805_v35 }
  0x15   : > { %v5880_v42 = vld [vmem:[%s12662_s1 + $0x30] sm:$0xf]  ;;  %v8504_v43 = vld [vmem:[%s12662_s1 + $0x38] sm:$0xf0]  ;;  %v5793_v45 = vld [vmem:[%s12662_s1 + $0xa8] sm:$0xf]  ;;  %v5810_v46 = vor.u32 %v8521_v37, %v5807_v39  ;;  %v5814_v47 = vor.u32 %v8523_v41, %v5813_v40 }
  0x16   : > { %474 = vmatpush.bf16.msra.mxu0 %v5818_v29  ;;  %v8519_v48 = vld [vmem:[%s12662_s1 + $0xb0] sm:$0xf0]  ;;  %v8518_v49 = vld [vmem:[%s12662_s1 + $0xac] sm:$0xf]  ;;  %v5795_v50 = vld [vmem:[%s12662_s1 + $0xb4] sm:$0xf0]  ;;  %v5881_v51 = vor.u32 %v8504_v43, %v5880_v42 }
  0x17   : > { %488 = vmatpush.bf16.msra.mxu1 %v5822_v33  ;;  %502 = vmatpush.bf16.msra.mxu2 %v5826_v34  ;;  %v5801_v52 = vld [vmem:[%s12662_s1 + $0xb0] sm:$0xf]  ;;  %v8520_v53 = vld [vmem:[%s12662_s1 + $0xb8] sm:$0xf0]  ;;  %v5868_v54 = vld [vmem:[%s12662_s1 + $0x18] sm:$0xf]  ;;  %v5794_v58 = vor.u32 %v8519_v48, %v5793_v45  ;;  %v5798_v62 = vor.u32 %v8518_v49, %v5795_v50 }
  0x18   : > { %622 = vmatpush.bf16.msra.mxu3 %v5893_v38  ;;  %v8501_v55 = vld [vmem:[%s12662_s1 + $0x20] sm:$0xf0]  ;;  %v5781_v56 = vld [vmem:[%s12662_s1 + $0x90] sm:$0xf]  ;;  %v8516_v57 = vld [vmem:[%s12662_s1 + $0x98] sm:$0xf0]  ;;  %v5802_v63 = vor.u32 %v8520_v53, %v5801_v52 }
  0x19   : > { %v8515_v59 = vld [vmem:[%s12662_s1 + $0x94] sm:$0xf]  ;;  %v5783_v60 = vld [vmem:[%s12662_s1 + $0x9c] sm:$0xf0]  ;;  %v5789_v61 = vld [vmem:[%s12662_s1 + $0x98] sm:$0xf]  ;;  %v5869_v3 = vor.u32 %v8501_v55, %v5868_v54  ;;  %v5782_v9 = vor.u32 %v8516_v57, %v5781_v56 }
  0x1a   : > { %475 = vmatpush.bf16.msra.mxu0 %v5806_v44  ;;  %v8517_v0 = vld [vmem:[%s12662_s1 + $0xa0] sm:$0xf0]  ;;  %v5856_v1 = vld [vmem:[%s12662_s1] sm:$0xf]  ;;  %v8498_v2 = vld [vmem:[%s12662_s1 + $0x8] sm:$0xf0]  ;;  %v5786_v12 = vor.u32 %v8515_v59, %v5783_v60 }
  0x1b   : > { %489 = vmatpush.bf16.msra.mxu1 %v5810_v46  ;;  %503 = vmatpush.bf16.msra.mxu2 %v5814_v47  ;;  %v8512_v4 = vld [vmem:[%s12662_s1 + $0x7c] sm:$0xf]  ;;  %v5918_v5 = vld [vmem:[%s12662_s1 + $0x84] sm:$0xf0]  ;;  %v5924_v6 = vld [vmem:[%s12662_s1 + $0x80] sm:$0xf]  ;;  %v5790_v13 = vor.u32 %v8517_v0, %v5789_v61  ;;  %v5857_v16 = vor.u32 %v8498_v2, %v5856_v1 }
  0x1c   : > { %623 = vmatpush.bf16.msra.mxu3 %v5881_v51  ;;  %v8514_v7 = vld [vmem:[%s12662_s1 + $0x88] sm:$0xf0]  ;;  %v6015_v8 = vld [vmem:[%s12662_s1 + $0x198] sm:$0xf]  ;;  %vm282_vm0 = vcmask 781315   ;;  %s12676_s25 = smov (!%p269_p3, %s5746_s25), 1  ;;  %v5921_v17 = vor.u32 %v8512_v4, %v5918_v5 }
  0x1d   : > { %v8549_v10 = vld [vmem:[%s12662_s1 + $0x1a0] sm:$0xf0]  ;;  %v8548_v11 = vld [vmem:[%s12662_s1 + $0x19c] sm:$0xf]  ;;  %v6017_v14 = vld [vmem:[%s12662_s1 + $0x1a4] sm:$0xf0]  ;;  %v5925_v20 = vor.u32 %v8514_v7, %v5924_v6 }
  0x1e   : > { %476 = vmatpush.bf16.msra.mxu0 %v5794_v58  ;;  %v9070_v15 = vmov 0   ;;  %v8509_v18 = vld [vmem:[%s12662_s1 + $0x64] sm:$0xf]  ;;  %v5906_v19 = vld [vmem:[%s12662_s1 + $0x6c] sm:$0xf0]  ;;  %v6016_v21 = vor.u32 %v8549_v10, %v6015_v8  ;;  %s8495_s14 = sshll.u32 %s12676_s25, 4  ;;  %v6020_v24 = vor.u32 %v8548_v11, %v6017_v14 }
  0x1f   : > { %490 = vmatpush.bf16.msra.mxu1 %v5798_v62  ;;  %504 = vmatpush.bf16.msra.mxu2 %v5802_v63  ;;  %283 = vst.msk [vmem:[#allocation2 + $0x4] sm:$0x8] %vm282_vm0, %v9070_v15  ;;  %v5912_v22 = vld [vmem:[%s12662_s1 + $0x68] sm:$0xf]  ;;  %v8511_v23 = vld [vmem:[%s12662_s1 + $0x70] sm:$0xf0]  ;;  %s273_s21 = scalar_lea.vmem %s12661_s0, %s8495_s14  ;;  %v5909_v33 = vor.u32 %v8509_v18, %v5906_v19  ;;  %s278_s9 = scalar_lea.vmem %s12668_s7, %s8495_s14 }
  0x20   : > { %624 = vmatpush.bf16.msra.mxu3 %v5869_v3  ;;  %v6003_v25 = vld [vmem:[%s12662_s1 + $0x180] sm:$0xf]  ;;  %v8546_v26 = vld [vmem:[%s12662_s1 + $0x188] sm:$0xf0]  ;;  %v8545_v27 = vld [vmem:[%s12662_s1 + $0x184] sm:$0xf]  ;;  %v5913_v35 = vor.u32 %v8511_v23, %v5912_v22 }
  0x21   : > { %v280_v28 = vld [vmem:[%s273_s21] sm:$0xff]  ;;  %v281_v29 = vld [vmem:[%s273_s21 + $0x8] sm:$0xff]  ;;  %vm288_vm1 = vcmask 781312   ;;  %v6005_v30 = vld [vmem:[%s12662_s1 + $0x18c] sm:$0xf0]  ;;  %v6004_v36 = vor.u32 %v8546_v26, %v6003_v25  ;;  %vm466_vm2 = vcmask 785408  }
  0x22   : > { %477 = vmatpush.bf16.msra.mxu0 %v5782_v9  ;;  %v286_v31 = vpack.c.bf16 %v280_v28, %v280_v28  ;;  %v287_v32 = vpack.c.bf16 %v281_v29, %v281_v29  ;;  %v8506_v34 = vld [vmem:[%s12662_s1 + $0x4c] sm:$0xf]  ;;  %v5894_v37 = vld [vmem:[%s12662_s1 + $0x54] sm:$0xf0]  ;;  %v5900_v38 = vld [vmem:[%s12662_s1 + $0x50] sm:$0xf]  ;;  %v6008_v40 = vor.u32 %v8545_v27, %v6005_v30 }
  0x23   : > { %491 = vmatpush.bf16.msra.mxu1 %v5786_v12  ;;  %505 = vmatpush.bf16.msra.mxu2 %v5790_v13  ;;  %v8508_v39 = vld [vmem:[%s12662_s1 + $0x58] sm:$0xf0]  ;;  %v5991_v41 = vld [vmem:[%s12662_s1 + $0x168] sm:$0xf]  ;;  %v8543_v42 = vld [vmem:[%s12662_s1 + $0x170] sm:$0xf0]  ;;  %v5897_v46 = vor.u32 %v8506_v34, %v5894_v37 }
  0x24   : > { %625 = vmatpush.bf16.msra.mxu3 %v5857_v16  ;;  %289 = vst.msk [vmem:[#allocation2 + $0x8] sm:$0xf] %vm288_vm1, %v286_v31  ;;  %v8542_v43 = vld [vmem:[%s12662_s1 + $0x16c] sm:$0xf]  ;;  %v5993_v44 = vld [vmem:[%s12662_s1 + $0x174] sm:$0xf0]  ;;  %v5901_v47 = vor.u32 %v8508_v39, %v5900_v38  ;;  %v5992_v48 = vor.u32 %v8543_v42, %v5991_v41 }
  0x25   : > { %290 = vst.msk [vmem:[#allocation2 + $0xc] sm:$0xf] %vm288_vm1, %v287_v32  ;;  %v8503_v49 = vld [vmem:[%s12662_s1 + $0x34] sm:$0xf]  ;;  %v5882_v50 = vld [vmem:[%s12662_s1 + $0x3c] sm:$0xf0]  ;;  %v5996_v52 = vor.u32 %v8542_v43, %v5993_v44 }
  0x26   : > { %634 = vmatpush.bf16.msrb.mxu0 %v5921_v17  ;;  %v9063_v45 = vld [vmem:[#allocation2 + $0x4] sm:$0x8]  ;;  %v5888_v51 = vld [vmem:[%s12662_s1 + $0x38] sm:$0xf]  ;;  %v5979_v54 = vld [vmem:[%s12662_s1 + $0x150] sm:$0xf]  ;;  %v5885_v58 = vor.u32 %v8503_v49, %v5882_v50 }
  0x27   : > { %648 = vmatpush.bf16.msrb.mxu1 %v5925_v20  ;;  %787 = vmatpush.bf16.msrb.mxu2 %v6016_v21  ;;  %v8505_v53 = vld [vmem:[%s12662_s1 + $0x40] sm:$0xf0]  ;;  %v8540_v55 = vld [vmem:[%s12662_s1 + $0x158] sm:$0xf0]  ;;  %v8539_v56 = vld [vmem:[%s12662_s1 + $0x154] sm:$0xf] }
  0x28   : > { %801 = vmatpush.bf16.msrb.mxu3 %v6020_v24  ;;  %v5981_v57 = vld [vmem:[%s12662_s1 + $0x15c] sm:$0xf0]  ;;  %v8500_v59 = vld [vmem:[%s12662_s1 + $0x1c] sm:$0xf]  ;;  %v5870_v60 = vld [vmem:[%s12662_s1 + $0x24] sm:$0xf0]  ;;  %v5889_v62 = vor.u32 %v8505_v53, %v5888_v51  ;;  %v5980_v63 = vor.u32 %v8540_v55, %v5979_v54 }
  0x29   : > { %v5876_v61 = vld [vmem:[%s12662_s1 + $0x20] sm:$0xf]  ;;  %v8502_v0 = vld [vmem:[%s12662_s1 + $0x28] sm:$0xf0]  ;;  %v5967_v1 = vld [vmem:[%s12662_s1 + $0x138] sm:$0xf]  ;;  %v5984_v6 = vor.u32 %v8539_v56, %v5981_v57  ;;  %v5873_v11 = vor.u32 %v8500_v59, %v5870_v60 }
  0x2a   : > { %635 = vmatpush.bf16.msrb.mxu0 %v5909_v33  ;;  %v8537_v2 = vld [vmem:[%s12662_s1 + $0x140] sm:$0xf0]  ;;  %v8536_v9 = vld [vmem:[%s12662_s1 + $0x13c] sm:$0xf]  ;;  %v5969_v10 = vld [vmem:[%s12662_s1 + $0x144] sm:$0xf0]  ;;  %v5877_v12 = vor.u32 %v8502_v0, %v5876_v61 }
  0x2b   : > { %649 = vmatpush.bf16.msrb.mxu1 %v5913_v35  ;;  %788 = vmatpush.bf16.msrb.mxu2 %v6004_v36  ;;  %v9065_v4 = vld [vmem:[#allocation2 + $0x4] sm:$0xf0]   ;;  %vm515_vm3 = vcmask 1044480   ;;  %v5968_v13 = vor.u32 %v8537_v2, %v5967_v1  ;;  %v8497_v14 = vld [vmem:[%s12662_s1 + $0x4] sm:$0xf]  ;;  %v5972_v22 = vor.u32 %v8536_v9, %v5969_v10  ;;  %vm284_vm5 = vcmask 778240  }
  0x2c   : > { %802 = vmatpush.bf16.msrb.mxu3 %v6008_v40  ;;  %v9392_v3 = vld [vmem:[#allocation2 + $0x8] sm:$0xff]   ;;  %v9064_v16 = vor.u32 %v9065_v4, %v9063_v45  ;;  %v5858_v19 = vld [vmem:[%s12662_s1 + $0xc] sm:$0xf0]  ;;  %v8499_v21 = vld [vmem:[%s12662_s1 + $0x10] sm:$0xf0]  ;;  %vm1058_vm7 = vcmask 1046528  }
  0x2d   : > { %v293_v5 = vld [vmem:[#allocation2 + $0xc] sm:$0x7]  ;;  %v349_v8 = vunpack.c.h.b16 %v9392_v3  ;;  %v5864_v20 = vld [vmem:[%s12662_s1 + $0x8] sm:$0xf]  ;;  %vm352_vm4 = vsmask.f32 4352  ;;  %v5861_v32 = vor.u32 %v8497_v14, %v5858_v19 }
  0x2e   : > { %636 = vmatpush.bf16.msrb.mxu0 %v5897_v46  ;;  %v513_v7 = vunpack.c.l.b16 %v293_v5  ;;  %v5955_v23 = vld [vmem:[%s12662_s1 + $0x120] sm:$0xf]  ;;  %v8534_v24 = vld [vmem:[%s12662_s1 + $0x128] sm:$0xf0]  ;;  %v516_v25 = vrot.slane %v9064_v16, 3  ;;  %v354_v27 = vshrl.u32 %v9064_v16, 16  ;;  %v5865_v33 = vor.u32 %v8499_v21, %v5864_v20 }
  0x2f   : > { %650 = vmatpush.bf16.msrb.mxu1 %v5901_v47  ;;  %789 = vmatpush.bf16.msrb.mxu2 %v5992_v48  ;;  %v351_v18 = vpack.c.b16 %v349_v8, %v349_v8  ;;  %v357_v28 = vshll.u32 %v9064_v16, 16  ;;  %v8533_v29 = vld [vmem:[%s12662_s1 + $0x124] sm:$0xf]  ;;  %v5957_v34 = vld [vmem:[%s12662_s1 + $0x12c] sm:$0xf0]  ;;  %v5956_v39 = vor.u32 %v8534_v24, %v5955_v23  ;;  %vm1229_vm8 = vcmask 1043458  }
  0x30   : > { %803 = vmatpush.bf16.msrb.mxu3 %v5996_v52  ;;  %v514_v17 = vpack.c.b16 %v513_v7, %v513_v7  ;;  %v6023_v35 = vld [vmem:[%s12662_s1 + $0x1a0] sm:$0xf]  ;;  %v356_v37 = vrot.slane %v354_v27, 3  ;;  %v8550_v40 = vld [vmem:[%s12662_s1 + $0x1a8] sm:$0xf0]  ;;  %v5960_v51 = vor.u32 %v8533_v29, %v5957_v34  ;;  %vm1232_vm10 = vcmask 1047558  }
  0x31   : > { %v362_v30 = vshrl.u32 %v351_v18, 16  ;;  %v365_v31 = vshll.u32 %v351_v18, 16  ;;  %v359_v38 = vrot.slane %v357_v28, 4  ;;  %v6114_v41 = vld [vmem:[%s12662_s1 + $0x228] sm:$0xf]  ;;  %v6024_v52 = vor.u32 %v8550_v40, %v6023_v35 }
  0x32   : > { %637 = vmatpush.bf16.msrb.mxu0 %v5885_v58  ;;  %v517_v26 = vrot.slane %v514_v17, 3  ;;  %v8567_v44 = vld [vmem:[%s12662_s1 + $0x230] sm:$0xf0]  ;;  %v8566_v45 = vld [vmem:[%s12662_s1 + $0x22c] sm:$0xf]  ;;  %vm4238_vm15 = vcmask 521220  }
  0x33   : > { %651 = vmatpush.bf16.msrb.mxu1 %v5889_v62  ;;  %790 = vmatpush.bf16.msrb.mxu2 %v5980_v63  ;;  %v364_v42 = vrot.slane %v362_v30, 3  ;;  %v367_v43 = vrot.slane %v365_v31, 4  ;;  %v360_v46 = vor.u32 %v359_v38, %v356_v37  ;;  %v6116_v47 = vld [vmem:[%s12662_s1 + $0x234] sm:$0xf0]  ;;  %v6122_v48 = vld [vmem:[%s12662_s1 + $0x230] sm:$0xf]  ;;  %v6115_v53 = vor.u32 %v8567_v44, %v6114_v41 }
  0x34   : > { %804 = vmatpush.bf16.msrb.mxu3 %v5984_v6  ;;  %v9429_v36 = vsel %vm515_vm3, %v516_v25, %v517_v26  ;;  %v8568_v49 = vld [vmem:[%s12662_s1 + $0x238] sm:$0xf0]  ;;  %v6011_v54 = vld [vmem:[%s12662_s1 + $0x188] sm:$0xf]  ;;  %v8547_v55 = vld [vmem:[%s12662_s1 + $0x190] sm:$0xf0]  ;;  %v6119_v57 = vor.u32 %v8566_v45, %v6116_v47 }
  0x35   : > { %5926 = vmatmul.msk.bf16.vlgmr.msra.gmra.mxu3 %vm466_vm2, %v9429_v36  ;;  %v368_v50 = vor.u32 %v367_v43, %v364_v42  ;;  %v6123_v58 = vor.u32 %v8568_v49, %v6122_v48  ;;  %v6102_v59 = vld [vmem:[%s12662_s1 + $0x210] sm:$0xf]  ;;  %v8564_v60 = vld [vmem:[%s12662_s1 + $0x218] sm:$0xf0]  ;;  %v8563_v61 = vld [vmem:[%s12662_s1 + $0x214] sm:$0xf]  ;;  %v6012_v1 = vor.u32 %v8547_v55, %v6011_v54 }
  0x36   : > { %638 = vmatpush.bf16.msrb.mxu0 %v5873_v11  ;;  %v6104_v62 = vld [vmem:[%s12662_s1 + $0x21c] sm:$0xf0]  ;;  %v6110_v63 = vld [vmem:[%s12662_s1 + $0x218] sm:$0xf]  ;;  %v8565_v0 = vld [vmem:[%s12662_s1 + $0x220] sm:$0xf0]  ;;  %v6103_v2 = vor.u32 %v8564_v60, %v6102_v59 }
  0x37   : > { %652 = vmatpush.bf16.msrb.mxu1 %v5877_v12  ;;  %791 = vmatpush.bf16.msrb.mxu2 %v5968_v13  ;;  %v369_v56 = vsel %vm352_vm4, %v360_v46, %v368_v50  ;;  %v5999_v4 = vld [vmem:[%s12662_s1 + $0x170] sm:$0xf]  ;;  %v6107_v5 = vor.u32 %v8563_v61, %v6104_v62  ;;  %v6111_v6 = vor.u32 %v8565_v0, %v6110_v63  ;;  %v8544_v7 = vld [vmem:[%s12662_s1 + $0x178] sm:$0xf0]  ;;  %v6090_v8 = vld [vmem:[%s12662_s1 + $0x1f8] sm:$0xf] }
  0x38   : > { %805 = vmatpush.bf16.msrb.mxu3 %v5972_v22  ;;  %5851 = vmatmul.msk.bf16.vlgmr.msra.gmra.mxu0 %vm466_vm2, %v369_v56  ;;  %v8561_v9 = vld [vmem:[%s12662_s1 + $0x200] sm:$0xf0]  ;;  %v8560_v10 = vld [vmem:[%s12662_s1 + $0x1fc] sm:$0xf]  ;;  %v6092_v11 = vld [vmem:[%s12662_s1 + $0x204] sm:$0xf0]  ;;  %v6000_v14 = vor.u32 %v8544_v7, %v5999_v4 }
  0x39   : > { %5852 = vmatmul.msk.bf16.vlgmr.msra.gmra.mxu1 %vm466_vm2, %v369_v56  ;;  %5853 = vmatmul.msk.bf16.vlgmr.msra.gmra.mxu2 %vm466_vm2, %v369_v56  ;;  %v6098_v12 = vld [vmem:[%s12662_s1 + $0x200] sm:$0xf]  ;;  %v8562_v13 = vld [vmem:[%s12662_s1 + $0x208] sm:$0xf0]  ;;  %v6091_v16 = vor.u32 %v8561_v9, %v6090_v8  ;;  %v5987_v17 = vld [vmem:[%s12662_s1 + $0x158] sm:$0xf]  ;;  %v6095_v18 = vor.u32 %v8560_v10, %v6092_v11 }
  0x3a   : > { %639 = vmatpush.bf16.msrb.mxu0 %v5861_v32  ;;  %v8541_v19 = vld [vmem:[%s12662_s1 + $0x160] sm:$0xf0]  ;;  %v6078_v20 = vld [vmem:[%s12662_s1 + $0x1e0] sm:$0xf]  ;;  %v8558_v21 = vld [vmem:[%s12662_s1 + $0x1e8] sm:$0xf0]  ;;  %v6099_v22 = vor.u32 %v8562_v13, %v6098_v12 }
  0x3b   : > { %653 = vmatpush.bf16.msrb.mxu1 %v5865_v33  ;;  %792 = vmatpush.bf16.msrb.mxu2 %v5956_v39  ;;  %v8557_v23 = vld [vmem:[%s12662_s1 + $0x1e4] sm:$0xf]  ;;  %v6080_v24 = vld [vmem:[%s12662_s1 + $0x1ec] sm:$0xf0]  ;;  %v6086_v25 = vld [vmem:[%s12662_s1 + $0x1e8] sm:$0xf]  ;;  %v5988_v27 = vor.u32 %v8541_v19, %v5987_v17  ;;  %v6079_v28 = vor.u32 %v8558_v21, %v6078_v20 }
  0x3c   : > { %806 = vmatpush.bf16.msrb.mxu3 %v5960_v51  ;;  %v8559_v26 = vld [vmem:[%s12662_s1 + $0x1f0] sm:$0xf0]  ;;  %285 = vst.msk [vmem:[#allocation2 + $0x10] sm:$0x1] %vm284_vm5, %v9070_v15  ;;  %v5975_v29 = vld [vmem:[%s12662_s1 + $0x140] sm:$0xf]  ;;  %v6083_v32 = vor.u32 %v8557_v23, %v6080_v24 }
  0x3d   : > { %v8538_v30 = vld [vmem:[%s12662_s1 + $0x148] sm:$0xf0]  ;;  %v6066_v33 = vld [vmem:[%s12662_s1 + $0x1c8] sm:$0xf]  ;;  %v8555_v34 = vld [vmem:[%s12662_s1 + $0x1d0] sm:$0xf0]  ;;  %v6087_v40 = vor.u32 %v8559_v26, %v6086_v25 }
  0x3e   : > { %815 = vmatpush.bf16.msra.mxu0 %v6024_v52  ;;  %v9035_v31 = vld [vmem:[#allocation2 + $0x8] sm:$0xff]   ;;  %v6068_v37 = vld [vmem:[%s12662_s1 + $0x1d4] sm:$0xf0]  ;;  %v6074_v38 = vld [vmem:[%s12662_s1 + $0x1d0] sm:$0xf]  ;;  %v5976_v44 = vor.u32 %v8538_v30, %v5975_v29  ;;  %v6067_v45 = vor.u32 %v8555_v34, %v6066_v33  ;;  %vm1242_vm0 = vcmask 1041408  }
  0x3f   : > { %983 = vmatpush.bf16.msra.mxu1 %v6115_v53  ;;  %997 = vmatpush.bf16.msra.mxu2 %v6119_v57  ;;  %v8554_v35 = vld [vmem:[%s12662_s1 + $0x1cc] sm:$0xf]  ;;  %v8556_v39 = vld [vmem:[%s12662_s1 + $0x1d8] sm:$0xf0]  ;;  %v5963_v41 = vld [vmem:[%s12662_s1 + $0x128] sm:$0xf] }
  0x40   : > { %1011 = vmatpush.bf16.msra.mxu3 %v6123_v58  ;;  %v8535_v42 = vld [vmem:[%s12662_s1 + $0x130] sm:$0xf0]  ;;  %v873_v43 = vshll.u32 %v9035_v31, 16  ;;  %v6054_v46 = vld [vmem:[%s12662_s1 + $0x1b0] sm:$0xf]  ;;  %v6071_v49 = vor.u32 %v8554_v35, %v6068_v37  ;;  %v6075_v56 = vor.u32 %v8556_v39, %v6074_v38  ;;  %v871_v59 = vshrl.u32 %v9035_v31, 16  ;;  %vm4239_vm5 = vmor %vm4238_vm15, %vm1242_vm0 }
  0x41   : > { %v8552_v47 = vld [vmem:[%s12662_s1 + $0x1b8] sm:$0xf0]  ;;  %v8551_v48 = vld [vmem:[%s12662_s1 + $0x1b4] sm:$0xf]  ;;  %v6056_v50 = vld [vmem:[%s12662_s1 + $0x1bc] sm:$0xf0]  ;;  %v5964_v61 = vor.u32 %v8535_v42, %v5963_v41 }
  0x42   : > { %816 = vmatpush.bf16.msra.mxu0 %v6012_v1  ;;  %v6213_v51 = vld [vmem:[%s12662_s1 + $0x2b8] sm:$0xf]  ;;  %v8585_v52 = vld [vmem:[%s12662_s1 + $0x2c0] sm:$0xf0]  ;;  %v8584_v53 = vld [vmem:[%s12662_s1 + $0x2bc] sm:$0xf]  ;;  %v6055_v62 = vor.u32 %v8552_v47, %v6054_v46  ;;  %v6059_v1 = vor.u32 %v8551_v48, %v6056_v50 }
  0x43   : > { %984 = vmatpush.bf16.msra.mxu1 %v6103_v2  ;;  %998 = vmatpush.bf16.msra.mxu2 %v6107_v5  ;;  %v6215_v54 = vld [vmem:[%s12662_s1 + $0x2c4] sm:$0xf0]  ;;  %v835_v55 = vld [vmem:[#allocation2 + $0x10] sm:$0x1]  ;;  %v6221_v57 = vld [vmem:[%s12662_s1 + $0x2c0] sm:$0xf]  ;;  %v6214_v2 = vor.u32 %v8585_v52, %v6213_v51 }
  0x44   : > { %1012 = vmatpush.bf16.msra.mxu3 %v6111_v6  ;;  %v866_v58 = vunpack.c.l.b16 %v835_v55  ;;  %v875_v60 = vrot.slane %v873_v43, 1  ;;  %v6062_v63 = vld [vmem:[%s12662_s1 + $0x1b8] sm:$0xf]  ;;  %v8553_v0 = vld [vmem:[%s12662_s1 + $0x1c0] sm:$0xf0]  ;;  %v6218_v5 = vor.u32 %v8584_v53, %v6215_v54  ;;  %vm1245_vm1 = vcmask 1045508  }
  0x45   : > { %6026 = vmatmul.msk.bf16.vlgmr.msrb.gmra.mxu3 %vm466_vm2, %v9392_v3  ;;  %v6201_v7 = vld [vmem:[%s12662_s1 + $0x2a0] sm:$0xf]  ;;  %v8582_v8 = vld [vmem:[%s12662_s1 + $0x2a8] sm:$0xf0]  ;;  %v8581_v9 = vld [vmem:[%s12662_s1 + $0x2a4] sm:$0xf]  ;;  %v6063_v10 = vor.u32 %v8553_v0, %v6062_v63 }
  0x46   : > { %817 = vmatpush.bf16.msra.mxu0 %v6000_v14  ;;  %v9605_v4 = vpack.c.b16 %v866_v58, %v866_v58  ;;  %v876_v11 = vor.u32 %v875_v60, %v871_v59  ;;  %v6203_v13 = vld [vmem:[%s12662_s1 + $0x2ac] sm:$0xf0]  ;;  %vm869_vm6 = vsmask.f32 7424  ;;  %v6209_v14 = vld [vmem:[%s12662_s1 + $0x2a8] sm:$0xf] }
  0x47   : > { %985 = vmatpush.bf16.msra.mxu1 %v6091_v16  ;;  %999 = vmatpush.bf16.msra.mxu2 %v6095_v18  ;;  %v8583_v16 = vld [vmem:[%s12662_s1 + $0x2b0] sm:$0xf0]  ;;  %v6202_v18 = vor.u32 %v8582_v8, %v6201_v7  ;;  %v6206_v19 = vor.u32 %v8581_v9, %v6203_v13  ;;  %v6189_v20 = vld [vmem:[%s12662_s1 + $0x288] sm:$0xf]  ;;  %v8578_v24 = vld [vmem:[%s12662_s1 + $0x28c] sm:$0xf] }
  0x48   : > { %1013 = vmatpush.bf16.msra.mxu3 %v6099_v22  ;;  %5927 = vmatmul.msk.bf16.vlgmr.msrb.gmra.mxu0 %vm466_vm2, %v9429_v36  ;;  %v878_v12 = vshll.u32 %v9605_v4, 16  ;;  %v8579_v21 = vld [vmem:[%s12662_s1 + $0x290] sm:$0xf0]  ;;  %v6210_v23 = vor.u32 %v8583_v16, %v6209_v14  ;;  %v6191_v25 = vld [vmem:[%s12662_s1 + $0x294] sm:$0xf0]  ;;  %v1060_v60 = vrot.slane %v9605_v4, 1 }
  0x49   : > { %5928 = vmatmul.msk.bf16.vlgmr.msrb.gmra.mxu1 %vm466_vm2, %v9429_v36  ;;  %6025 = vmatmul.msk.bf16.vlgmr.msrb.gmra.mxu2 %vm466_vm2, %v9392_v3  ;;  %v8586_v36 = vld [vmem:[%s12662_s1 + $0x2c8] sm:$0xf0]  ;;  %v6190_v26 = vor.u32 %v8579_v21, %v6189_v20  ;;  %v6177_v29 = vld [vmem:[%s12662_s1 + $0x270] sm:$0xf]  ;;  %v8576_v30 = vld [vmem:[%s12662_s1 + $0x278] sm:$0xf0]  ;;  %v6194_v31 = vor.u32 %v8578_v24, %v6191_v25 }
  0x4a   : > { %818 = vmatpush.bf16.msra.mxu0 %v5988_v27  ;;  %v6222_v6 = vor.u32 %v8586_v36, %v6221_v57  ;;  %v880_v17 = vrot.slane %v878_v12, 1  ;;  %v6197_v27 = vld [vmem:[%s12662_s1 + $0x290] sm:$0xf]  ;;  %v8575_v33 = vld [vmem:[%s12662_s1 + $0x274] sm:$0xf]  ;;  %v6178_v35 = vor.u32 %v8576_v30, %v6177_v29 }
  0x4b   : > { %986 = vmatpush.bf16.msra.mxu1 %v6079_v28  ;;  %1000 = vmatpush.bf16.msra.mxu2 %v6083_v32  ;;  %v8580_v28 = vld [vmem:[%s12662_s1 + $0x298] sm:$0xf0]  ;;  %v6179_v34 = vld [vmem:[%s12662_s1 + $0x27c] sm:$0xf0]  ;;  %v6185_v37 = vld [vmem:[%s12662_s1 + $0x278] sm:$0xf] }
  0x4c   : > { %1014 = vmatpush.bf16.msra.mxu3 %v6087_v40  ;;  %v881_v22 = vsel %vm869_vm6, %v876_v11, %v880_v17  ;;  %v6198_v32 = vor.u32 %v8580_v28, %v6197_v27  ;;  %v8577_v38 = vld [vmem:[%s12662_s1 + $0x280] sm:$0xf0]  ;;  %v6165_v39 = vld [vmem:[%s12662_s1 + $0x258] sm:$0xf]  ;;  %v6182_v41 = vor.u32 %v8575_v33, %v6179_v34  ;;  %v8572_v42 = vld [vmem:[%s12662_s1 + $0x25c] sm:$0xf] }
  0x4d   : > { %v8573_v40 = vld [vmem:[%s12662_s1 + $0x260] sm:$0xf0]  ;;  %v6167_v43 = vld [vmem:[%s12662_s1 + $0x264] sm:$0xf0]  ;;  %v6173_v47 = vld [vmem:[%s12662_s1 + $0x260] sm:$0xf] }
  0x4e   : > { %819 = vmatpush.bf16.msra.mxu0 %v5976_v44  ;;  %v9036_v44 = vld [vmem:[#allocation2 + $0x8] sm:$0xf0]  ;;  %v6166_v46 = vor.u32 %v8573_v40, %v6165_v39  ;;  %v6170_v51 = vor.u32 %v8572_v42, %v6167_v43  ;;  %v8569_v54 = vld [vmem:[%s12662_s1 + $0x244] sm:$0xf]  ;;  %v6155_v55 = vld [vmem:[%s12662_s1 + $0x24c] sm:$0xf0] }
  0x4f   : > { %987 = vmatpush.bf16.msra.mxu1 %v6067_v45  ;;  %1001 = vmatpush.bf16.msra.mxu2 %v6071_v49  ;;  %v9037_v45 = vld [vmem:[#allocation2 + $0x8] sm:$0xe]  ;;  %v8574_v48 = vld [vmem:[%s12662_s1 + $0x268] sm:$0xf0]  ;;  %v6153_v49 = vld [vmem:[%s12662_s1 + $0x240] sm:$0xf]  ;;  %v6158_v58 = vor.u32 %v8569_v54, %v6155_v55 }
  0x50   : > { %1015 = vmatpush.bf16.msra.mxu3 %v6075_v56  ;;  %v8570_v50 = vld [vmem:[%s12662_s1 + $0x248] sm:$0xf0]  ;;  %v9038_v52 = vor.u32 %v9037_v45, %v9036_v44  ;;  %v6174_v53 = vor.u32 %v8574_v48, %v6173_v47  ;;  %v6161_v57 = vld [vmem:[%s12662_s1 + $0x248] sm:$0xf]  ;;  %v8571_v36 = vld [vmem:[%s12662_s1 + $0x250] sm:$0xf0] }
  0x51   : > { %v6154_v56 = vor.u32 %v8570_v50, %v6153_v49  ;;  %v6332_v63 = vld [vmem:[%s12664_s3 + $0x1f0] sm:$0xf]  ;;  %v8650_v0 = vld [vmem:[%s12664_s3 + $0x1f4] sm:$0xf0]  ;;  %v6324_v11 = vld [vmem:[%s12664_s3 + $0x1e0] sm:$0xf] }
  0x52   : > { %820 = vmatpush.bf16.msra.mxu0 %v5964_v61  ;;  %v1059_v59 = vrot.slane %v9038_v52, 1  ;;  %v6162_v61 = vor.u32 %v8571_v36, %v6161_v57  ;;  %v8666_v4 = vld [vmem:[%s12664_s3 + $0x274] sm:$0xf0]  ;;  %v8648_v12 = vld [vmem:[%s12664_s3 + $0x1e4] sm:$0xf0] }
  0x53   : > { %988 = vmatpush.bf16.msra.mxu1 %v6055_v62  ;;  %1002 = vmatpush.bf16.msra.mxu2 %v6059_v1  ;;  %v6396_v1 = vld [vmem:[%s12664_s3 + $0x270] sm:$0xf]  ;;  %v6388_v13 = vld [vmem:[%s12664_s3 + $0x260] sm:$0xf]  ;;  %v6325_v14 = vor.u32 %v8648_v12, %v6324_v11  ;;  %v8664_v16 = vld [vmem:[%s12664_s3 + $0x264] sm:$0xf0] }
  0x54   : > { %1016 = vmatpush.bf16.msra.mxu3 %v6063_v10  ;;  %v1061_v62 = vsel %vm1058_vm7, %v1059_v59, %v1060_v60  ;;  %v6397_v9 = vor.u32 %v8666_v4, %v6396_v1  ;;  %v8647_v17 = vld [vmem:[%s12664_s3 + $0x1e4] sm:$0xf]  ;;  %v6460_v21 = vld [vmem:[%s12664_s3 + $0x2f0] sm:$0xf]  ;;  %v8646_v25 = vld [vmem:[%s12664_s3 + $0x1d4] sm:$0xf0] }
  0x55   : > { %v8662_v27 = vld [vmem:[%s12664_s3 + $0x254] sm:$0xf0]  ;;  %v8645_v28 = vld [vmem:[%s12664_s3 + $0x1d4] sm:$0xf]  ;;  %v6318_v29 = vld [vmem:[%s12664_s3 + $0x1d8] sm:$0xf0] }
  0x56   : > { %1163 = vmatpush.bf16.msrb.mxu0 %v6214_v2  ;;  %v6333_v2 = vor.u32 %v8650_v0, %v6332_v63  ;;  %v6452_v30 = vld [vmem:[%s12664_s3 + $0x2e0] sm:$0xf]  ;;  %v6321_v34 = vor.u32 %v8645_v28, %v6318_v29  ;;  %v8660_v43 = vld [vmem:[%s12664_s3 + $0x244] sm:$0xf0]  ;;  %v8643_v44 = vld [vmem:[%s12664_s3 + $0x1c4] sm:$0xf] }
  0x57   : > { %1177 = vmatpush.bf16.msrb.mxu1 %v6218_v5  ;;  %1191 = vmatpush.bf16.msrb.mxu2 %v6222_v6  ;;  %v8649_v5 = vld [vmem:[%s12664_s3 + $0x1f4] sm:$0xf]  ;;  %v6334_v6 = vld [vmem:[%s12664_s3 + $0x1f8] sm:$0xf0]  ;;  %v6308_v40 = vld [vmem:[%s12664_s3 + $0x1c0] sm:$0xf] }
  0x58   : > { %6126 = vmatmul.msk.bf16.vlgmr.msra.gmra.mxu3 %vm466_vm2, %v881_v22  ;;  %6027 = vmatmul.msk.bf16.vlgmr.msra.gmra.mxu0 %vm466_vm2, %v9392_v3  ;;  %v6186_v3 = vor.u32 %v8577_v38, %v6185_v37  ;;  %v6337_v10 = vor.u32 %v8649_v5, %v6334_v6  ;;  %v6372_v42 = vld [vmem:[%s12664_s3 + $0x240] sm:$0xf]  ;;  %v6310_v45 = vld [vmem:[%s12664_s3 + $0x1c8] sm:$0xf0]  ;;  %v6444_v48 = vld [vmem:[%s12664_s3 + $0x2d0] sm:$0xf] }
  0x59   : > { %6124 = vmatmul.msk.bf16.vlgmr.msra.gmra.mxu1 %vm466_vm2, %v881_v22  ;;  %6125 = vmatmul.msk.bf16.vlgmr.msra.gmra.mxu2 %vm466_vm2, %v881_v22  ;;  %v8682_v22 = vld [vmem:[%s12664_s3 + $0x2f4] sm:$0xf0]  ;;  %v6313_v47 = vor.u32 %v8643_v44, %v6310_v45  ;;  %v6300_v50 = vld [vmem:[%s12664_s3 + $0x1b0] sm:$0xf]  ;;  %v8641_v55 = vld [vmem:[%s12664_s3 + $0x1b4] sm:$0xf] }
  0x5a   : > { %1164 = vmatpush.bf16.msrb.mxu0 %v6202_v18  ;;  %1641 = vmatpush.bf16.msrb.mxu3 %v6333_v2  ;;  %v6326_v18 = vld [vmem:[%s12664_s3 + $0x1e8] sm:$0xf0]  ;;  %v6461_v24 = vor.u32 %v8682_v22, %v6460_v21  ;;  %v8678_v49 = vld [vmem:[%s12664_s3 + $0x2d4] sm:$0xf0]  ;;  %v6436_v57 = vld [vmem:[%s12664_s3 + $0x2c0] sm:$0xf] }
  0x5b   : > { %1178 = vmatpush.bf16.msrb.mxu1 %v6206_v19  ;;  %1192 = vmatpush.bf16.msrb.mxu2 %v6210_v23  ;;  %v6389_v19 = vor.u32 %v8664_v16, %v6388_v13  ;;  %v6329_v20 = vor.u32 %v8647_v17, %v6326_v18  ;;  %v6316_v23 = vld [vmem:[%s12664_s3 + $0x1d0] sm:$0xf]  ;;  %v8642_v52 = vld [vmem:[%s12664_s3 + $0x1b4] sm:$0xf0]  ;;  %v8676_v59 = vld [vmem:[%s12664_s3 + $0x2c4] sm:$0xf0] }
  0x5c   : > { %v8658_v54 = vld [vmem:[%s12664_s3 + $0x234] sm:$0xf0]  ;;  %v6292_v2 = vld [vmem:[%s12664_s3 + $0x1a0] sm:$0xf]  ;;  %v8640_v4 = vld [vmem:[%s12664_s3 + $0x1a4] sm:$0xf0] }
  0x5d   : > { %v6356_v5 = vld [vmem:[%s12664_s3 + $0x220] sm:$0xf]  ;;  %v6293_v6 = vor.u32 %v8640_v4, %v6292_v2  ;;  %v6294_v11 = vld [vmem:[%s12664_s3 + $0x1a8] sm:$0xf0]  ;;  %v8674_v16 = vld [vmem:[%s12664_s3 + $0x2b4] sm:$0xf0] }
  0x5e   : > { %1165 = vmatpush.bf16.msrb.mxu0 %v6190_v26  ;;  %v6380_v26 = vld [vmem:[%s12664_s3 + $0x250] sm:$0xf]  ;;  %1642 = vmatpush.bf16.msrb.mxu3 %v6325_v14  ;;  %v8654_v21 = vld [vmem:[%s12664_s3 + $0x214] sm:$0xf0]  ;;  %v8637_v22 = vld [vmem:[%s12664_s3 + $0x194] sm:$0xf] }
  0x5f   : > { %1179 = vmatpush.bf16.msrb.mxu1 %v6194_v31  ;;  %1193 = vmatpush.bf16.msrb.mxu2 %v6198_v32  ;;  %v6317_v31 = vor.u32 %v8646_v25, %v6316_v23  ;;  %v8680_v32 = vld [vmem:[%s12664_s3 + $0x2e4] sm:$0xf0]  ;;  %v6381_v33 = vor.u32 %v8662_v27, %v6380_v26  ;;  %v6428_v14 = vld [vmem:[%s12664_s3 + $0x2b0] sm:$0xf]  ;;  %v6286_v23 = vld [vmem:[%s12664_s3 + $0x198] sm:$0xf0] }
  0x60   : > { %v6284_v17 = vld [vmem:[%s12664_s3 + $0x190] sm:$0xf]  ;;  %v6429_v18 = vor.u32 %v8674_v16, %v6428_v14  ;;  %v6289_v26 = vor.u32 %v8637_v22, %v6286_v23  ;;  %v6404_v14 = vld [vmem:[%s12664_s3 + $0x280] sm:$0xf]  ;;  %v8668_v16 = vld [vmem:[%s12664_s3 + $0x284] sm:$0xf0] }
  0x61   : > { %vm1230_vm9 = vsmask.f32 7946  ;;  %vm1233_vm11 = vsmask.f32 7962  ;;  %4240 = vst.msk [vmem:[#allocation4 + $0x20] sm:$0x33] %vm4239_vm5, %v9070_v15 }
  0x62   : > { %1166 = vmatpush.bf16.msrb.mxu0 %v6178_v35  ;;  %v6453_v35 = vor.u32 %v8680_v32, %v6452_v30  ;;  %1643 = vmatpush.bf16.msrb.mxu3 %v6317_v31  ;;  %v6420_v31 = vld [vmem:[%s12664_s3 + $0x2a0] sm:$0xf]  ;;  %v8672_v32 = vld [vmem:[%s12664_s3 + $0x2a4] sm:$0xf0]  ;;  %vm10101_vm12 = vmand %vm1229_vm8, %vm1230_vm9  ;;  %vm4421_vm5 = vcmask 523264  }
  0x63   : > { %1180 = vmatpush.bf16.msrb.mxu1 %v6182_v41  ;;  %1194 = vmatpush.bf16.msrb.mxu2 %v6186_v3  ;;  %v8644_v41 = vld [vmem:[%s12664_s3 + $0x1c4] sm:$0xf0]  ;;  %vm10115_vm13 = vmand %vm1232_vm10, %vm1233_vm11  ;;  %vm1246_vm10 = vsmask.f32 5376 }
  0x64   : > { %v6309_v3 = vor.u32 %v8644_v41, %v6308_v40  ;;  %v6340_v40 = vld [vmem:[%s12664_s3 + $0x200] sm:$0xf]  ;;  %vm1235_vm14 = vmor %vm10115_vm13, %vm10101_vm12  ;;  %vm3836_vm13 = vsmask.f32 6400 }
  0x65   : > { %vm1247_vm11 = vmand %vm1245_vm1, %vm1246_vm10 }
  0x66   : > { %1167 = vmatpush.bf16.msrb.mxu0 %v6166_v46  ;;  %v6373_v46 = vor.u32 %v8660_v43, %v6372_v42  ;;  %1644 = vmatpush.bf16.msrb.mxu3 %v6309_v3  ;;  %v8652_v42 = vld [vmem:[%s12664_s3 + $0x204] sm:$0xf0]  ;;  %v8635_v3 = vld [vmem:[%s12664_s3 + $0x184] sm:$0xf]  ;;  %v6278_v43 = vld [vmem:[%s12664_s3 + $0x188] sm:$0xf0] }
  0x67   : > { %1181 = vmatpush.bf16.msrb.mxu1 %v6170_v51  ;;  %1195 = vmatpush.bf16.msrb.mxu2 %v6174_v53  ;;  %v6445_v51 = vor.u32 %v8678_v49, %v6444_v48  ;;  %v6364_v53 = vld [vmem:[%s12664_s3 + $0x230] sm:$0xf]  ;;  %v6341_v44 = vor.u32 %v8652_v42, %v6340_v40  ;;  %v6281_v45 = vor.u32 %v8635_v3, %v6278_v43  ;;  %v8681_v48 = vld [vmem:[%s12664_s3 + $0x2f4] sm:$0xf]  ;;  %v8659_v3 = vld [vmem:[%s12664_s3 + $0x244] sm:$0xf] }
  0x68   : > { %v6365_v60 = vor.u32 %v8658_v54, %v6364_v53  ;;  %v6374_v43 = vld [vmem:[%s12664_s3 + $0x248] sm:$0xf0] }
  0x6a   : > { %1168 = vmatpush.bf16.msrb.mxu0 %v6154_v56  ;;  %v6302_v56 = vld [vmem:[%s12664_s3 + $0x1b8] sm:$0xf0] }
  0x6b   : > { %1182 = vmatpush.bf16.msrb.mxu1 %v6158_v58  ;;  %1196 = vmatpush.bf16.msrb.mxu2 %v6162_v61  ;;  %v6301_v58 = vor.u32 %v8642_v52, %v6300_v50  ;;  %v6305_v61 = vor.u32 %v8641_v55, %v6302_v56  ;;  %v6462_v50 = vld [vmem:[%s12664_s3 + $0x2f8] sm:$0xf0]  ;;  %v8618_v52 = vld [vmem:[%s12664_s3 + $0xf4] sm:$0xf0]  ;;  %v6412_v55 = vld [vmem:[%s12664_s3 + $0x290] sm:$0xf] }
  0x6c   : > { %v6465_v53 = vor.u32 %v8681_v48, %v6462_v50  ;;  %v8670_v56 = vld [vmem:[%s12664_s3 + $0x294] sm:$0xf0]  ;;  %v6438_v48 = vld [vmem:[%s12664_s3 + $0x2c8] sm:$0xf0]  ;;  %v8612_v50 = vld [vmem:[%s12664_s3 + $0xc4] sm:$0xf0] }
  0x6d   : > { %6223 = vmatmul.msk.bf16.vlgmr.msrb.gmra.mxu0 %vm466_vm2, %v1061_v62  ;;  %1645 = vmatpush.bf16.msrb.mxu3 %v6301_v58 }
  0x6e   : > { %6224 = vmatmul.msk.bf16.vlgmr.msrb.gmra.mxu1 %vm466_vm2, %v1061_v62  ;;  %6225 = vmatmul.msk.bf16.vlgmr.msrb.gmra.mxu2 %vm466_vm2, %v1061_v62  ;;  %v6437_v62 = vor.u32 %v8676_v59, %v6436_v57  ;;  %v6413_v57 = vor.u32 %v8670_v56, %v6412_v55  ;;  %v8598_v55 = vld [vmem:[%s12664_s3 + $0x54] sm:$0xf0]  ;;  %v8657_v56 = vld [vmem:[%s12664_s3 + $0x234] sm:$0xf]  ;;  %vm1243_vm2 = vsmask.f32 1280 }
  0x6f   : > { %1655 = vmatpush.bf16.msra.mxu0 %v6397_v9  ;;  %1683 = vmatpush.bf16.msra.mxu2 %v6337_v10  ;;  %v8656_v9 = vld [vmem:[%s12664_s3 + $0x224] sm:$0xf0]  ;;  %v8639_v10 = vld [vmem:[%s12664_s3 + $0x1a4] sm:$0xf]  ;;  %vm1244_vm9 = vmand %vm1242_vm0, %vm1243_vm2  ;;  %vm4244_vm0 = vcmask 523268   ;;  %vm4458_vm2 = vcmask 1045504  }
  0x70   : > { %1669 = vmatpush.bf16.msra.mxu1 %v6461_v24  ;;  %v6357_v12 = vor.u32 %v8656_v9, %v6356_v5  ;;  %v6297_v13 = vor.u32 %v8639_v10, %v6294_v11  ;;  %v9959_v5 = vld [vmem:[%s12663_s2] sm:$0x7]  ;;  %v6454_v9 = vld [vmem:[%s12664_s3 + $0x2e8] sm:$0xf0]  ;;  %v8616_v11 = vld [vmem:[%s12664_s3 + $0xe4] sm:$0xf0] }
  0x71   : > { %1646 = vmatpush.bf16.msrb.mxu3 %v6293_v6  ;;  %v6580_v10 = vld [vmem:[%s12664_s3 + $0xe0] sm:$0xf] }
  0x73   : > { %1656 = vmatpush.bf16.msra.mxu0 %v6389_v19  ;;  %1684 = vmatpush.bf16.msra.mxu2 %v6329_v20  ;;  %v8638_v19 = vld [vmem:[%s12664_s3 + $0x194] sm:$0xf0]  ;;  %v6348_v20 = vld [vmem:[%s12664_s3 + $0x210] sm:$0xf] }
  0x74   : > { %1670 = vmatpush.bf16.msra.mxu1 %v6453_v35  ;;  %v6285_v24 = vor.u32 %v8638_v19, %v6284_v17  ;;  %v6349_v25 = vor.u32 %v8654_v21, %v6348_v20  ;;  %v8636_v35 = vld [vmem:[%s12664_s3 + $0x184] sm:$0xf0]  ;;  %v6524_v17 = vld [vmem:[%s12664_s3 + $0x70] sm:$0xf]  ;;  %v8602_v19 = vld [vmem:[%s12664_s3 + $0x74] sm:$0xf0] }
  0x75   : > { %v8661_v20 = vld [vmem:[%s12664_s3 + $0x254] sm:$0xf]  ;;  %v6382_v21 = vld [vmem:[%s12664_s3 + $0x258] sm:$0xf0]  ;;  %v6525_v22 = vor.u32 %v8602_v19, %v6524_v17  ;;  %v6422_v19 = vld [vmem:[%s12664_s3 + $0x2a8] sm:$0xf0] }
  0x76   : > { %1647 = vmatpush.bf16.msrb.mxu3 %v6285_v24  ;;  %v6385_v23 = vor.u32 %v8661_v20, %v6382_v21  ;;  %v8677_v24 = vld [vmem:[%s12664_s3 + $0x2d4] sm:$0xf]  ;;  %v6548_v20 = vld [vmem:[%s12664_s3 + $0xa0] sm:$0xf] }
  0x77   : > { %1657 = vmatpush.bf16.msra.mxu0 %v6381_v33  ;;  %1685 = vmatpush.bf16.msra.mxu2 %v6321_v34  ;;  %v6421_v33 = vor.u32 %v8672_v32, %v6420_v31  ;;  %v6276_v34 = vld [vmem:[%s12664_s3 + $0x180] sm:$0xf]  ;;  %v8614_v32 = vld [vmem:[%s12664_s3 + $0xd4] sm:$0xf0] }
  0x78   : > { %1671 = vmatpush.bf16.msra.mxu1 %v6445_v51  ;;  %v6277_v41 = vor.u32 %v8636_v35, %v6276_v34  ;;  %v6588_v51 = vld [vmem:[%s12664_s3 + $0xf0] sm:$0xf]  ;;  %v8600_v34 = vld [vmem:[%s12664_s3 + $0x64] sm:$0xf0]  ;;  %v1211_v35 = vperm.slane %v9959_v5, 0 }
  0x79   : > { %v6589_v54 = vor.u32 %v8618_v52, %v6588_v51 }
  0x7a   : > { %1648 = vmatpush.bf16.msrb.mxu3 %v6277_v41 }
  0x7b   : > { %1658 = vmatpush.bf16.msra.mxu0 %v6373_v46  ;;  %1686 = vmatpush.bf16.msra.mxu2 %v6313_v47  ;;  %v8665_v46 = vld [vmem:[%s12664_s3 + $0x274] sm:$0xf]  ;;  %v6398_v47 = vld [vmem:[%s12664_s3 + $0x278] sm:$0xf0] }
  0x7c   : > { %1672 = vmatpush.bf16.msra.mxu1 %v6437_v62  ;;  %v6401_v49 = vor.u32 %v8665_v46, %v6398_v47  ;;  %v8679_v62 = vld [vmem:[%s12664_s3 + $0x2e4] sm:$0xf]  ;;  %v6377_v47 = vor.u32 %v8659_v3, %v6374_v43  ;;  %v8669_v43 = vld [vmem:[%s12664_s3 + $0x294] sm:$0xf] }
  0x7e   : > { %1697 = vmatpush.bf16.msra.mxu3 %v6401_v49  ;;  %v6564_v49 = vld [vmem:[%s12664_s3 + $0xc0] sm:$0xf] }
  0x7f   : > { %1659 = vmatpush.bf16.msra.mxu0 %v6365_v60  ;;  %1687 = vmatpush.bf16.msra.mxu2 %v6305_v61  ;;  %v8663_v60 = vld [vmem:[%s12664_s3 + $0x264] sm:$0xf]  ;;  %v6390_v61 = vld [vmem:[%s12664_s3 + $0x268] sm:$0xf0] }
  0x80   : > { %1673 = vmatpush.bf16.msra.mxu1 %v6429_v18  ;;  %v6393_v6 = vor.u32 %v8663_v60, %v6390_v61  ;;  %v6405_v18 = vor.u32 %v8668_v16, %v6404_v14  ;;  %v6366_v61 = vld [vmem:[%s12664_s3 + $0x238] sm:$0xf0]  ;;  %v8655_v14 = vld [vmem:[%s12664_s3 + $0x224] sm:$0xf]  ;;  %v6358_v16 = vld [vmem:[%s12664_s3 + $0x228] sm:$0xf0] }
  0x82   : > { %1698 = vmatpush.bf16.msra.mxu3 %v6393_v6  ;;  %v6430_v6 = vld [vmem:[%s12664_s3 + $0x2b8] sm:$0xf0] }
  0x83   : > { %1660 = vmatpush.bf16.msra.mxu0 %v6357_v12  ;;  %1688 = vmatpush.bf16.msra.mxu2 %v6297_v13  ;;  %v6457_v12 = vor.u32 %v8679_v62, %v6454_v9  ;;  %v6581_v13 = vor.u32 %v8616_v11, %v6580_v10  ;;  %v8673_v62 = vld [vmem:[%s12664_s3 + $0x2b4] sm:$0xf]  ;;  %v6369_v10 = vor.u32 %v8657_v56, %v6366_v61  ;;  %v8610_v11 = vld [vmem:[%s12664_s3 + $0xb4] sm:$0xf0]  ;;  %v8592_v61 = vld [vmem:[%s12664_s3 + $0x24] sm:$0xf0] }
  0x84   : > { %1674 = vmatpush.bf16.msra.mxu1 %v6421_v33  ;;  %v6516_v33 = vld [vmem:[%s12664_s3 + $0x60] sm:$0xf] }
  0x85   : > { %v6517_v41 = vor.u32 %v8600_v34, %v6516_v33  ;;  %v6350_v33 = vld [vmem:[%s12664_s3 + $0x218] sm:$0xf0] }
  0x86   : > { %1699 = vmatpush.bf16.msra.mxu3 %v6385_v23  ;;  %v8594_v23 = vld [vmem:[%s12664_s3 + $0x34] sm:$0xf0] }
  0x87   : > { %1661 = vmatpush.bf16.msra.mxu0 %v6349_v25  ;;  %1689 = vmatpush.bf16.msra.mxu2 %v6289_v26  ;;  %v6446_v25 = vld [vmem:[%s12664_s3 + $0x2d8] sm:$0xf0]  ;;  %v6572_v26 = vld [vmem:[%s12664_s3 + $0xd0] sm:$0xf] }
  0x88   : > { %1675 = vmatpush.bf16.msra.mxu1 %v6413_v57  ;;  %v6449_v31 = vor.u32 %v8677_v24, %v6446_v25  ;;  %v6573_v40 = vor.u32 %v8614_v32, %v6572_v26  ;;  %v1212_v26 = vperm.slane %v9959_v5, 1  ;;  %v8653_v32 = vld [vmem:[%s12664_s3 + $0x214] sm:$0xf] }
  0x8a   : > { %1700 = vmatpush.bf16.msra.mxu3 %v6377_v47 }
  0x8b   : > { %1662 = vmatpush.bf16.msra.mxu0 %v6341_v44  ;;  %1690 = vmatpush.bf16.msra.mxu2 %v6281_v45  ;;  %v8675_v44 = vld [vmem:[%s12664_s3 + $0x2c4] sm:$0xf] }
  0x8c   : > { %1676 = vmatpush.bf16.msra.mxu1 %v6405_v18  ;;  %v6441_v52 = vor.u32 %v8675_v44, %v6438_v48  ;;  %v6414_v44 = vld [vmem:[%s12664_s3 + $0x298] sm:$0xf0] }
  0x8e   : > { %1701 = vmatpush.bf16.msra.mxu3 %v6369_v10 }
  0x8f   : > { %1711 = vmatpush.bf16.msrb.mxu0 %v6465_v53  ;;  %2041 = vmatpush.bf16.msrb.mxu2 %v6589_v54  ;;  %v6565_v53 = vor.u32 %v8612_v50, %v6564_v49  ;;  %v6508_v54 = vld [vmem:[%s12664_s3 + $0x50] sm:$0xf] }
  0x90   : > { %2027 = vmatpush.bf16.msrb.mxu1 %v6525_v22  ;;  %v6509_v60 = vor.u32 %v8598_v55, %v6508_v54  ;;  %v6492_v22 = vld [vmem:[%s12664_s3 + $0x30] sm:$0xf] }
  0x91   : > { %v6493_v49 = vor.u32 %v8594_v23, %v6492_v22  ;;  %v6540_v50 = vld [vmem:[%s12664_s3 + $0x90] sm:$0xf] }
  0x93   : > { %1712 = vmatpush.bf16.msrb.mxu0 %v6457_v12  ;;  %2042 = vmatpush.bf16.msrb.mxu2 %v6581_v13  ;;  %v6500_v12 = vld [vmem:[%s12664_s3 + $0x40] sm:$0xf] }
  0x94   : > { %2028 = vmatpush.bf16.msrb.mxu1 %v6517_v41 }
  0x97   : > { %1713 = vmatpush.bf16.msrb.mxu0 %v6449_v31  ;;  %2043 = vmatpush.bf16.msrb.mxu2 %v6573_v40  ;;  %v6361_v31 = vor.u32 %v8655_v14, %v6358_v16  ;;  %v1213_v16 = vperm.slane %v9959_v5, 2 }
  0x98   : > { %2029 = vmatpush.bf16.msrb.mxu1 %v6509_v60  ;;  %v6484_v60 = vld [vmem:[%s12664_s3 + $0x20] sm:$0xf] }
  0x99   : > { %1702 = vmatpush.bf16.msra.mxu3 %v6361_v31 }
  0x9b   : > { %1714 = vmatpush.bf16.msrb.mxu0 %v6441_v52  ;;  %2044 = vmatpush.bf16.msrb.mxu2 %v6565_v53  ;;  %v8606_v52 = vld [vmem:[%s12664_s3 + $0x94] sm:$0xf0]  ;;  %v1236_v53 = vld [vmem:[#allocation3 + $0xc] sm:$0xcc] }
  0x9c   : > { %v6541_v10 = vor.u32 %v8606_v52, %v6540_v50 }
  0xb5   : > { %v9727_v7 = vpop.f32.mrf.mxu0 }
  0xb6   : > { %v9729_v8 = vpop.f32.mrf.mxu1 }
  0xb8   : > { %v9830_v36 = vpop.f32.mrf.mxu3 }
  0xb9   : > { %v628_v57 = vadd.f32 %v9830_v36, %v9727_v7  ;;  %v6433_v7 = vor.u32 %v8673_v62, %v6430_v6  ;;  %v6556_v36 = vld [vmem:[%s12664_s3 + $0xb0] sm:$0xf]  ;;  %v8651_v62 = vld [vmem:[%s12664_s3 + $0x204] sm:$0xf] }
  0xbb   : > { %1715 = vmatpush.bf16.msrb.mxu0 %v6433_v7  ;;  %v6406_v7 = vld [vmem:[%s12664_s3 + $0x288] sm:$0xf0] }
  0xbc   : > { %v9779_v37 = vpop.f32.mrf.mxu2 }
  0xbd   : > { %v9781_v38 = vpop.f32.mrf.mxu0 }
  0xbe   : > { %v9783_v39 = vpop.f32.mrf.mxu1 }
  0xc0   : > { %v9883_v27 = vpop.f32.mrf.mxu3 }
  0xc1   : > { %v630_v54 = vadd.f32 %v9883_v27, %v9781_v38  ;;  %v6342_v27 = vld [vmem:[%s12664_s3 + $0x208] sm:$0xf0] }
  0xc4   : > { %v9835_v63 = vpop.f32.mrf.mxu2 }
  0xc5   : > { %v9837_v0 = vpop.f32.mrf.mxu0 }
  0xc6   : > { %v9839_v1 = vpop.f32.mrf.mxu1  ;;  %v642_v9 = vadd.f32 %v9837_v0, %v9729_v8  ;;  %v6557_v8 = vor.u32 %v8610_v11, %v6556_v36  ;;  %v8596_v0 = vld [vmem:[%s12664_s3 + $0x44] sm:$0xf0]  ;;  %v6532_v36 = vld [vmem:[%s12664_s3 + $0x80] sm:$0xf]  ;;  %v1237_v11 = vsel %vm1235_vm14, 0, %v1236_v53  ;;  %vm4234_vm14 = vcmask 523270  }
  0xc7   : > { %v6501_v18 = vor.u32 %v8596_v0, %v6500_v12  ;;  %v656_v55 = vadd.f32 %v9839_v1, %v9779_v37  ;;  %v6417_v1 = vor.u32 %v8669_v43, %v6414_v44  ;;  %1238 = vst [vmem:[#allocation3 + $0xc] sm:$0xcc] %v1237_v11  ;;  %v6526_v11 = vld [vmem:[%s12664_s3 + $0x78] sm:$0xf0]  ;;  %vm4235_vm15 = vmor %vm4234_vm14, %vm1229_vm8  ;;  %vm4243_vm8 = vcmask 1043456  }
  0xc8   : > { %v9939_v58 = vpop.f32.mrf.mxu3  ;;  %2045 = vmatpush.bf16.msrb.mxu2 %v6557_v8  ;;  %v6485_v8 = vor.u32 %v8592_v61, %v6484_v60  ;;  %4236 = vst.msk [vmem:[#allocation4 + $0x8] sm:$0xcc] %vm4235_vm15, %v9070_v15  ;;  %vm12323_vm1 = vmor %vm4244_vm0, %vm4243_vm8 }
  0xc9   : > { %v828_v17 = vadd.f32 %v9939_v58, %v642_v9  ;;  %v8608_v58 = vld [vmem:[%s12664_s3 + $0xa4] sm:$0xf0]  ;;  %2030 = vmatpush.bf16.msrb.mxu1 %v6501_v18 }
  0xca   : > { %v6549_v3 = vor.u32 %v8608_v58, %v6548_v20  ;;  %v6476_v20 = vld [vmem:[%s12664_s3 + $0x10] sm:$0xf] }
  0xcc   : > { %v9885_v28 = vpop.f32.mrf.mxu2  ;;  %2046 = vmatpush.bf16.msrb.mxu2 %v6549_v3 }
  0xcd   : > { %v9887_v29 = vpop.f32.mrf.mxu0  ;;  %v827_v13 = vadd.f32 %v9885_v28, %v628_v57  ;;  %v8671_v28 = vld [vmem:[%s12664_s3 + $0x2a4] sm:$0xf]  ;;  %v6353_v57 = vor.u32 %v8653_v32, %v6350_v33  ;;  %2031 = vmatpush.bf16.msrb.mxu1 %v6493_v49  ;;  %v6468_v33 = vld [vmem:[%s12664_s3] sm:$0xf] }
  0xce   : > { %v9889_v30 = vpop.f32.mrf.mxu1  ;;  %v644_v40 = vadd.f32 %v9887_v29, %v9783_v39 }
  0xcf   : > { %1703 = vmatpush.bf16.msra.mxu3 %v6353_v57  ;;  %v1252_v57 = vld [vmem:[#allocation3 + $0x38] sm:$0x3] }
  0xd0   : > { %v10029_v51 = vpop.f32.mrf.mxu3  ;;  %2047 = vmatpush.bf16.msrb.mxu2 %v6541_v10  ;;  %v1253_v61 = vsel %vm1244_vm9, 0, %v1252_v57 }
  0xd1   : > { %v831_v56 = vadd.f32 %v10029_v51, %v644_v40  ;;  %v8667_v51 = vld [vmem:[%s12664_s3 + $0x284] sm:$0xf]  ;;  %2032 = vmatpush.bf16.msrb.mxu1 %v6485_v8  ;;  %v8588_v40 = vld [vmem:[%s12664_s3 + $0x4] sm:$0xf0]  ;;  %1254 = vst [vmem:[#allocation3 + $0x38] sm:$0x3] %v1253_v61 }
  0xd2   : > { %v8633_v8 = vld [vmem:[%s12664_s3 + $0x174] sm:$0xf] }
  0xd4   : > { %v9941_v59 = vpop.f32.mrf.mxu2 }
  0xd5   : > { %v9952_v2 = vpop.f32.mrf.mxu0  ;;  %v830_v6 = vadd.f32 %v9941_v59, %v630_v54  ;;  %v8604_v59 = vld [vmem:[%s12664_s3 + $0x84] sm:$0xf0] }
  0xd6   : > { %v9954_v4 = vpop.f32.mrf.mxu1  ;;  %v829_v9 = vadd.f32 %v9952_v2, %v656_v55  ;;  %v6533_v23 = vor.u32 %v8604_v59, %v6532_v36  ;;  %v8601_v36 = vld [vmem:[%s12664_s3 + $0x74] sm:$0xf]  ;;  %v6654_v59 = vld [vmem:[%s12664_s3 + $0x178] sm:$0xf0] }
  0xd7   : > { %v1023_v21 = vadd.f32 %v9954_v4, %v827_v13  ;;  %v6425_v4 = vor.u32 %v8671_v28, %v6422_v19  ;;  %v6345_v28 = vor.u32 %v8651_v62, %v6342_v27  ;;  %v6409_v19 = vor.u32 %v8667_v51, %v6406_v7  ;;  %v6652_v62 = vld [vmem:[%s12664_s3 + $0x170] sm:$0xf] }
  0xd8   : > { %2048 = vmatpush.bf16.msrb.mxu2 %v6533_v23  ;;  %v6518_v23 = vld [vmem:[%s12664_s3 + $0x68] sm:$0xf0] }
  0xd9   : > { %1716 = vmatpush.bf16.msrb.mxu0 %v6425_v4  ;;  %v658_v4 = vadd.f32 %v9889_v30, %v9835_v63  ;;  %1704 = vmatpush.bf16.msra.mxu3 %v6345_v28 }
  0xdb   : > { %v1018_v48 = vpop.f32.mrf.mxu3 }
  0xdc   : > { %v1004_v42 = vpop.f32.mrf.mxu2  ;;  %v1025_v2 = vadd.f32 %v1018_v48, %v829_v9 }
  0xdd   : > { %v10016_v45 = vpop.f32.mrf.mxu0  ;;  %v1024_v24 = vadd.f32 %v1004_v42, %v828_v17  ;;  %1717 = vmatpush.bf16.msrb.mxu0 %v6417_v1 }
  0xde   : > { %v10018_v46 = vpop.f32.mrf.mxu1  ;;  %v832_v30 = vadd.f32 %v10016_v45, %v658_v4  ;;  %v1317_v45 = vld [vmem:[#allocation3 + $0xc] sm:$0x88] }
  0xdf   : > { %v1026_v0 = vadd.f32 %v10018_v46, %v830_v6  ;;  %v1374_v53 = vunpack.c.l.b16 %v1317_v45  ;;  %v1375_v54 = vunpack.c.h.b16 %v1317_v45  ;;  %v8631_v4 = vld [vmem:[%s12664_s3 + $0x164] sm:$0xf] }
  0xe0   : > { %v8615_v45 = vld [vmem:[%s12664_s3 + $0xe4] sm:$0xf] }
  0xe1   : > { %1718 = vmatpush.bf16.msrb.mxu0 %v6409_v19 }
  0xe4   : > { %v1006_v25 = vpop.f32.mrf.mxu2 }
  0xe5   : > { %v1027_v14 = vadd.f32 %v1006_v25, %v831_v56  ;;  %v1249_v56 = vld [vmem:[#allocation3 + $0x30] sm:$0x33] }
  0xea   : > { %v1170_v41 = vpop.f32.mrf.mxu0 }
  0xeb   : > { %v1184_v42 = vpop.f32.mrf.mxu1  ;;  %v1203_v39 = vadd.f32 %v1170_v41, %v1023_v21  ;;  %v8590_v21 = vld [vmem:[%s12664_s3 + $0x14] sm:$0xf0]  ;;  %v1239_v41 = vld [vmem:[#allocation3 + $0x14] sm:$0xc] }
  0xec   : > { %v1204_v29 = vadd.f32 %v1184_v42, %v1024_v24  ;;  %v6477_v31 = vor.u32 %v8590_v21, %v6476_v20  ;;  %v1020_v42 = vpop.f32.mrf.mxu3  ;;  %v1240_v63 = vsel %vm10101_vm12, 0, %v1239_v41  ;;  %vm1248_vm12 = vmor %vm1247_vm11, %vm1244_vm9  ;;  %v6644_v20 = vld [vmem:[%s12664_s3 + $0x160] sm:$0xf]  ;;  %v6529_v21 = vor.u32 %v8601_v36, %v6526_v11  ;;  %v8627_v11 = vld [vmem:[%s12664_s3 + $0x144] sm:$0xf] }
  0xed   : > { %v1217_v38 = vadd.f32 %v1211_v35, %v1203_v39  ;;  %1241 = vst [vmem:[#allocation3 + $0x14] sm:$0xc] %v1240_v63  ;;  %v6469_v39 = vor.u32 %v8588_v40, %v6468_v33  ;;  %v1250_v1 = vsel %vm1248_vm12, 0, %v1249_v56 }
  0xee   : > { %v1218_v37 = vadd.f32 %v1212_v26, %v1204_v29  ;;  %2033 = vmatpush.bf16.msrb.mxu1 %v6477_v31  ;;  %v1028_v29 = vadd.f32 %v1020_v42, %v832_v30  ;;  %1251 = vst [vmem:[#allocation3 + $0x30] sm:$0x33] %v1250_v1  ;;  %v8617_v42 = vld [vmem:[%s12664_s3 + $0xf4] sm:$0xf]  ;;  %v6636_v30 = vld [vmem:[%s12664_s3 + $0x150] sm:$0xf] }
  0xef   : > { %v1223_v12 = vmax.f32 %v1217_v38, 0.0  ;;  %v8634_v38 = vld [vmem:[%s12664_s3 + $0x174] sm:$0xf0]  ;;  %v8628_v1 = vld [vmem:[%s12664_s3 + $0x144] sm:$0xf0] }
  0xf0   : > { %v1224_v13 = vmax.f32 %v1218_v37, 0.0 }
  0xf1   : > { %v1198_v18 = vpop.f32.mrf.mxu2 }
  0xf2   : > { %v1255_v17 = vpack.c.bf16 %v1224_v13, %v1223_v12  ;;  %v1205_v58 = vadd.f32 %v1198_v18, %v1025_v2  ;;  %v1172_v22 = vpop.f32.mrf.mxu0  ;;  %2034 = vmatpush.bf16.msrb.mxu1 %v6469_v39  ;;  %v10224_v2 = vld [vmem:[#allocation3 + $0xc] sm:$0xcc]  ;;  %v8597_v39 = vld [vmem:[%s12664_s3 + $0x54] sm:$0xf] }
  0xf3   : > { %v1186_v46 = vpop.f32.mrf.mxu1  ;;  %v1206_v24 = vadd.f32 %v1172_v22, %v1026_v0  ;;  %v6653_v0 = vor.u32 %v8634_v38, %v6652_v62  ;;  %v8632_v22 = vld [vmem:[%s12664_s3 + $0x164] sm:$0xf0] }
  0xf4   : > { %1259 = vst [vmem:[#allocation3 + $0x18] sm:$0xff] %v1255_v17  ;;  %v1207_v25 = vadd.f32 %v1186_v46, %v1027_v14  ;;  %v1219_v32 = vadd.f32 %v1213_v16, %v1205_v58  ;;  %v10190_v52 = vunpack.c.l.b16 %v1255_v17  ;;  %v10192_v55 = vunpack.c.h.b16 %v1255_v17  ;;  %v1318_v7 = vld [vmem:[#allocation3 + $0x14] sm:$0x8]  ;;  %v8599_v46 = vld [vmem:[%s12664_s3 + $0x64] sm:$0xf] }
  0xf5   : > { %v1220_v3 = vadd.f32 %v1211_v35, %v1206_v24  ;;  %v1376_v14 = vunpack.c.l.b16 %v1318_v7  ;;  %v6657_v58 = vor.u32 %v8633_v8, %v6654_v59  ;;  %v1728_v24 = vunpack.c.h.b16 %v10224_v2 }
  0xf6   : > { %v1221_v43 = vadd.f32 %v1212_v26, %v1207_v25  ;;  %v1225_v44 = vmax.f32 %v1219_v32, 0.0  ;;  %v10203_v51 = vpack.c.b16 %v10190_v52, %v1374_v53  ;;  %v10206_v9 = vpack.c.b16 %v10192_v55, %v1375_v54  ;;  %v6646_v32 = vld [vmem:[%s12664_s3 + $0x168] sm:$0xf0] }
  0xf7   : > { %v1226_v47 = vmax.f32 %v1220_v3, 0.0  ;;  %v6590_v3 = vld [vmem:[%s12664_s3 + $0xf8] sm:$0xf0]  ;;  %v6521_v63 = vor.u32 %v8599_v46, %v6518_v23  ;;  %v1727_v53 = vunpack.c.l.b16 %v10224_v2  ;;  %v8626_v46 = vld [vmem:[%s12664_s3 + $0x134] sm:$0xf0] }
  0xf8   : > { %v1227_v48 = vmax.f32 %v1221_v43, 0.0  ;;  %v1256_v49 = vpack.c.bf16 %v1225_v44, %v1225_v44  ;;  %v1389_v17 = vrot.slane %v10203_v51, 3  ;;  %v1392_v28 = vrot.slane %v10206_v9, 3  ;;  %v8630_v44 = vld [vmem:[%s12664_s3 + $0x154] sm:$0xf0] }
  0xf9   : > { %v1200_v5 = vpop.f32.mrf.mxu2  ;;  %v6645_v43 = vor.u32 %v8632_v22, %v6644_v20  ;;  %v6637_v38 = vor.u32 %v8630_v44, %v6636_v30  ;;  %v6620_v22 = vld [vmem:[%s12664_s3 + $0x130] sm:$0xf] }
  0xfa   : > { %v10187_v35 = vpack.c.bf16 %v1227_v48, %v1226_v47  ;;  %1260 = vst [vmem:[#allocation3 + $0x20] sm:$0xf] %v1256_v49  ;;  %v1208_v26 = vadd.f32 %v1200_v5, %v1028_v29  ;;  %v6649_v47 = vor.u32 %v8631_v4, %v6646_v32  ;;  %v6510_v29 = vld [vmem:[%s12664_s3 + $0x58] sm:$0xf0]  ;;  %v8629_v49 = vld [vmem:[%s12664_s3 + $0x154] sm:$0xf]  ;;  %v1731_v5 = vpack.c.b16 %v10192_v55, %v1728_v24 }
  0xfb   : > { %v6494_v24 = vld [vmem:[%s12664_s3 + $0x38] sm:$0xf0]  ;;  %v1264_v32 = vld [vmem:[#allocation3 + $0x14] sm:$0xc]  ;;  %v6621_v30 = vor.u32 %v8626_v46, %v6620_v22  ;;  %v6596_v22 = vld [vmem:[%s12664_s3 + $0x100] sm:$0xf] }
  0xfc   : > { %1261 = vst [vmem:[#allocation3 + $0x24] sm:$0xff] %v10187_v35  ;;  %v1222_v34 = vadd.f32 %v1213_v16, %v1208_v26  ;;  %v6593_v26 = vor.u32 %v8617_v42, %v6590_v3  ;;  %v10294_v54 = vunpack.c.l.b16 %v10187_v35  ;;  %v1751_v8 = vshrl.u32 %v1731_v5, 16  ;;  %v8625_v42 = vld [vmem:[%s12664_s3 + $0x134] sm:$0xf]  ;;  %v6622_v3 = vld [vmem:[%s12664_s3 + $0x138] sm:$0xf0] }
  0xfd   : > { %v1754_v59 = vshll.u32 %v1731_v5, 16  ;;  %v8620_v46 = vld [vmem:[%s12664_s3 + $0x104] sm:$0xf0] }
  0xfe   : > { %v1228_v50 = vmax.f32 %v1222_v34, 0.0  ;;  %v6638_v34 = vld [vmem:[%s12664_s3 + $0x158] sm:$0xf0] }
  0xff   : > { %v6641_v36 = vor.u32 %v8629_v49, %v6638_v34  ;;  %v1756_v23 = vrot.slane %v1754_v59, 3  ;;  %v8624_v49 = vld [vmem:[%s12664_s3 + $0x124] sm:$0xf0]  ;;  %v1729_v34 = vunpack.c.l.b16 %v1264_v32  ;;  %v6478_v59 = vld [vmem:[%s12664_s3 + $0x18] sm:$0xf0] }
 0x100   : > { %v1258_v60 = vpack.c.bf16 %v1228_v50, %v1228_v50  ;;  %v6582_v50 = vld [vmem:[%s12664_s3 + $0xe8] sm:$0xf0]  ;;  %v8619_v32 = vld [vmem:[%s12664_s3 + $0x104] sm:$0xf] }
 0x101   : > { %v1266_v10 = vld [vmem:[#allocation3 + $0x20] sm:$0xf]  ;;  %v6585_v2 = vor.u32 %v8615_v45, %v6582_v50  ;;  %v6625_v45 = vor.u32 %v8625_v42, %v6622_v3  ;;  %v8591_v50 = vld [vmem:[%s12664_s3 + $0x24] sm:$0xf]  ;;  %v8698_v3 = vld [vmem:[%s12664_s3 + $0x374] sm:$0xf0] }
 0x102   : > { %1262 = vst [vmem:[#allocation3 + $0x2c] sm:$0xf] %v1258_v60  ;;  %v10226_v16 = vunpack.c.l.b16 %v1266_v10  ;;  %v6628_v60 = vld [vmem:[%s12664_s3 + $0x140] sm:$0xf]  ;;  %v10313_v10 = vunpack.c.h.b16 %v10187_v35  ;;  %v1730_v35 = vpack.c.b16 %v10190_v52, %v1727_v53  ;;  %v6486_v53 = vld [vmem:[%s12664_s3 + $0x28] sm:$0xf0] }
 0x103   : > { %v1267_v37 = vld [vmem:[#allocation3 + $0x24] sm:$0x77]  ;;  %v6629_v20 = vor.u32 %v8628_v1, %v6628_v60  ;;  %v8623_v60 = vld [vmem:[%s12664_s3 + $0x124] sm:$0xf] }
 0x104   : > { %v1380_v27 = vunpack.c.l.b16 %v1267_v37  ;;  %v1381_v6 = vunpack.c.h.b16 %v1267_v37  ;;  %v10257_v41 = vpack.c.b16 %v10226_v16, %v1376_v14  ;;  %v6513_v37 = vor.u32 %v8597_v39, %v6510_v29  ;;  %v6574_v14 = vld [vmem:[%s12664_s3 + $0xd8] sm:$0xf0]  ;;  %v6612_v29 = vld [vmem:[%s12664_s3 + $0x120] sm:$0xf] }
 0x105   : > { %v6558_v1 = vld [vmem:[%s12664_s3 + $0xb8] sm:$0xf0] }
 0x106   : > { %v10214_v12 = vpack.c.b16 %v1380_v27, %v1380_v27  ;;  %v10216_v13 = vpack.c.b16 %v1381_v6, %v1381_v6  ;;  %v1395_v56 = vrot.slane %v10257_v41, 3  ;;  %v8595_v27 = vld [vmem:[%s12664_s3 + $0x44] sm:$0xf]  ;;  %v6502_v6 = vld [vmem:[%s12664_s3 + $0x48] sm:$0xf0] }
 0x108   : > { %v1390_v18 = vrot.slane %v10214_v12, 3  ;;  %v1393_v19 = vrot.slane %v10216_v13, 3  ;;  %v1759_v61 = vshrl.u32 %v10216_v13, 16  ;;  %v1762_v62 = vshll.u32 %v10216_v13, 16  ;;  %v6630_v13 = vld [vmem:[%s12664_s3 + $0x148] sm:$0xf0] }
 0x109   : > { %v1268_v33 = vld [vmem:[#allocation3 + $0x2c] sm:$0x7]  ;;  %v1745_v4 = vshll.u32 %v10214_v12, 16 }
 0x10a   : > { %v1391_v25 = vsel %vm515_vm3, %v1389_v17, %v1390_v18  ;;  %v10247_v31 = vsel %vm515_vm3, %v1392_v28, %v1393_v19  ;;  %v1382_v40 = vunpack.c.l.b16 %v1268_v33  ;;  %v1761_v17 = vrot.slane %v1759_v61, 2  ;;  %v6614_v61 = vld [vmem:[%s12664_s3 + $0x128] sm:$0xf0] }
 0x10b   : > { %1649 = vmatmul.bf16.vlgmr.msrb.gmra.mxu3 %v1391_v25  ;;  %1663 = vmatmul.bf16.vlgmr.msra.gmra.mxu0 %v10247_v31  ;;  %v1764_v18 = vrot.slane %v1762_v62, 3  ;;  %v10331_v28 = vpack.c.b16 %v10313_v10, %v10192_v55  ;;  %v10335_v19 = vpack.c.b16 %v10294_v54, %v10190_v52  ;;  %v8593_v55 = vld [vmem:[%s12664_s3 + $0x34] sm:$0xf]  ;;  %v1753_v52 = vrot.slane %v1751_v8, 2 }
 0x10c   : > { %1691 = vmatmul.bf16.vlgmr.msra.gmra.mxu2 %v1391_v25  ;;  %2055 = vmatpush.bf16.msrb.mxu3 %v6653_v0  ;;  %v10271_v48 = vpack.c.b16 %v1382_v40, %v1382_v40  ;;  %v8613_v0 = vld [vmem:[%s12664_s3 + $0xd4] sm:$0xf]  ;;  %v1742_v25 = vshrl.u32 %v10214_v12, 16  ;;  %v6497_v44 = vor.u32 %v8593_v55, %v6494_v24  ;;  %v8611_v12 = vld [vmem:[%s12664_s3 + $0xc4] sm:$0xf] }
 0x10d   : > { %2069 = vmatpush.bf16.msra.mxu0 %v6529_v21  ;;  %2097 = vmatpush.bf16.msra.mxu2 %v6657_v58  ;;  %v6505_v21 = vor.u32 %v8595_v27, %v6502_v6  ;;  %v6633_v58 = vor.u32 %v8627_v11, %v6630_v13  ;;  %v6577_v33 = vor.u32 %v8613_v0, %v6574_v14  ;;  %v8589_v8 = vld [vmem:[%s12664_s3 + $0x14] sm:$0xf]  ;;  %v6606_v14 = vld [vmem:[%s12664_s3 + $0x118] sm:$0xf0] }
 0x10e   : > { %v1396_v57 = vrot.slane %v10271_v48, 3  ;;  %v1765_v40 = vor.u32 %v1764_v18, %v1761_v17  ;;  %v1757_v39 = vor.u32 %v1756_v23, %v1753_v52  ;;  %v1744_v5 = vrot.slane %v1742_v25, 2  ;;  %v8607_v17 = vld [vmem:[%s12664_s3 + $0xa4] sm:$0xf]  ;;  %v6470_v23 = vld [vmem:[%s12664_s3 + $0x8] sm:$0xf0] }
 0x10f   : > { %v6489_v27 = vor.u32 %v8591_v50, %v6486_v53  ;;  %v1732_v11 = vpack.c.b16 %v10226_v16, %v1729_v34  ;;  %v6617_v13 = vor.u32 %v8623_v60, %v6614_v61  ;;  %v1776_v18 = vshrl.u32 %v10271_v48, 16  ;;  %v6756_v61 = vld [vmem:[%s12664_s3 + $0x360] sm:$0xf] }
 0x110   : > { %2056 = vmatpush.bf16.msrb.mxu3 %v6645_v43  ;;  %v1397_v7 = vsel %vm515_vm3, %v1395_v56, %v1396_v57  ;;  %v1734_v43 = vshrl.u32 %v1730_v35, 16  ;;  %v10377_v56 = vsel %vm1246_vm10, %v1757_v39, %v1765_v40  ;;  %v6481_v52 = vor.u32 %v8589_v8, %v6478_v59  ;;  %v6764_v40 = vld [vmem:[%s12664_s3 + $0x370] sm:$0xf]  ;;  %v8730_v8 = vld [vmem:[%s12664_s3 + $0x474] sm:$0xf0] }
 0x111   : > { %2070 = vmatpush.bf16.msra.mxu0 %v6521_v63  ;;  %2098 = vmatpush.bf16.msra.mxu2 %v6649_v47  ;;  %v1737_v63 = vshll.u32 %v1730_v35, 16  ;;  %v6566_v47 = vld [vmem:[%s12664_s3 + $0xc8] sm:$0xf0]  ;;  %v1768_v24 = vshrl.u32 %v1732_v11, 16  ;;  %v1771_v25 = vshll.u32 %v1732_v11, 16  ;;  %v6597_v39 = vor.u32 %v8620_v46, %v6596_v22 }
 0x112   : > { %1677 = vmatmul.bf16.vlgmr.msra.gmra.mxu1 %v1397_v7  ;;  %v6569_v57 = vor.u32 %v8611_v12, %v6566_v47  ;;  %v1736_v62 = vrot.slane %v1734_v43, 2  ;;  %v6828_v43 = vld [vmem:[%s12664_s3 + $0x3f0] sm:$0xf]  ;;  %v8697_v12 = vld [vmem:[%s12664_s3 + $0x374] sm:$0xf]  ;;  %v6765_v50 = vor.u32 %v8698_v3, %v6764_v40 }
 0x113   : > { %2083 = vmatpush.bf16.msra.mxu1 %v6593_v26  ;;  %v1747_v26 = vrot.slane %v1745_v4, 3  ;;  %v6766_v47 = vld [vmem:[%s12664_s3 + $0x378] sm:$0xf0]  ;;  %v1773_v34 = vrot.slane %v1771_v25, 3  ;;  %v8692_v25 = vld [vmem:[%s12664_s3 + $0x344] sm:$0xf0] }
 0x114   : > { %2057 = vmatpush.bf16.msrb.mxu3 %v6637_v38  ;;  %v1739_v38 = vrot.slane %v1737_v63, 3  ;;  %v1778_v63 = vrot.slane %v1776_v18, 2  ;;  %v6742_v40 = vld [vmem:[%s12664_s3 + $0x348] sm:$0xf0] }
 0x115   : > { %2071 = vmatpush.bf16.msra.mxu0 %v6513_v37  ;;  %2099 = vmatpush.bf16.msra.mxu2 %v6641_v36  ;;  %v6613_v37 = vor.u32 %v8624_v49, %v6612_v29  ;;  %v1748_v6 = vor.u32 %v1747_v26, %v1744_v5  ;;  %v6604_v36 = vld [vmem:[%s12664_s3 + $0x110] sm:$0xf]  ;;  %v8605_v49 = vld [vmem:[%s12664_s3 + $0x94] sm:$0xf]  ;;  %v6542_v5 = vld [vmem:[%s12664_s3 + $0x98] sm:$0xf0] }
 0x116   : > { %v1740_v35 = vor.u32 %v1739_v38, %v1736_v62  ;;  %v1770_v26 = vrot.slane %v1768_v24, 2  ;;  %v8696_v62 = vld [vmem:[%s12664_s3 + $0x364] sm:$0xf0]  ;;  %v6820_v38 = vld [vmem:[%s12664_s3 + $0x3e0] sm:$0xf] }
 0x117   : > { %2084 = vmatpush.bf16.msra.mxu1 %v6585_v2  ;;  %v8621_v2 = vld [vmem:[%s12664_s3 + $0x114] sm:$0xf]  ;;  %v6757_v11 = vor.u32 %v8696_v62, %v6756_v61  ;;  %v6788_v61 = vld [vmem:[%s12664_s3 + $0x3a0] sm:$0xf]  ;;  %v8704_v62 = vld [vmem:[%s12664_s3 + $0x3a4] sm:$0xf0] }
 0x118   : > { %2058 = vmatpush.bf16.msrb.mxu3 %v6629_v20  ;;  %v1779_v20 = vshll.u32 %v10271_v48, 16  ;;  %v10426_v55 = vsel %vm1246_vm10, %v1740_v35, %v1748_v6  ;;  %v8587_v48 = vld [vmem:[%s12664_s3 + $0x4] sm:$0xf]  ;;  %v6609_v4 = vor.u32 %v8621_v2, %v6606_v14  ;;  %v1774_v6 = vor.u32 %v1773_v34, %v1770_v26  ;;  %v8694_v14 = vld [vmem:[%s12664_s3 + $0x354] sm:$0xf0] }
 0x119   : > { %2072 = vmatpush.bf16.msra.mxu0 %v6505_v21  ;;  %2100 = vmatpush.bf16.msra.mxu2 %v6633_v58  ;;  %v6550_v58 = vld [vmem:[%s12664_s3 + $0xa8] sm:$0xf0]  ;;  %v6473_v29 = vor.u32 %v8587_v48, %v6470_v23  ;;  %v8728_v48 = vld [vmem:[%s12664_s3 + $0x464] sm:$0xf0] }
 0x11a   : > { %v6553_v42 = vor.u32 %v8607_v17, %v6550_v58  ;;  %v6812_v17 = vld [vmem:[%s12664_s3 + $0x3d0] sm:$0xf]  ;;  %v6750_v58 = vld [vmem:[%s12664_s3 + $0x358] sm:$0xf0] }
 0x11b   : > { %2085 = vmatpush.bf16.msra.mxu1 %v6577_v33  ;;  %1705 = vmatmul.bf16.vlgmr.msra.gmra.mxu3 %v10247_v31  ;;  %v8609_v31 = vld [vmem:[%s12664_s3 + $0xb4] sm:$0xf]  ;;  %v6598_v33 = vld [vmem:[%s12664_s3 + $0x108] sm:$0xf0] }
 0x11c   : > { %1719 = vmatmul.bf16.vlgmr.msrb.gmra.mxu0 %v1397_v7  ;;  %2049 = vmatmul.bf16.vlgmr.msrb.gmra.mxu2 %v10377_v56  ;;  %v8622_v7 = vld [vmem:[%s12664_s3 + $0x114] sm:$0xf0]  ;;  %v6561_v0 = vor.u32 %v8609_v31, %v6558_v1  ;;  %v8712_v31 = vld [vmem:[%s12664_s3 + $0x3e4] sm:$0xf0]  ;;  %v8695_v1 = vld [vmem:[%s12664_s3 + $0x364] sm:$0xf] }
 0x11d   : > { %2059 = vmatpush.bf16.msrb.mxu3 %v6621_v30  ;;  %2073 = vmatpush.bf16.msra.mxu0 %v6497_v44  ;;  %v6605_v21 = vor.u32 %v8622_v7, %v6604_v36  ;;  %v1781_v30 = vrot.slane %v1779_v20, 3  ;;  %v8714_v44 = vld [vmem:[%s12664_s3 + $0x3f4] sm:$0xf0]  ;;  %v8603_v36 = vld [vmem:[%s12664_s3 + $0x84] sm:$0xf]  ;;  %v6821_v2 = vor.u32 %v8712_v31, %v6820_v38 }
 0x11e   : > { %2101 = vmatpush.bf16.msra.mxu2 %v6625_v45  ;;  %v6601_v45 = vor.u32 %v8619_v32, %v6598_v33  ;;  %v6829_v53 = vor.u32 %v8714_v44, %v6828_v43  ;;  %v6534_v7 = vld [vmem:[%s12664_s3 + $0x88] sm:$0xf0]  ;;  %v8710_v20 = vld [vmem:[%s12664_s3 + $0x3d4] sm:$0xf0]  ;;  %v8708_v32 = vld [vmem:[%s12664_s3 + $0x3c4] sm:$0xf0] }
 0x11f   : > { %2086 = vmatpush.bf16.msra.mxu1 %v6569_v57  ;;  %v6769_v57 = vor.u32 %v8697_v12, %v6766_v47  ;;  %v1782_v60 = vor.u32 %v1781_v30, %v1778_v63  ;;  %v6537_v18 = vor.u32 %v8603_v36, %v6534_v7  ;;  %v6813_v23 = vor.u32 %v8710_v20, %v6812_v17  ;;  %v8691_v33 = vld [vmem:[%s12664_s3 + $0x344] sm:$0xf]  ;;  %v6876_v43 = vld [vmem:[%s12664_s3 + $0x450] sm:$0xf]  ;;  %v8726_v63 = vld [vmem:[%s12664_s3 + $0x454] sm:$0xf0] }
 0x120   : > { %v6745_v44 = vor.u32 %v8691_v33, %v6742_v40  ;;  %v6732_v12 = vld [vmem:[%s12664_s3 + $0x330] sm:$0xf]  ;;  %v8690_v47 = vld [vmem:[%s12664_s3 + $0x334] sm:$0xf0]  ;;  %v6877_v26 = vor.u32 %v8726_v63, %v6876_v43  ;;  %v8687_v38 = vld [vmem:[%s12664_s3 + $0x324] sm:$0xf]  ;;  %v2167_v7 = vpack.c.b16 %v10294_v54, %v10294_v54  ;;  %v6789_v54 = vor.u32 %v8704_v62, %v6788_v61 }
 0x121   : > { %2060 = vmatpush.bf16.msrb.mxu3 %v6613_v37  ;;  %2074 = vmatpush.bf16.msra.mxu0 %v6489_v27  ;;  %v6545_v37 = vor.u32 %v8605_v49, %v6542_v5  ;;  %v6758_v27 = vld [vmem:[%s12664_s3 + $0x368] sm:$0xf0]  ;;  %v1783_v59 = vsel %vm1246_vm10, %v1774_v6, %v1782_v60  ;;  %v8689_v49 = vld [vmem:[%s12664_s3 + $0x334] sm:$0xf]  ;;  %v6734_v5 = vld [vmem:[%s12664_s3 + $0x338] sm:$0xf0]  ;;  %v6733_v34 = vor.u32 %v8690_v47, %v6732_v12 }
 0x122   : > { %2102 = vmatpush.bf16.msra.mxu2 %v6617_v13  ;;  %2035 = vmatmul.bf16.vlgmr.msrb.gmra.mxu1 %v10426_v55  ;;  %v6892_v13 = vld [vmem:[%s12664_s3 + $0x470] sm:$0xf]  ;;  %v6761_v35 = vor.u32 %v8695_v1, %v6758_v27  ;;  %v8688_v60 = vld [vmem:[%s12664_s3 + $0x324] sm:$0xf0]  ;;  %v2112_v31 = vld [vmem:[#allocation3 + $0x2c] sm:$0xf] }
 0x123   : > { %2087 = vmatpush.bf16.msra.mxu1 %v6561_v0  ;;  %v6748_v0 = vld [vmem:[%s12664_s3 + $0x350] sm:$0xf]  ;;  %v6893_v22 = vor.u32 %v8730_v8, %v6892_v13  ;;  %v8722_v6 = vld [vmem:[%s12664_s3 + $0x434] sm:$0xf0]  ;;  %v10619_v17 = vunpack.c.l.b16 %v2112_v31  ;;  %v8720_v20 = vld [vmem:[%s12664_s3 + $0x424] sm:$0xf0] }
 0x124   : > { %v6749_v46 = vor.u32 %v8694_v14, %v6748_v0  ;;  %v6860_v27 = vld [vmem:[%s12664_s3 + $0x430] sm:$0xf]  ;;  %v8686_v8 = vld [vmem:[%s12664_s3 + $0x314] sm:$0xf0]  ;;  %v6718_v0 = vld [vmem:[%s12664_s3 + $0x318] sm:$0xf0] }
 0x125   : > { %2061 = vmatpush.bf16.msrb.mxu3 %v6605_v21  ;;  %2075 = vmatpush.bf16.msra.mxu0 %v6481_v52  ;;  %v8693_v21 = vld [vmem:[%s12664_s3 + $0x354] sm:$0xf]  ;;  %v6884_v52 = vld [vmem:[%s12664_s3 + $0x460] sm:$0xf]  ;;  %v6716_v36 = vld [vmem:[%s12664_s3 + $0x310] sm:$0xf]  ;;  %v2169_v12 = vpack.c.b16 %v10619_v17, %v10619_v17 }
 0x126   : > { %2103 = vmatpush.bf16.msra.mxu2 %v6609_v4  ;;  %v6753_v24 = vor.u32 %v8693_v21, %v6750_v58  ;;  %v6804_v4 = vld [vmem:[%s12664_s3 + $0x3c0] sm:$0xf]  ;;  %v10632_v58 = vld [vmem:[%s12664_s3 + $0x304] sm:$0xf0]  ;;  %v2171_v33 = vshrl.u32 %v10203_v51, 16  ;;  %v2174_v40 = vshll.u32 %v10203_v51, 16 }
 0x127   : > { %2088 = vmatpush.bf16.msra.mxu1 %v6553_v42  ;;  %v6885_v42 = vor.u32 %v8728_v48, %v6884_v52  ;;  %v6805_v30 = vor.u32 %v8708_v32, %v6804_v4  ;;  %v6852_v14 = vld [vmem:[%s12664_s3 + $0x420] sm:$0xf]  ;;  %v2179_v52 = vshrl.u32 %v2167_v7, 16  ;;  %v2182_v48 = vshll.u32 %v2167_v7, 16  ;;  %v8683_v4 = vld [vmem:[%s12664_s3 + $0x304] sm:$0xf] }
 0x128   : > { %v10627_v21 = vld [vmem:[%s12664_s3 + $0x300] sm:$0xf]  ;;  %v6710_v32 = vld [vmem:[%s12664_s3 + $0x308] sm:$0xf0]  ;;  %v6830_v43 = vld [vmem:[%s12664_s3 + $0x3f8] sm:$0xf0]  ;;  %v6853_v47 = vor.u32 %v8720_v20, %v6852_v14 }
 0x129   : > { %2062 = vmatpush.bf16.msrb.mxu3 %v6597_v39  ;;  %2076 = vmatpush.bf16.msra.mxu0 %v6473_v29  ;;  %v6796_v39 = vld [vmem:[%s12664_s3 + $0x3b0] sm:$0xf]  ;;  %v8706_v29 = vld [vmem:[%s12664_s3 + $0x3b4] sm:$0xf0]  ;;  %v8729_v63 = vld [vmem:[%s12664_s3 + $0x474] sm:$0xf] }
 0x12a   : > { %2104 = vmatpush.bf16.msra.mxu2 %v6601_v45  ;;  %v8724_v45 = vld [vmem:[%s12664_s3 + $0x444] sm:$0xf0]  ;;  %v2188_v51 = vshrl.u32 %v10206_v9, 16  ;;  %v8711_v61 = vld [vmem:[%s12664_s3 + $0x3e4] sm:$0xf]  ;;  %v2208_v14 = vshll.u32 %v10257_v41, 16 }
 0x12b   : > { %2089 = vmatpush.bf16.msra.mxu1 %v6545_v37  ;;  %v6726_v37 = vld [vmem:[%s12664_s3 + $0x328] sm:$0xf0]  ;;  %v8727_v31 = vld [vmem:[%s12664_s3 + $0x464] sm:$0xf] }
 0x12c   : > { %2063 = vmatmul.bf16.vlgmr.msrb.gmra.mxu3 %v1783_v59  ;;  %2077 = vmatmul.bf16.vlgmr.msra.gmra.mxu0 %v10426_v55  ;;  %v6740_v55 = vld [vmem:[%s12664_s3 + $0x340] sm:$0xf]  ;;  %v6822_v62 = vld [vmem:[%s12664_s3 + $0x3e8] sm:$0xf0] }
 0x12d   : > { %2464 = vmatpush.bf16.msra.mxu3 %v6765_v50  ;;  %2478 = vmatpush.bf16.msrb.mxu0 %v6829_v53  ;;  %v6741_v3 = vor.u32 %v8692_v25, %v6740_v55  ;;  %v6724_v50 = vld [vmem:[%s12664_s3 + $0x320] sm:$0xf]  ;;  %v6797_v53 = vor.u32 %v8706_v29, %v6796_v39  ;;  %v6717_v55 = vor.u32 %v8686_v8, %v6716_v36  ;;  %v7068_v29 = vld [vmem:[%s12664_s3 + $0x570] sm:$0xf] }
 0x12e   : > { %2506 = vmatpush.bf16.msrb.mxu2 %v6769_v57  ;;  %v6737_v57 = vor.u32 %v8689_v49, %v6734_v5  ;;  %v6725_v13 = vor.u32 %v8688_v60, %v6724_v50  ;;  %v6709_v39 = vor.u32 %v10632_v58, %v10627_v21  ;;  %v8762_v49 = vld [vmem:[%s12664_s3 + $0x574] sm:$0xf0]  ;;  %v6844_v5 = vld [vmem:[%s12664_s3 + $0x410] sm:$0xf]  ;;  %v2176_v60 = vrot.slane %v2174_v40, 4 }
 0x12f   : > { %2105 = vmatmul.bf16.vlgmr.msra.gmra.mxu2 %v1783_v59  ;;  %2090 = vmatpush.bf16.msra.mxu1 %v6537_v18  ;;  %v6780_v59 = vld [vmem:[%s12664_s3 + $0x390] sm:$0xf]  ;;  %v6861_v18 = vor.u32 %v8722_v6, %v6860_v27  ;;  %v2216_v27 = vshll.u32 %v2169_v12, 16  ;;  %v7069_v7 = vor.u32 %v8762_v49, %v7068_v29  ;;  %v7060_v8 = vld [vmem:[%s12664_s3 + $0x560] sm:$0xf] }
 0x130   : > { %v7004_v58 = vld [vmem:[%s12664_s3 + $0x4f0] sm:$0xf]  ;;  %v8725_v40 = vld [vmem:[%s12664_s3 + $0x454] sm:$0xf]  ;;  %v8707_v49 = vld [vmem:[%s12664_s3 + $0x3c4] sm:$0xf] }
 0x131   : > { %2465 = vmatpush.bf16.msra.mxu3 %v6757_v11  ;;  %2479 = vmatpush.bf16.msrb.mxu0 %v6821_v2  ;;  %v2168_v11 = vpack.c.b16 %v10313_v10, %v10313_v10  ;;  %v8702_v2 = vld [vmem:[%s12664_s3 + $0x394] sm:$0xf0]  ;;  %v8685_v10 = vld [vmem:[%s12664_s3 + $0x314] sm:$0xf] }
 0x132   : > { %2507 = vmatpush.bf16.msrb.mxu2 %v6761_v35  ;;  %2091 = vmatmul.bf16.vlgmr.msra.gmra.mxu1 %v10377_v56  ;;  %v6868_v56 = vld [vmem:[%s12664_s3 + $0x440] sm:$0xf]  ;;  %v6729_v35 = vor.u32 %v8687_v38, %v6726_v37  ;;  %v6781_v25 = vor.u32 %v8702_v2, %v6780_v59  ;;  %v2190_v38 = vrot.slane %v2188_v51, 3  ;;  %v8760_v59 = vld [vmem:[%s12664_s3 + $0x564] sm:$0xf0] }
 0x133   : > { %2492 = vmatpush.bf16.msrb.mxu1 %v6893_v22  ;;  %v6869_v1 = vor.u32 %v8724_v45, %v6868_v56  ;;  %v10637_v22 = vld [vmem:[%s12664_s3 + $0x380] sm:$0xf] }
 0x134   : > { %v6996_v51 = vld [vmem:[%s12664_s3 + $0x4e0] sm:$0xf] }
 0x135   : > { %2466 = vmatpush.bf16.msra.mxu3 %v6749_v46  ;;  %2480 = vmatpush.bf16.msrb.mxu0 %v6813_v23  ;;  %v10642_v46 = vld [vmem:[%s12664_s3 + $0x384] sm:$0xf0]  ;;  %v2196_v23 = vshrl.u32 %v2168_v11, 16 }
 0x136   : > { %2508 = vmatpush.bf16.msrb.mxu2 %v6753_v24  ;;  %v2199_v24 = vshll.u32 %v2168_v11, 16  ;;  %v6773_v50 = vor.u32 %v10642_v46, %v10637_v22  ;;  %v8746_v22 = vld [vmem:[%s12664_s3 + $0x4f4] sm:$0xf0] }
 0x137   : > { %2493 = vmatpush.bf16.msrb.mxu1 %v6885_v42  ;;  %v6721_v42 = vor.u32 %v8685_v10, %v6718_v0  ;;  %v2198_v56 = vrot.slane %v2196_v23, 3  ;;  %v8716_v10 = vld [vmem:[%s12664_s3 + $0x404] sm:$0xf0]  ;;  %v2205_v0 = vshrl.u32 %v10257_v41, 16  ;;  %v7061_v41 = vor.u32 %v8760_v59, %v7060_v8 }
 0x138   : > { %v2201_v45 = vrot.slane %v2199_v24, 4  ;;  %v8709_v24 = vld [vmem:[%s12664_s3 + $0x3d4] sm:$0xf] }
 0x139   : > { %2467 = vmatpush.bf16.msra.mxu3 %v6741_v3  ;;  %2481 = vmatpush.bf16.msrb.mxu0 %v6805_v30  ;;  %v8713_v3 = vld [vmem:[%s12664_s3 + $0x3f4] sm:$0xf]  ;;  %v6894_v30 = vld [vmem:[%s12664_s3 + $0x478] sm:$0xf0] }
 0x13a   : > { %2509 = vmatpush.bf16.msrb.mxu2 %v6745_v44  ;;  %v2191_v44 = vshll.u32 %v10206_v9, 16  ;;  %v8718_v9 = vld [vmem:[%s12664_s3 + $0x414] sm:$0xf0]  ;;  %v6833_v6 = vor.u32 %v8713_v3, %v6830_v43  ;;  %v6897_v36 = vor.u32 %v8729_v63, %v6894_v30  ;;  %v6878_v3 = vld [vmem:[%s12664_s3 + $0x458] sm:$0xf0] }
 0x13b   : > { %2494 = vmatpush.bf16.msrb.mxu1 %v6877_v26  ;;  %v2181_v26 = vrot.slane %v2179_v52, 3  ;;  %v6845_v11 = vor.u32 %v8718_v9, %v6844_v5  ;;  %v2218_v52 = vrot.slane %v2216_v27, 4  ;;  %v7052_v43 = vld [vmem:[%s12664_s3 + $0x550] sm:$0xf]  ;;  %v8758_v63 = vld [vmem:[%s12664_s3 + $0x554] sm:$0xf0] }
 0x13c   : > { %v2193_v37 = vrot.slane %v2191_v44, 4  ;;  %v8744_v44 = vld [vmem:[%s12664_s3 + $0x4e4] sm:$0xf0]  ;;  %v7053_v29 = vor.u32 %v8758_v63, %v7052_v43  ;;  %v6806_v5 = vld [vmem:[%s12664_s3 + $0x3c8] sm:$0xf0] }
 0x13d   : > { %2468 = vmatpush.bf16.msra.mxu3 %v6733_v34  ;;  %2482 = vmatpush.bf16.msrb.mxu0 %v6797_v53  ;;  %v2184_v34 = vrot.slane %v2182_v48, 4  ;;  %v6713_v53 = vor.u32 %v8683_v4, %v6710_v32  ;;  %v2207_v4 = vrot.slane %v2205_v0, 3  ;;  %v2210_v32 = vrot.slane %v2208_v14, 4  ;;  %v8723_v9 = vld [vmem:[%s12664_s3 + $0x444] sm:$0xf] }
 0x13e   : > { %2510 = vmatpush.bf16.msrb.mxu2 %v6737_v57  ;;  %v2173_v57 = vrot.slane %v2171_v33, 3  ;;  %v2194_v21 = vor.u32 %v2193_v37, %v2190_v38  ;;  %v6814_v33 = vld [vmem:[%s12664_s3 + $0x3d8] sm:$0xf0]  ;;  %v8705_v38 = vld [vmem:[%s12664_s3 + $0x3b4] sm:$0xf] }
 0x13f   : > { %2495 = vmatpush.bf16.msrb.mxu1 %v6869_v1  ;;  %v2213_v1 = vshrl.u32 %v2169_v12, 16  ;;  %v2185_v2 = vor.u32 %v2184_v34, %v2181_v26  ;;  %v6817_v12 = vor.u32 %v8709_v24, %v6814_v33  ;;  %v6997_v26 = vor.u32 %v8744_v44, %v6996_v51  ;;  %v6870_v34 = vld [vmem:[%s12664_s3 + $0x448] sm:$0xf0]  ;;  %v6798_v37 = vld [vmem:[%s12664_s3 + $0x3b8] sm:$0xf0] }
 0x140   : > { %v2177_v20 = vor.u32 %v2176_v60, %v2173_v57  ;;  %v8742_v57 = vld [vmem:[%s12664_s3 + $0x4d4] sm:$0xf0]  ;;  %v6809_v60 = vor.u32 %v8707_v49, %v6806_v5  ;;  %v6862_v27 = vld [vmem:[%s12664_s3 + $0x438] sm:$0xf0]  ;;  %v6854_v0 = vld [vmem:[%s12664_s3 + $0x428] sm:$0xf0] }
 0x141   : > { %2469 = vmatpush.bf16.msra.mxu3 %v6725_v13  ;;  %2483 = vmatpush.bf16.msrb.mxu0 %v6789_v54  ;;  %v6886_v13 = vld [vmem:[%s12664_s3 + $0x468] sm:$0xf0]  ;;  %v2202_v54 = vor.u32 %v2201_v45, %v2198_v56  ;;  %v2215_v46 = vrot.slane %v2213_v1, 3  ;;  %v7044_v56 = vld [vmem:[%s12664_s3 + $0x540] sm:$0xf] }
 0x142   : > { %2511 = vmatpush.bf16.msrb.mxu2 %v6729_v35  ;;  %v6836_v35 = vld [vmem:[%s12664_s3 + $0x400] sm:$0xf]  ;;  %v6889_v48 = vor.u32 %v8727_v31, %v6886_v13  ;;  %v8756_v45 = vld [vmem:[%s12664_s3 + $0x544] sm:$0xf0]  ;;  %v8721_v31 = vld [vmem:[%s12664_s3 + $0x434] sm:$0xf]  ;;  %v6801_v13 = vor.u32 %v8705_v38, %v6798_v37 }
 0x143   : > { %2496 = vmatpush.bf16.msrb.mxu1 %v6861_v18  ;;  %v6825_v18 = vor.u32 %v8711_v61, %v6822_v62  ;;  %v6837_v23 = vor.u32 %v8716_v10, %v6836_v35  ;;  %v2219_v30 = vor.u32 %v2218_v52, %v2215_v46  ;;  %v6873_v61 = vor.u32 %v8723_v9, %v6870_v34  ;;  %v8719_v35 = vld [vmem:[%s12664_s3 + $0x424] sm:$0xf]  ;;  %v7028_v14 = vld [vmem:[%s12664_s3 + $0x520] sm:$0xf]  ;;  %v8701_v52 = vld [vmem:[%s12664_s3 + $0x394] sm:$0xf] }
 0x144   : > { %v7045_v62 = vor.u32 %v8756_v45, %v7044_v56  ;;  %v6865_v8 = vor.u32 %v8721_v31, %v6862_v27  ;;  %v6846_v24 = vld [vmem:[%s12664_s3 + $0x418] sm:$0xf0]  ;;  %v8736_v33 = vld [vmem:[%s12664_s3 + $0x4a4] sm:$0xf0]  ;;  %v6838_v51 = vld [vmem:[%s12664_s3 + $0x408] sm:$0xf0] }
 0x145   : > { %2470 = vmatpush.bf16.msra.mxu3 %v6717_v55  ;;  %2484 = vmatpush.bf16.msrb.mxu0 %v6781_v25  ;;  %v2186_v55 = vsel %vm352_vm4, %v2177_v20, %v2185_v2  ;;  %v10721_v25 = vsel %vm352_vm4, %v2194_v21, %v2202_v54  ;;  %v8703_v2 = vld [vmem:[%s12664_s3 + $0x3a4] sm:$0xf]  ;;  %v6790_v54 = vld [vmem:[%s12664_s3 + $0x3a8] sm:$0xf0]  ;;  %v6972_v20 = vld [vmem:[%s12664_s3 + $0x4b0] sm:$0xf] }
 0x146   : > { %2512 = vmatpush.bf16.msrb.mxu2 %v6721_v42  ;;  %v7005_v42 = vor.u32 %v8746_v22, %v7004_v58  ;;  %v8738_v21 = vld [vmem:[%s12664_s3 + $0x4b4] sm:$0xf0]  ;;  %v6793_v58 = vor.u32 %v8703_v2, %v6790_v54  ;;  %v6857_v22 = vor.u32 %v8719_v35, %v6854_v0  ;;  %v7012_v44 = vld [vmem:[%s12664_s3 + $0x500] sm:$0xf]  ;;  %v8745_v49 = vld [vmem:[%s12664_s3 + $0x4f4] sm:$0xf] }
 0x147   : > { %2497 = vmatpush.bf16.msrb.mxu1 %v6853_v47  ;;  %v2211_v47 = vor.u32 %v2210_v32, %v2207_v4  ;;  %v8750_v4 = vld [vmem:[%s12664_s3 + $0x514] sm:$0xf0]  ;;  %v6964_v32 = vld [vmem:[%s12664_s3 + $0x4a0] sm:$0xf]  ;;  %v7006_v5 = vld [vmem:[%s12664_s3 + $0x4f8] sm:$0xf0] }
 0x148   : > { %v8777_v9 = vld [vmem:[%s12664_s3 + $0x5f4] sm:$0xf]  ;;  %v7134_v34 = vld [vmem:[%s12664_s3 + $0x5f8] sm:$0xf0]  ;;  %v6956_v56 = vld [vmem:[%s12664_s3 + $0x490] sm:$0xf] }
 0x149   : > { %2471 = vmatpush.bf16.msra.mxu3 %v6709_v39  ;;  %2485 = vmatpush.bf16.msrb.mxu0 %v6773_v50  ;;  %v6881_v39 = vor.u32 %v8725_v40, %v6878_v3  ;;  %v10764_v50 = vsel %vm352_vm4, %v2211_v47, %v2219_v30  ;;  %v6774_v3 = vld [vmem:[%s12664_s3 + $0x388] sm:$0xf0]  ;;  %v8715_v30 = vld [vmem:[%s12664_s3 + $0x404] sm:$0xf]  ;;  %v8748_v47 = vld [vmem:[%s12664_s3 + $0x504] sm:$0xf0]  ;;  %v7137_v37 = vor.u32 %v8777_v9, %v7134_v34 }
 0x14a   : > { %2513 = vmatpush.bf16.msrb.mxu2 %v6713_v53  ;;  %v6988_v53 = vld [vmem:[%s12664_s3 + $0x4d0] sm:$0xf]  ;;  %v8734_v45 = vld [vmem:[%s12664_s3 + $0x494] sm:$0xf0]  ;;  %v8776_v38 = vld [vmem:[%s12664_s3 + $0x5e4] sm:$0xf0] }
 0x14b   : > { %2498 = vmatpush.bf16.msrb.mxu1 %v6845_v11  ;;  %v6989_v1 = vor.u32 %v8742_v57, %v6988_v53  ;;  %v8740_v11 = vld [vmem:[%s12664_s3 + $0x4c4] sm:$0xf0]  ;;  %v6841_v53 = vor.u32 %v8715_v30, %v6838_v51  ;;  %v7013_v57 = vor.u32 %v8748_v47, %v7012_v44  ;;  %v6957_v31 = vor.u32 %v8734_v45, %v6956_v56  ;;  %v6998_v27 = vld [vmem:[%s12664_s3 + $0x4e8] sm:$0xf0]  ;;  %v8774_v0 = vld [vmem:[%s12664_s3 + $0x5d4] sm:$0xf0] }
 0x14c   : > { %2472 = vmatmul.bf16.vlgmr.msra.gmra.mxu3 %v2186_v55  ;;  %2486 = vmatmul.bf16.vlgmr.msrb.gmra.mxu0 %v10721_v25  ;;  %v8770_v30 = vld [vmem:[%s12664_s3 + $0x5b4] sm:$0xf0]  ;;  %v8737_v51 = vld [vmem:[%s12664_s3 + $0x4b4] sm:$0xf]  ;;  %v7092_v34 = vld [vmem:[%s12664_s3 + $0x5a0] sm:$0xf] }
 0x14d   : > { %2520 = vmatpush.bf16.msrb.mxu3 %v6833_v6  ;;  %2534 = vmatpush.bf16.msra.mxu0 %v6897_v36  ;;  %v7036_v6 = vld [vmem:[%s12664_s3 + $0x530] sm:$0xf]  ;;  %v8754_v36 = vld [vmem:[%s12664_s3 + $0x534] sm:$0xf0]  ;;  %v8769_v47 = vld [vmem:[%s12664_s3 + $0x5b4] sm:$0xf] }
 0x14e   : > { %2861 = vmatpush.bf16.msra.mxu2 %v7069_v7  ;;  %v6980_v7 = vld [vmem:[%s12664_s3 + $0x4c0] sm:$0xf]  ;;  %v7037_v59 = vor.u32 %v8754_v36, %v7036_v6  ;;  %v8775_v6 = vld [vmem:[%s12664_s3 + $0x5e4] sm:$0xf]  ;;  %v7126_v36 = vld [vmem:[%s12664_s3 + $0x5e8] sm:$0xf0] }
 0x14f   : > { %2514 = vmatmul.bf16.vlgmr.msrb.gmra.mxu2 %v2186_v55  ;;  %2499 = vmatpush.bf16.msrb.mxu1 %v6837_v23  ;;  %v6981_v10 = vor.u32 %v8740_v11, %v6980_v7  ;;  %v6973_v23 = vor.u32 %v8738_v21, %v6972_v20  ;;  %v7020_v55 = vld [vmem:[%s12664_s3 + $0x510] sm:$0xf]  ;;  %v6948_v7 = vld [vmem:[%s12664_s3 + $0x480] sm:$0xf]  ;;  %v8732_v11 = vld [vmem:[%s12664_s3 + $0x484] sm:$0xf0]  ;;  %v7129_v54 = vor.u32 %v8775_v6, %v7126_v36 }
 0x150   : > { %v7021_v63 = vor.u32 %v8750_v4, %v7020_v55  ;;  %v6949_v35 = vor.u32 %v8732_v11, %v6948_v7  ;;  %v6990_v20 = vld [vmem:[%s12664_s3 + $0x4d8] sm:$0xf0]  ;;  %v8773_v21 = vld [vmem:[%s12664_s3 + $0x5d4] sm:$0xf]  ;;  %v6982_v55 = vld [vmem:[%s12664_s3 + $0x4c8] sm:$0xf0] }
 0x151   : > { %2521 = vmatpush.bf16.msrb.mxu3 %v6825_v18  ;;  %2535 = vmatpush.bf16.msra.mxu0 %v6889_v48  ;;  %v8752_v18 = vld [vmem:[%s12664_s3 + $0x524] sm:$0xf0]  ;;  %v6782_v48 = vld [vmem:[%s12664_s3 + $0x398] sm:$0xf0]  ;;  %v8771_v4 = vld [vmem:[%s12664_s3 + $0x5c4] sm:$0xf] }
 0x152   : > { %2862 = vmatpush.bf16.msra.mxu2 %v7061_v41  ;;  %2500 = vmatmul.bf16.vlgmr.msrb.gmra.mxu1 %v10764_v50  ;;  %v7029_v46 = vor.u32 %v8752_v18, %v7028_v14  ;;  %v8717_v41 = vld [vmem:[%s12664_s3 + $0x414] sm:$0xf]  ;;  %v6785_v40 = vor.u32 %v8701_v52, %v6782_v48  ;;  %v7108_v48 = vld [vmem:[%s12664_s3 + $0x5c0] sm:$0xf]  ;;  %v8768_v56 = vld [vmem:[%s12664_s3 + $0x5a4] sm:$0xf0] }
 0x153   : > { %2847 = vmatpush.bf16.msra.mxu1 %v7005_v42  ;;  %v8699_v42 = vld [vmem:[%s12664_s3 + $0x384] sm:$0xf]  ;;  %v6849_v43 = vor.u32 %v8717_v41, %v6846_v24  ;;  %v8741_v14 = vld [vmem:[%s12664_s3 + $0x4d4] sm:$0xf]  ;;  %v8772_v41 = vld [vmem:[%s12664_s3 + $0x5c4] sm:$0xf0] }
 0x154   : > { %v8735_v45 = vld [vmem:[%s12664_s3 + $0x4a4] sm:$0xf]  ;;  %v8766_v6 = vld [vmem:[%s12664_s3 + $0x594] sm:$0xf0]  ;;  %v8733_v36 = vld [vmem:[%s12664_s3 + $0x494] sm:$0xf] }
 0x155   : > { %2522 = vmatpush.bf16.msrb.mxu3 %v6817_v12  ;;  %2536 = vmatpush.bf16.msra.mxu0 %v6881_v39  ;;  %v6965_v12 = vor.u32 %v8736_v33, %v6964_v32  ;;  %v7132_v39 = vld [vmem:[%s12664_s3 + $0x5f0] sm:$0xf]  ;;  %v7110_v32 = vld [vmem:[%s12664_s3 + $0x5c8] sm:$0xf0]  ;;  %v8757_v33 = vld [vmem:[%s12664_s3 + $0x554] sm:$0xf] }
 0x156   : > { %2863 = vmatpush.bf16.msra.mxu2 %v7053_v29  ;;  %v8778_v29 = vld [vmem:[%s12664_s3 + $0x5f4] sm:$0xf0]  ;;  %v6958_v11 = vld [vmem:[%s12664_s3 + $0x498] sm:$0xf0] }
 0x157   : > { %2848 = vmatpush.bf16.msra.mxu1 %v6997_v26  ;;  %v6777_v26 = vor.u32 %v8699_v42, %v6774_v3  ;;  %v7109_v42 = vor.u32 %v8772_v41, %v7108_v48  ;;  %v8793_v48 = vld [vmem:[%s12664_s3 + $0x674] sm:$0xf] }
 0x159   : > { %2523 = vmatpush.bf16.msrb.mxu3 %v6809_v60  ;;  %2537 = vmatpush.bf16.msra.mxu0 %v6873_v61  ;;  %v7133_v60 = vor.u32 %v8778_v29, %v7132_v39  ;;  %v7009_v61 = vor.u32 %v8745_v49, %v7006_v5  ;;  %v7102_v39 = vld [vmem:[%s12664_s3 + $0x5b8] sm:$0xf0]  ;;  %v8755_v29 = vld [vmem:[%s12664_s3 + $0x544] sm:$0xf]  ;;  %v7046_v49 = vld [vmem:[%s12664_s3 + $0x548] sm:$0xf0] }
 0x15a   : > { %2864 = vmatpush.bf16.msra.mxu2 %v7045_v62  ;;  %v7124_v62 = vld [vmem:[%s12664_s3 + $0x5e0] sm:$0xf] }
 0x15b   : > { %2849 = vmatpush.bf16.msra.mxu1 %v6989_v1  ;;  %v8743_v1 = vld [vmem:[%s12664_s3 + $0x4e4] sm:$0xf] }
 0x15c   : > { %v7001_v2 = vor.u32 %v8743_v1, %v6998_v27  ;;  %v7084_v27 = vld [vmem:[%s12664_s3 + $0x590] sm:$0xf] }
 0x15d   : > { %2524 = vmatpush.bf16.msrb.mxu3 %v6801_v13  ;;  %2538 = vmatpush.bf16.msra.mxu0 %v6865_v8  ;;  %v8761_v13 = vld [vmem:[%s12664_s3 + $0x574] sm:$0xf]  ;;  %v7070_v8 = vld [vmem:[%s12664_s3 + $0x578] sm:$0xf0] }
 0x15e   : > { %2865 = vmatpush.bf16.msra.mxu2 %v7037_v59  ;;  %v7125_v59 = vor.u32 %v8776_v38, %v7124_v62  ;;  %v7073_v18 = vor.u32 %v8761_v13, %v7070_v8  ;;  %v8753_v62 = vld [vmem:[%s12664_s3 + $0x534] sm:$0xf]  ;;  %v7038_v38 = vld [vmem:[%s12664_s3 + $0x538] sm:$0xf0] }
 0x15f   : > { %2850 = vmatpush.bf16.msra.mxu1 %v6981_v10  ;;  %v7116_v10 = vld [vmem:[%s12664_s3 + $0x5d0] sm:$0xf]  ;;  %v7041_v7 = vor.u32 %v8753_v62, %v7038_v38  ;;  %v8765_v13 = vld [vmem:[%s12664_s3 + $0x594] sm:$0xf]  ;;  %v7086_v8 = vld [vmem:[%s12664_s3 + $0x598] sm:$0xf0] }
 0x160   : > { %v8789_v62 = vld [vmem:[%s12664_s3 + $0x654] sm:$0xf]  ;;  %v7230_v38 = vld [vmem:[%s12664_s3 + $0x658] sm:$0xf0] }
 0x161   : > { %2525 = vmatpush.bf16.msrb.mxu3 %v6793_v58  ;;  %2539 = vmatpush.bf16.msra.mxu0 %v6857_v22  ;;  %v7118_v58 = vld [vmem:[%s12664_s3 + $0x5d8] sm:$0xf0]  ;;  %v7117_v22 = vor.u32 %v8774_v0, %v7116_v10  ;;  %v8764_v10 = vld [vmem:[%s12664_s3 + $0x584] sm:$0xf0]  ;;  %v6961_v0 = vor.u32 %v8733_v36, %v6958_v11  ;;  %v7233_v36 = vor.u32 %v8789_v62, %v7230_v38 }
 0x162   : > { %2866 = vmatpush.bf16.msra.mxu2 %v7029_v46  ;;  %v6993_v46 = vor.u32 %v8741_v14, %v6990_v20  ;;  %v7121_v52 = vor.u32 %v8773_v21, %v7118_v58  ;;  %v7089_v14 = vor.u32 %v8765_v13, %v7086_v8  ;;  %v6950_v20 = vld [vmem:[%s12664_s3 + $0x488] sm:$0xf0]  ;;  %v8763_v21 = vld [vmem:[%s12664_s3 + $0x584] sm:$0xf]  ;;  %v8788_v11 = vld [vmem:[%s12664_s3 + $0x644] sm:$0xf0] }
 0x163   : > { %2851 = vmatpush.bf16.msra.mxu1 %v6973_v23  ;;  %v8739_v23 = vld [vmem:[%s12664_s3 + $0x4c4] sm:$0xf]  ;;  %v7284_v13 = vld [vmem:[%s12664_s3 + $0x6c0] sm:$0xf] }
 0x164   : > { %v6985_v3 = vor.u32 %v8739_v23, %v6982_v55  ;;  %v7246_v23 = vld [vmem:[%s12664_s3 + $0x678] sm:$0xf0] }
 0x165   : > { %2526 = vmatpush.bf16.msrb.mxu3 %v6785_v40  ;;  %2540 = vmatpush.bf16.msra.mxu0 %v6849_v43  ;;  %v7054_v40 = vld [vmem:[%s12664_s3 + $0x558] sm:$0xf0]  ;;  %v7113_v43 = vor.u32 %v8771_v4, %v7110_v32 }
 0x166   : > { %2867 = vmatpush.bf16.msra.mxu2 %v7021_v63  ;;  %v7100_v63 = vld [vmem:[%s12664_s3 + $0x5b0] sm:$0xf]  ;;  %v7057_v44 = vor.u32 %v8757_v33, %v7054_v40  ;;  %v7022_v55 = vld [vmem:[%s12664_s3 + $0x518] sm:$0xf0] }
 0x167   : > { %2852 = vmatpush.bf16.msra.mxu1 %v6965_v12  ;;  %v6974_v12 = vld [vmem:[%s12664_s3 + $0x4b8] sm:$0xf0]  ;;  %v7101_v5 = vor.u32 %v8770_v30, %v7100_v63  ;;  %v7300_v30 = vld [vmem:[%s12664_s3 + $0x6e0] sm:$0xf] }
 0x168   : > { %v6977_v9 = vor.u32 %v8737_v51, %v6974_v12  ;;  %v8808_v51 = vld [vmem:[%s12664_s3 + $0x6e4] sm:$0xf0]  ;;  %v7238_v12 = vld [vmem:[%s12664_s3 + $0x668] sm:$0xf0] }
 0x169   : > { %2527 = vmatpush.bf16.msrb.mxu3 %v6777_v26  ;;  %2541 = vmatpush.bf16.msra.mxu0 %v6841_v53  ;;  %v7105_v26 = vor.u32 %v8769_v47, %v7102_v39  ;;  %v7049_v53 = vor.u32 %v8755_v29, %v7046_v49  ;;  %v8747_v47 = vld [vmem:[%s12664_s3 + $0x504] sm:$0xf]  ;;  %v7014_v39 = vld [vmem:[%s12664_s3 + $0x508] sm:$0xf0]  ;;  %v7372_v29 = vld [vmem:[%s12664_s3 + $0x770] sm:$0xf] }
 0x16a   : > { %2868 = vmatpush.bf16.msra.mxu2 %v7013_v57  ;;  %v6966_v57 = vld [vmem:[%s12664_s3 + $0x4a8] sm:$0xf0]  ;;  %v8826_v49 = vld [vmem:[%s12664_s3 + $0x774] sm:$0xf0] }
 0x16b   : > { %2853 = vmatpush.bf16.msra.mxu1 %v6957_v31  ;;  %v6969_v31 = vor.u32 %v8735_v45, %v6966_v57  ;;  %v7228_v57 = vld [vmem:[%s12664_s3 + $0x650] sm:$0xf] }
 0x16c   : > { %2528 = vmatmul.bf16.vlgmr.msrb.gmra.mxu3 %v10721_v25  ;;  %2542 = vmatmul.bf16.vlgmr.msra.gmra.mxu0 %v10764_v50  ;;  %v8759_v25 = vld [vmem:[%s12664_s3 + $0x564] sm:$0xf]  ;;  %v7062_v50 = vld [vmem:[%s12664_s3 + $0x568] sm:$0xf0] }
 0x16d   : > { %2875 = vmatpush.bf16.msra.mxu3 %v7133_v60  ;;  %2889 = vmatpush.bf16.msrb.mxu0 %v7009_v61  ;;  %v7065_v24 = vor.u32 %v8759_v25, %v7062_v50  ;;  %v8767_v60 = vld [vmem:[%s12664_s3 + $0x5a4] sm:$0xf]  ;;  %v7094_v61 = vld [vmem:[%s12664_s3 + $0x5a8] sm:$0xf0]  ;;  %v7244_v50 = vld [vmem:[%s12664_s3 + $0x670] sm:$0xf] }
 0x16e   : > { %2917 = vmatpush.bf16.msrb.mxu2 %v7137_v37  ;;  %v7093_v37 = vor.u32 %v8768_v56, %v7092_v34  ;;  %v7097_v1 = vor.u32 %v8767_v60, %v7094_v61  ;;  %v7078_v25 = vld [vmem:[%s12664_s3 + $0x588] sm:$0xf0]  ;;  %v11117_v56 = vld [vmem:[#allocation3 + $0x24] sm:$0xff] }
 0x16f   : > { %2869 = vmatmul.bf16.vlgmr.msra.gmra.mxu2 %v10331_v28  ;;  %2854 = vmatpush.bf16.msra.mxu1 %v6949_v35  ;;  %v7076_v35 = vld [vmem:[%s12664_s3 + $0x580] sm:$0xf]  ;;  %v7081_v32 = vor.u32 %v8763_v21, %v7078_v25  ;;  %v11115_v34 = vld [vmem:[#allocation3 + $0x18] sm:$0xff]  ;;  %v8790_v60 = vld [vmem:[%s12664_s3 + $0x654] sm:$0xf0]  ;;  %v3000_v21 = vunpack.c.h.b16 %v11117_v56 }
 0x170   : > { %v7077_v41 = vor.u32 %v8764_v10, %v7076_v35  ;;  %v8806_v61 = vld [vmem:[%s12664_s3 + $0x6d4] sm:$0xf0]  ;;  %v2996_v8 = vunpack.c.l.b16 %v11115_v34  ;;  %v7222_v35 = vld [vmem:[%s12664_s3 + $0x648] sm:$0xf0]  ;;  %v7356_v10 = vld [vmem:[%s12664_s3 + $0x750] sm:$0xf] }
 0x171   : > { %2876 = vmatpush.bf16.msra.mxu3 %v7125_v59  ;;  %2890 = vmatpush.bf16.msrb.mxu0 %v7001_v2  ;;  %v8751_v59 = vld [vmem:[%s12664_s3 + $0x524] sm:$0xf]  ;;  %v7030_v2 = vld [vmem:[%s12664_s3 + $0x528] sm:$0xf0] }
 0x172   : > { %2918 = vmatpush.bf16.msrb.mxu2 %v7129_v54  ;;  %2855 = vmatmul.bf16.vlgmr.msra.gmra.mxu1 %v10335_v19  ;;  %v7085_v54 = vor.u32 %v8766_v6, %v7084_v27  ;;  %v7033_v58 = vor.u32 %v8751_v59, %v7030_v2  ;;  %v8804_v2 = vld [vmem:[%s12664_s3 + $0x6c4] sm:$0xf0] }
 0x173   : > { %2903 = vmatpush.bf16.msrb.mxu1 %v7073_v18  ;;  %v8731_v18 = vld [vmem:[%s12664_s3 + $0x484] sm:$0xf] }
 0x174   : > { %v6953_v4 = vor.u32 %v8731_v18, %v6950_v20 }
 0x175   : > { %2877 = vmatpush.bf16.msra.mxu3 %v7117_v22  ;;  %2891 = vmatpush.bf16.msrb.mxu0 %v6993_v46  ;;  %v8794_v22 = vld [vmem:[%s12664_s3 + $0x674] sm:$0xf0]  ;;  %v7308_v46 = vld [vmem:[%s12664_s3 + $0x6f0] sm:$0xf] }
 0x176   : > { %2919 = vmatpush.bf16.msrb.mxu2 %v7121_v52  ;;  %v8810_v52 = vld [vmem:[%s12664_s3 + $0x6f4] sm:$0xf0]  ;;  %v7245_v33 = vor.u32 %v8794_v22, %v7244_v50  ;;  %v7212_v50 = vld [vmem:[%s12664_s3 + $0x630] sm:$0xf] }
 0x177   : > { %2904 = vmatpush.bf16.msrb.mxu1 %v7065_v24  ;;  %v8749_v24 = vld [vmem:[%s12664_s3 + $0x514] sm:$0xf]  ;;  %v7309_v40 = vor.u32 %v8810_v52, %v7308_v46  ;;  %v8786_v22 = vld [vmem:[%s12664_s3 + $0x634] sm:$0xf0] }
 0x178   : > { %v7025_v63 = vor.u32 %v8749_v24, %v7022_v55  ;;  %v2997_v55 = vunpack.c.h.b16 %v11115_v34  ;;  %v7206_v34 = vld [vmem:[%s12664_s3 + $0x628] sm:$0xf0] }
 0x179   : > { %2878 = vmatpush.bf16.msra.mxu3 %v7109_v42  ;;  %2892 = vmatpush.bf16.msrb.mxu0 %v6985_v3  ;;  %v7236_v42 = vld [vmem:[%s12664_s3 + $0x660] sm:$0xf]  ;;  %v8792_v3 = vld [vmem:[%s12664_s3 + $0x664] sm:$0xf0] }
 0x17a   : > { %2920 = vmatpush.bf16.msrb.mxu2 %v7113_v43  ;;  %v7249_v43 = vor.u32 %v8793_v48, %v7246_v23  ;;  %v8802_v48 = vld [vmem:[%s12664_s3 + $0x6b4] sm:$0xf0]  ;;  %v7214_v23 = vld [vmem:[%s12664_s3 + $0x638] sm:$0xf0] }
 0x17b   : > { %2905 = vmatpush.bf16.msrb.mxu1 %v7057_v44  ;;  %v8791_v44 = vld [vmem:[%s12664_s3 + $0x664] sm:$0xf] }
 0x17c   : > { %v7241_v45 = vor.u32 %v8791_v44, %v7238_v12 }
 0x17d   : > { %2879 = vmatpush.bf16.msra.mxu3 %v7101_v5  ;;  %2893 = vmatpush.bf16.msrb.mxu0 %v6977_v9  ;;  %v2603_v5 = vpack.c.b16 %v10619_v17, %v10226_v16  ;;  %v7237_v9 = vor.u32 %v8792_v3, %v7236_v42  ;;  %v7292_v16 = vld [vmem:[%s12664_s3 + $0x6d0] sm:$0xf]  ;;  %v7373_v17 = vor.u32 %v8826_v49, %v7372_v29  ;;  %v8820_v42 = vld [vmem:[%s12664_s3 + $0x744] sm:$0xf0]  ;;  %v7268_v49 = vld [vmem:[%s12664_s3 + $0x6a0] sm:$0xf] }
 0x17e   : > { %2921 = vmatpush.bf16.msrb.mxu2 %v7105_v26  ;;  %v7301_v26 = vor.u32 %v8808_v51, %v7300_v30  ;;  %v7293_v6 = vor.u32 %v8806_v61, %v7292_v16  ;;  %v11211_v30 = vpack.c.b16 %v3000_v21, %v2997_v55  ;;  %v11213_v51 = vld [vmem:[#allocation3 + $0x2c] sm:$0xf]  ;;  %v8784_v29 = vld [vmem:[%s12664_s3 + $0x624] sm:$0xf0]  ;;  %v8779_v55 = vld [vmem:[%s12664_s3 + $0x604] sm:$0xf] }
 0x17f   : > { %2906 = vmatpush.bf16.msrb.mxu1 %v7049_v53  ;;  %v7017_v53 = vor.u32 %v8747_v47, %v7014_v39  ;;  %v7204_v39 = vld [vmem:[%s12664_s3 + $0x620] sm:$0xf] }
 0x180   : > { %v7205_v61 = vor.u32 %v8784_v29, %v7204_v39  ;;  %v3024_v38 = vshrl.u32 %v11211_v30, 16  ;;  %v7548_v39 = vld [vmem:[%s12664_s3 + $0x870] sm:$0xf] }
 0x181   : > { %2880 = vmatpush.bf16.msra.mxu3 %v7093_v37  ;;  %2894 = vmatpush.bf16.msrb.mxu0 %v6969_v31  ;;  %v7364_v37 = vld [vmem:[%s12664_s3 + $0x760] sm:$0xf]  ;;  %v2999_v31 = vunpack.c.l.b16 %v11117_v56  ;;  %v8837_v56 = vld [vmem:[%s12664_s3 + $0x7d4] sm:$0xf] }
 0x182   : > { %2922 = vmatpush.bf16.msrb.mxu2 %v7097_v1  ;;  %v7229_v1 = vor.u32 %v8790_v60, %v7228_v57  ;;  %v7340_v57 = vld [vmem:[%s12664_s3 + $0x730] sm:$0xf]  ;;  %v8818_v60 = vld [vmem:[%s12664_s3 + $0x734] sm:$0xf0] }
 0x183   : > { %2907 = vmatpush.bf16.msrb.mxu1 %v7041_v7  ;;  %v7220_v7 = vld [vmem:[%s12664_s3 + $0x640] sm:$0xf]  ;;  %v11174_v18 = vpack.c.b16 %v2999_v31, %v2996_v8 }
 0x184   : > { %v7221_v20 = vor.u32 %v8788_v11, %v7220_v7  ;;  %v7260_v7 = vld [vmem:[%s12664_s3 + $0x690] sm:$0xf]  ;;  %v3001_v11 = vunpack.c.l.b16 %v11213_v51  ;;  %v7726_v51 = vld [vmem:[%s12664_s3 + $0x978] sm:$0xf0] }
 0x185   : > { %2881 = vmatpush.bf16.msra.mxu3 %v7085_v54  ;;  %2895 = vmatpush.bf16.msrb.mxu0 %v6961_v0  ;;  %v8787_v54 = vld [vmem:[%s12664_s3 + $0x644] sm:$0xf]  ;;  %v8822_v0 = vld [vmem:[%s12664_s3 + $0x754] sm:$0xf0]  ;;  %v3014_v3 = vshll.u32 %v11174_v18, 16  ;;  %v3012_v16 = vshrl.u32 %v11174_v18, 16 }
 0x186   : > { %2923 = vmatpush.bf16.msrb.mxu2 %v7089_v14  ;;  %v11170_v14 = vld [vmem:[#allocation3 + $0x30] sm:$0x11]  ;;  %v7225_v25 = vor.u32 %v8787_v54, %v7222_v35  ;;  %v7357_v46 = vor.u32 %v8822_v0, %v7356_v10  ;;  %v7198_v54 = vld [vmem:[%s12664_s3 + $0x618] sm:$0xf0] }
 0x187   : > { %2908 = vmatpush.bf16.msrb.mxu1 %v7033_v58  ;;  %v7285_v58 = vor.u32 %v8804_v2, %v7284_v13  ;;  %v3002_v24 = vunpack.c.l.b16 %v11170_v14  ;;  %v7341_v13 = vor.u32 %v8818_v60, %v7340_v57  ;;  %v8781_v2 = vld [vmem:[%s12664_s3 + $0x614] sm:$0xf]  ;;  %v8816_v18 = vld [vmem:[%s12664_s3 + $0x724] sm:$0xf0] }
 0x188   : > { %v1664_v27 = vpop.f32.mrf.mxu0 }
 0x189   : > { %2882 = vmatpush.bf16.msra.mxu3 %v7077_v41  ;;  %2896 = vmatpush.bf16.msrb.mxu0 %v6953_v4  ;;  %v8785_v41 = vld [vmem:[%s12664_s3 + $0x634] sm:$0xf] }
 0x18a   : > { %2924 = vmatpush.bf16.msrb.mxu2 %v7081_v32  ;;  %v7217_v47 = vor.u32 %v8785_v41, %v7214_v23  ;;  %v7252_v23 = vld [vmem:[%s12664_s3 + $0x680] sm:$0xf] }
 0x18b   : > { %2909 = vmatpush.bf16.msrb.mxu1 %v7025_v63 }
 0x18c   : > { %2883 = vmatmul.bf16.vlgmr.msra.gmra.mxu3 %v2603_v5  ;;  %2897 = vmatmul.bf16.vlgmr.msrb.gmra.mxu0 %v10335_v19  ;;  %v8824_v19 = vld [vmem:[%s12664_s3 + $0x764] sm:$0xf0] }
 0x18d   : > { %3290 = vmatpush.bf16.msrb.mxu3 %v7245_v33  ;;  %3304 = vmatpush.bf16.msra.mxu0 %v7309_v40  ;;  %v7365_v59 = vor.u32 %v8824_v19, %v7364_v37  ;;  %v7348_v40 = vld [vmem:[%s12664_s3 + $0x740] sm:$0xf]  ;;  %v3026_v37 = vshll.u32 %v11211_v30, 16  ;;  %v2936_v19 = vld [vmem:[#allocation3 + $0x20] sm:$0xf] }
 0x18e   : > { %3332 = vmatpush.bf16.msra.mxu2 %v7249_v43  ;;  %v1650_v52 = vpop.f32.mrf.mxu3  ;;  %v7213_v43 = vor.u32 %v8786_v22, %v7212_v50  ;;  %v7188_v50 = vld [vmem:[%s12664_s3 + $0x600] sm:$0xf]  ;;  %v8780_v22 = vld [vmem:[%s12664_s3 + $0x604] sm:$0xf0] }
 0x18f   : > { %2925 = vmatmul.bf16.vlgmr.msrb.gmra.mxu2 %v2603_v5  ;;  %2910 = vmatpush.bf16.msrb.mxu1 %v7017_v53  ;;  %v1665_v4 = vadd.f32 %v1664_v27, %v1650_v52  ;;  %v1678_v32 = vpop.f32.mrf.mxu1  ;;  %v11198_v33 = vpop.f32.mrf.mxu2  ;;  %v7349_v5 = vor.u32 %v8820_v42, %v7348_v40  ;;  %v3003_v53 = vunpack.c.h.b16 %v11170_v14  ;;  %v7332_v14 = vld [vmem:[%s12664_s3 + $0x720] sm:$0xf]  ;;  %v7190_v40 = vld [vmem:[%s12664_s3 + $0x608] sm:$0xf0]  ;;  %v8809_v42 = vld [vmem:[%s12664_s3 + $0x6f4] sm:$0xf]  ;;  %v7189_v29 = vor.u32 %v8780_v22, %v7188_v50 }
 0x190   : > { %v11207_v63 = vpop.f32.mrf.mxu0  ;;  %v8856_v30 = vld [vmem:[%s12664_s3 + $0x864] sm:$0xf0] }
 0x191   : > { %3291 = vmatpush.bf16.msrb.mxu3 %v7237_v9  ;;  %3305 = vmatpush.bf16.msra.mxu0 %v7301_v26  ;;  %v11215_v44 = vadd.f32 %v1678_v32, %v1665_v4  ;;  %v8800_v9 = vld [vmem:[%s12664_s3 + $0x6a4] sm:$0xf0]  ;;  %v8783_v26 = vld [vmem:[%s12664_s3 + $0x624] sm:$0xf]  ;;  %v11269_v35 = vpack.c.b16 %v3003_v53, %v3003_v53  ;;  %v7333_v32 = vor.u32 %v8816_v18, %v7332_v14  ;;  %v7540_v14 = vld [vmem:[%s12664_s3 + $0x860] sm:$0xf] }
 0x192   : > { %3333 = vmatpush.bf16.msra.mxu2 %v7241_v45  ;;  %2911 = vmatmul.bf16.vlgmr.msrb.gmra.mxu1 %v10331_v28  ;;  %v7276_v28 = vld [vmem:[%s12664_s3 + $0x6b0] sm:$0xf]  ;;  %v11235_v45 = vpack.c.b16 %v3002_v24, %v3002_v24  ;;  %v7209_v27 = vor.u32 %v8783_v26, %v7206_v34  ;;  %v8796_v24 = vld [vmem:[%s12664_s3 + $0x684] sm:$0xf0]  ;;  %v7193_v53 = vor.u32 %v8779_v55, %v7190_v40  ;;  %v8805_v40 = vld [vmem:[%s12664_s3 + $0x6d4] sm:$0xf] }
 0x193   : > { %3318 = vmatpush.bf16.msra.mxu1 %v7373_v17  ;;  %v7277_v12 = vor.u32 %v8802_v48, %v7276_v28  ;;  %v3016_v17 = vrot.slane %v3014_v3, 1  ;;  %v3028_v28 = vrot.slane %v3026_v37, 1  ;;  %v7201_v48 = vor.u32 %v8781_v2, %v7198_v54  ;;  %v7310_v3 = vld [vmem:[%s12664_s3 + $0x6f8] sm:$0xf0]  ;;  %v8823_v2 = vld [vmem:[%s12664_s3 + $0x764] sm:$0xf] }
 0x194   : > { %v3019_v62 = vshll.u32 %v11235_v45, 16  ;;  %v7253_v34 = vor.u32 %v8796_v24, %v7252_v23  ;;  %v7366_v54 = vld [vmem:[%s12664_s3 + $0x768] sm:$0xf0]  ;;  %v8812_v18 = vld [vmem:[%s12664_s3 + $0x704] sm:$0xf0]  ;;  %v7541_v55 = vor.u32 %v8856_v30, %v7540_v14 }
 0x195   : > { %3292 = vmatpush.bf16.msrb.mxu3 %v7229_v1  ;;  %3306 = vmatpush.bf16.msra.mxu0 %v7293_v6  ;;  %v7269_v1 = vor.u32 %v8800_v9, %v7268_v49  ;;  %v7196_v6 = vld [vmem:[%s12664_s3 + $0x610] sm:$0xf]  ;;  %v8858_v49 = vld [vmem:[%s12664_s3 + $0x874] sm:$0xf0]  ;;  %v3017_v26 = vor.u32 %v3016_v17, %v3012_v16  ;;  %v7302_v16 = vld [vmem:[%s12664_s3 + $0x6e8] sm:$0xf0] }
 0x196   : > { %3334 = vmatpush.bf16.msra.mxu2 %v7233_v36  ;;  %v8782_v36 = vld [vmem:[%s12664_s3 + $0x614] sm:$0xf0]  ;;  %v11258_v8 = vpop.f32.mrf.mxu3  ;;  %v3021_v57 = vrot.slane %v3019_v62, 1  ;;  %v8801_v14 = vld [vmem:[%s12664_s3 + $0x6b4] sm:$0xf] }
 0x197   : > { %3319 = vmatpush.bf16.msra.mxu1 %v7365_v59  ;;  %v8798_v59 = vld [vmem:[%s12664_s3 + $0x694] sm:$0xf0]  ;;  %v11271_v10 = vpop.f32.mrf.mxu1  ;;  %v11273_v0 = vpop.f32.mrf.mxu2  ;;  %v8817_v30 = vld [vmem:[%s12664_s3 + $0x734] sm:$0xf] }
 0x198   : > { %v7261_v52 = vor.u32 %v8798_v59, %v7260_v7  ;;  %v8814_v9 = vld [vmem:[%s12664_s3 + $0x714] sm:$0xf0]  ;;  %v3029_v59 = vor.u32 %v3028_v28, %v3024_v38  ;;  %v7316_v38 = vld [vmem:[%s12664_s3 + $0x700] sm:$0xf] }
 0x199   : > { %3293 = vmatpush.bf16.msrb.mxu3 %v7221_v20  ;;  %3307 = vmatpush.bf16.msra.mxu0 %v7285_v58  ;;  %v2940_v20 = vld [vmem:[#allocation3 + $0x38] sm:$0x1]  ;;  %v2998_v58 = vunpack.c.l.b16 %v2936_v19  ;;  %v1720_v41 = vpop.f32.mrf.mxu0 }
 0x19a   : > { %3335 = vmatpush.bf16.msra.mxu2 %v7225_v25  ;;  %v7197_v25 = vor.u32 %v8782_v36, %v7196_v6  ;;  %v7549_v6 = vor.u32 %v8858_v49, %v7548_v39  ;;  %v8840_v49 = vld [vmem:[%s12664_s3 + $0x7e4] sm:$0xf0] }
 0x19b   : > { %3320 = vmatpush.bf16.msra.mxu1 %v7357_v46  ;;  %v3031_v46 = vshll.u32 %v11269_v35, 16  ;;  %v11299_v4 = vpack.c.b16 %v3001_v11, %v2998_v58 }
 0x19d   : > { %3294 = vmatpush.bf16.msrb.mxu3 %v7213_v43  ;;  %3308 = vmatpush.bf16.msra.mxu0 %v7277_v12  ;;  %v3004_v43 = vunpack.c.l.b16 %v2940_v20  ;;  %v8825_v12 = vld [vmem:[%s12664_s3 + $0x774] sm:$0xf]  ;;  %v3038_v60 = vshll.u32 %v11299_v4, 16  ;;  %v3022_v20 = vsel %vm869_vm6, %v3017_v26, %v3021_v57  ;;  %v3036_v23 = vshrl.u32 %v11299_v4, 16  ;;  %v8803_v57 = vld [vmem:[%s12664_s3 + $0x6c4] sm:$0xf] }
 0x19e   : > { %3336 = vmatpush.bf16.msra.mxu2 %v7217_v47  ;;  %v7374_v47 = vld [vmem:[%s12664_s3 + $0x778] sm:$0xf0]  ;;  %v1706_v19 = vpop.f32.mrf.mxu3 }
 0x19f   : > { %3321 = vmatpush.bf16.msra.mxu1 %v7349_v5  ;;  %v7324_v5 = vld [vmem:[%s12664_s3 + $0x710] sm:$0xf]  ;;  %v7377_v37 = vor.u32 %v8825_v12, %v7374_v47  ;;  %v11335_v17 = vpack.c.b16 %v3004_v43, %v3004_v43  ;;  %v1707_v62 = vadd.f32 %v1706_v19, %v11198_v33  ;;  %v2036_v7 = vpop.f32.mrf.mxu1  ;;  %v3040_v50 = vrot.slane %v3038_v60, 1  ;;  %v8854_v12 = vld [vmem:[%s12664_s3 + $0x854] sm:$0xf0] }
 0x1a0   : > { %v7325_v36 = vor.u32 %v8814_v9, %v7324_v5  ;;  %v2037_v33 = vadd.f32 %v2036_v7, %v11215_v44  ;;  %v7484_v44 = vld [vmem:[%s12664_s3 + $0x7f0] sm:$0xf]  ;;  %v7286_v60 = vld [vmem:[%s12664_s3 + $0x6c8] sm:$0xf0] }
 0x1a1   : > { %3295 = vmatpush.bf16.msrb.mxu3 %v7205_v61  ;;  %3309 = vmatpush.bf16.msra.mxu0 %v7269_v1  ;;  %v7313_v61 = vor.u32 %v8809_v42, %v7310_v3  ;;  %v3033_v1 = vrot.slane %v3031_v46, 1  ;;  %v11360_v58 = vpop.f32.mrf.mxu0  ;;  %v3043_v22 = vshll.u32 %v11335_v17, 16  ;;  %v1721_v28 = vadd.f32 %v1720_v41, %v1707_v62  ;;  %v7294_v41 = vld [vmem:[%s12664_s3 + $0x6d8] sm:$0xf0]  ;;  %v8821_v42 = vld [vmem:[%s12664_s3 + $0x754] sm:$0xf] }
 0x1a2   : > { %3337 = vmatpush.bf16.msra.mxu2 %v7209_v27  ;;  %v8807_v27 = vld [vmem:[%s12664_s3 + $0x6e4] sm:$0xf]  ;;  %v7358_v3 = vld [vmem:[%s12664_s3 + $0x758] sm:$0xf0]  ;;  %v7532_v43 = vld [vmem:[%s12664_s3 + $0x850] sm:$0xf]  ;;  %v3041_v47 = vor.u32 %v3040_v50, %v3036_v23  ;;  %v7297_v5 = vor.u32 %v8805_v40, %v7294_v41 }
 0x1a3   : > { %3322 = vmatpush.bf16.msra.mxu1 %v7341_v13  ;;  %v2050_v13 = vpop.f32.mrf.mxu2  ;;  %v11373_v24 = vsel %vm869_vm6, %v3029_v59, %v3033_v1  ;;  %v3045_v39 = vrot.slane %v3043_v22, 1  ;;  %v7361_v26 = vor.u32 %v8821_v42, %v7358_v3  ;;  %v7350_v19 = vld [vmem:[%s12664_s3 + $0x748] sm:$0xf0]  ;;  %v7524_v1 = vld [vmem:[%s12664_s3 + $0x840] sm:$0xf] }
 0x1a4   : > { %v11369_v46 = vadd.f32 %v2050_v13, %v2037_v33  ;;  %v8838_v62 = vld [vmem:[%s12664_s3 + $0x7d4] sm:$0xf0]  ;;  %v7289_v13 = vor.u32 %v8803_v57, %v7286_v60  ;;  %v7278_v33 = vld [vmem:[%s12664_s3 + $0x6b8] sm:$0xf0]  ;;  %v8836_v50 = vld [vmem:[%s12664_s3 + $0x7c4] sm:$0xf0] }
 0x1a5   : > { %3296 = vmatpush.bf16.msrb.mxu3 %v7197_v25  ;;  %3310 = vmatpush.bf16.msra.mxu0 %v7261_v52  ;;  %v8842_v25 = vld [vmem:[%s12664_s3 + $0x7f4] sm:$0xf0]  ;;  %v7305_v52 = vor.u32 %v8807_v27, %v7302_v16  ;;  %v8852_v27 = vld [vmem:[%s12664_s3 + $0x844] sm:$0xf0]  ;;  %v11423_v16 = vsel %vm869_vm6, %v3041_v47, %v3045_v39  ;;  %v7281_v22 = vor.u32 %v8801_v14, %v7278_v33  ;;  %v8799_v23 = vld [vmem:[%s12664_s3 + $0x6a4] sm:$0xf] }
 0x1a6   : > { %3338 = vmatpush.bf16.msra.mxu2 %v7201_v48  ;;  %v7369_v48 = vor.u32 %v8823_v2, %v7366_v54  ;;  %v7485_v4 = vor.u32 %v8842_v25, %v7484_v44  ;;  %v11400_v9 = vpop.f32.mrf.mxu3  ;;  %v7525_v54 = vor.u32 %v8852_v27, %v7524_v1  ;;  %v8850_v44 = vld [vmem:[%s12664_s3 + $0x834] sm:$0xf0]  ;;  %v7460_v25 = vld [vmem:[%s12664_s3 + $0x7c0] sm:$0xf]  ;;  %v7334_v42 = vld [vmem:[%s12664_s3 + $0x728] sm:$0xf0] }
 0x1a7   : > { %3323 = vmatpush.bf16.msra.mxu1 %v7333_v32  ;;  %v7317_v32 = vor.u32 %v8812_v18, %v7316_v38  ;;  %v7342_v18 = vld [vmem:[%s12664_s3 + $0x738] sm:$0xf0]  ;;  %v7461_v41 = vor.u32 %v8836_v50, %v7460_v25  ;;  %v8848_v3 = vld [vmem:[%s12664_s3 + $0x824] sm:$0xf0]  ;;  %v8813_v60 = vld [vmem:[%s12664_s3 + $0x714] sm:$0xf] }
 0x1a8   : > { %v7262_v57 = vld [vmem:[%s12664_s3 + $0x698] sm:$0xf0]  ;;  %v7500_v1 = vld [vmem:[%s12664_s3 + $0x810] sm:$0xf]  ;;  %v8846_v27 = vld [vmem:[%s12664_s3 + $0x814] sm:$0xf0] }
 0x1a9   : > { %3297 = vmatpush.bf16.msrb.mxu3 %v7189_v29  ;;  %3311 = vmatpush.bf16.msra.mxu0 %v7253_v34  ;;  %v7476_v29 = vld [vmem:[%s12664_s3 + $0x7e0] sm:$0xf]  ;;  %v7533_v34 = vor.u32 %v8854_v12, %v7532_v43  ;;  %v2078_v7 = vpop.f32.mrf.mxu0  ;;  %v7452_v12 = vld [vmem:[%s12664_s3 + $0x7b0] sm:$0xf]  ;;  %v7501_v14 = vor.u32 %v8846_v27, %v7500_v1  ;;  %v8811_v33 = vld [vmem:[%s12664_s3 + $0x704] sm:$0xf] }
 0x1aa   : > { %3339 = vmatpush.bf16.msra.mxu2 %v7193_v53  ;;  %v11402_v53 = vpop.f32.mrf.mxu1  ;;  %v2079_v59 = vadd.f32 %v2078_v7, %v1721_v28  ;;  %v7345_v28 = vor.u32 %v8817_v30, %v7342_v18  ;;  %v7318_v30 = vld [vmem:[%s12664_s3 + $0x708] sm:$0xf0]  ;;  %v8874_v25 = vld [vmem:[%s12664_s3 + $0x8f4] sm:$0xf0] }
 0x1ab   : > { %3324 = vmatpush.bf16.msra.mxu1 %v7325_v36  ;;  %v7468_v36 = vld [vmem:[%s12664_s3 + $0x7d0] sm:$0xf] }
 0x1ac   : > { %3298 = vmatmul.bf16.vlgmr.msrb.gmra.mxu3 %v3022_v20  ;;  %3312 = vmatmul.bf16.vlgmr.msra.gmra.mxu0 %v11373_v24  ;;  %v7469_v38 = vor.u32 %v8838_v62, %v7468_v36  ;;  %v7444_v36 = vld [vmem:[%s12664_s3 + $0x7a0] sm:$0xf]  ;;  %v8832_v62 = vld [vmem:[%s12664_s3 + $0x7a4] sm:$0xf0] }
 0x1ad   : > { %3346 = vmatpush.bf16.msra.mxu3 %v7313_v61  ;;  %3360 = vmatpush.bf16.msrb.mxu0 %v7377_v37  ;;  %v8819_v61 = vld [vmem:[%s12664_s3 + $0x744] sm:$0xf]  ;;  %v7477_v37 = vor.u32 %v8840_v49, %v7476_v29  ;;  %v11485_v29 = vld [vmem:[#allocation3 + $0x18] sm:$0xee]  ;;  %v7445_v18 = vor.u32 %v8832_v62, %v7444_v36 }
 0x1ae   : > { %3703 = vmatpush.bf16.msrb.mxu2 %v7549_v6  ;;  %v11425_v6 = vpop.f32.mrf.mxu2  ;;  %v7353_v2 = vor.u32 %v8819_v61, %v7350_v19  ;;  %v7326_v19 = vld [vmem:[%s12664_s3 + $0x718] sm:$0xf0] }
 0x1af   : > { %3340 = vmatmul.bf16.vlgmr.msra.gmra.mxu2 %v3022_v20  ;;  %3325 = vmatpush.bf16.msra.mxu1 %v7317_v32  ;;  %v7516_v20 = vld [vmem:[%s12664_s3 + $0x830] sm:$0xf]  ;;  %v8815_v32 = vld [vmem:[%s12664_s3 + $0x724] sm:$0xf] }
 0x1b1   : > { %3347 = vmatpush.bf16.msra.mxu3 %v7305_v52  ;;  %3361 = vmatpush.bf16.msrb.mxu0 %v7369_v48  ;;  %v7517_v52 = vor.u32 %v8850_v44, %v7516_v20  ;;  %v2064_v48 = vpop.f32.mrf.mxu3  ;;  %v8844_v20 = vld [vmem:[%s12664_s3 + $0x804] sm:$0xf0]  ;;  %v7612_v44 = vld [vmem:[%s12664_s3 + $0x8f0] sm:$0xf] }
 0x1b2   : > { %3704 = vmatpush.bf16.msrb.mxu2 %v7541_v55  ;;  %3326 = vmatmul.bf16.vlgmr.msra.gmra.mxu1 %v11423_v16  ;;  %v7270_v55 = vld [vmem:[%s12664_s3 + $0x6a8] sm:$0xf0]  ;;  %v11468_v40 = vadd.f32 %v2064_v48, %v11369_v46  ;;  %v2092_v43 = vpop.f32.mrf.mxu1  ;;  %v8834_v46 = vld [vmem:[%s12664_s3 + $0x7b4] sm:$0xf0] }
 0x1b3   : > { %3689 = vmatpush.bf16.msrb.mxu1 %v7485_v4  ;;  %v7508_v4 = vld [vmem:[%s12664_s3 + $0x820] sm:$0xf]  ;;  %v2093_v47 = vadd.f32 %v2092_v43, %v2079_v59  ;;  %v7273_v39 = vor.u32 %v8799_v23, %v7270_v55  ;;  %v7254_v59 = vld [vmem:[%s12664_s3 + $0x688] sm:$0xf0]  ;;  %v7614_v23 = vld [vmem:[%s12664_s3 + $0x8f8] sm:$0xf0] }
 0x1b4   : > { %v8830_v55 = vld [vmem:[%s12664_s3 + $0x794] sm:$0xf0]  ;;  %v3441_v43 = vrot.slane %v11269_v35, 1  ;;  %v8871_v35 = vld [vmem:[%s12664_s3 + $0x8e4] sm:$0xf] }
 0x1b5   : > { %3348 = vmatpush.bf16.msra.mxu3 %v7297_v5  ;;  %3362 = vmatpush.bf16.msrb.mxu0 %v7361_v26  ;;  %v7337_v5 = vor.u32 %v8815_v32, %v7334_v42  ;;  %v7509_v26 = vor.u32 %v8848_v3, %v7508_v4  ;;  %v7321_v32 = vor.u32 %v8811_v33, %v7318_v30  ;;  %v11620_v33 = vpop.f32.mrf.mxu0  ;;  %v8855_v30 = vld [vmem:[%s12664_s3 + $0x864] sm:$0xf] }
 0x1b6   : > { %3705 = vmatpush.bf16.msrb.mxu2 %v7533_v34  ;;  %v2106_v49 = vpop.f32.mrf.mxu2  ;;  %v8797_v34 = vld [vmem:[%s12664_s3 + $0x694] sm:$0xf]  ;;  %v7613_v42 = vor.u32 %v8874_v25, %v7612_v44 }
 0x1b7   : > { %3690 = vmatpush.bf16.msrb.mxu1 %v7477_v37  ;;  %v11496_v61 = vadd.f32 %v2106_v49, %v2093_v47  ;;  %v7453_v37 = vor.u32 %v8834_v46, %v7452_v12  ;;  %v7265_v7 = vor.u32 %v8797_v34, %v7262_v57  ;;  %v7604_v12 = vld [vmem:[%s12664_s3 + $0x8e0] sm:$0xf]  ;;  %v8872_v46 = vld [vmem:[%s12664_s3 + $0x8e4] sm:$0xf0]  ;;  %v8839_v49 = vld [vmem:[%s12664_s3 + $0x7e4] sm:$0xf] }
 0x1b8   : > { %v7606_v34 = vld [vmem:[%s12664_s3 + $0x8e8] sm:$0xf0]  ;;  %v7428_v57 = vld [vmem:[%s12664_s3 + $0x780] sm:$0xf]  ;;  %v7605_v1 = vor.u32 %v8872_v46, %v7604_v12  ;;  %v7580_v12 = vld [vmem:[%s12664_s3 + $0x8b0] sm:$0xf] }
 0x1b9   : > { %3349 = vmatpush.bf16.msra.mxu3 %v7289_v13  ;;  %3363 = vmatpush.bf16.msrb.mxu0 %v7353_v2  ;;  %v8795_v13 = vld [vmem:[%s12664_s3 + $0x684] sm:$0xf]  ;;  %v3432_v2 = vunpack.c.h.b16 %v11485_v29  ;;  %v7609_v36 = vor.u32 %v8871_v35, %v7606_v34  ;;  %v8866_v46 = vld [vmem:[%s12664_s3 + $0x8b4] sm:$0xf0]  ;;  %v7582_v35 = vld [vmem:[%s12664_s3 + $0x8b8] sm:$0xf0] }
 0x1ba   : > { %3706 = vmatpush.bf16.msrb.mxu2 %v7525_v54  ;;  %v7329_v54 = vor.u32 %v8813_v60, %v7326_v19  ;;  %v7257_v48 = vor.u32 %v8795_v13, %v7254_v59  ;;  %v8828_v60 = vld [vmem:[%s12664_s3 + $0x784] sm:$0xf0]  ;;  %v8870_v13 = vld [vmem:[%s12664_s3 + $0x8d4] sm:$0xf0]  ;;  %v11633_v44 = vpop.f32.mrf.mxu1  ;;  %v8851_v34 = vld [vmem:[%s12664_s3 + $0x844] sm:$0xf] }
 0x1bb   : > { %3691 = vmatpush.bf16.msrb.mxu1 %v7469_v38  ;;  %v7492_v38 = vld [vmem:[%s12664_s3 + $0x800] sm:$0xf]  ;;  %v11540_v50 = vpack.c.b16 %v3000_v21, %v3432_v2  ;;  %v7436_v21 = vld [vmem:[%s12664_s3 + $0x790] sm:$0xf]  ;;  %v7429_v62 = vor.u32 %v8828_v60, %v7428_v57  ;;  %v7470_v2 = vld [vmem:[%s12664_s3 + $0x7d8] sm:$0xf0]  ;;  %v7581_v60 = vor.u32 %v8866_v46, %v7580_v12 }
 0x1bc   : > { %v7473_v25 = vor.u32 %v8837_v56, %v7470_v2  ;;  %v7526_v57 = vld [vmem:[%s12664_s3 + $0x848] sm:$0xf0]  ;;  %v8863_v2 = vld [vmem:[%s12664_s3 + $0x8a4] sm:$0xf] }
 0x1bd   : > { %3350 = vmatpush.bf16.msra.mxu3 %v7281_v22  ;;  %3364 = vmatpush.bf16.msrb.mxu0 %v7345_v28  ;;  %v8841_v22 = vld [vmem:[%s12664_s3 + $0x7f4] sm:$0xf]  ;;  %v7486_v28 = vld [vmem:[%s12664_s3 + $0x7f8] sm:$0xf0]  ;;  %v3440_v3 = vrot.slane %v11540_v50, 1  ;;  %v7529_v56 = vor.u32 %v8851_v34, %v7526_v57 }
 0x1be   : > { %3707 = vmatpush.bf16.msrb.mxu2 %v7517_v52  ;;  %v8873_v52 = vld [vmem:[%s12664_s3 + $0x8f4] sm:$0xf]  ;;  %v7489_v4 = vor.u32 %v8841_v22, %v7486_v28  ;;  %v8868_v28 = vld [vmem:[%s12664_s3 + $0x8c4] sm:$0xf0] }
 0x1bf   : > { %3692 = vmatpush.bf16.msrb.mxu1 %v7461_v41  ;;  %v7493_v41 = vor.u32 %v8844_v20, %v7492_v38  ;;  %v7617_v47 = vor.u32 %v8873_v52, %v7614_v23  ;;  %v7542_v38 = vld [vmem:[%s12664_s3 + $0x868] sm:$0xf0]  ;;  %v11631_v20 = vpop.f32.mrf.mxu3  ;;  %v8835_v52 = vld [vmem:[%s12664_s3 + $0x7c4] sm:$0xf] }
 0x1c0   : > { %v7462_v23 = vld [vmem:[%s12664_s3 + $0x7c8] sm:$0xf0] }
 0x1c1   : > { %3351 = vmatpush.bf16.msra.mxu3 %v7273_v39  ;;  %3365 = vmatpush.bf16.msrb.mxu0 %v7337_v5  ;;  %v7437_v39 = vor.u32 %v8830_v55, %v7436_v21  ;;  %v7478_v5 = vld [vmem:[%s12664_s3 + $0x7e8] sm:$0xf0]  ;;  %v8867_v21 = vld [vmem:[%s12664_s3 + $0x8c4] sm:$0xf] }
 0x1c2   : > { %3708 = vmatpush.bf16.msrb.mxu2 %v7509_v26  ;;  %v3431_v26 = vunpack.c.l.b16 %v11485_v29  ;;  %v7550_v29 = vld [vmem:[%s12664_s3 + $0x878] sm:$0xf0]  ;;  %v7481_v27 = vor.u32 %v8839_v49, %v7478_v5  ;;  %v7590_v55 = vld [vmem:[%s12664_s3 + $0x8c8] sm:$0xf0]  ;;  %v8865_v5 = vld [vmem:[%s12664_s3 + $0x8b4] sm:$0xf] }
 0x1c3   : > { %3693 = vmatpush.bf16.msrb.mxu1 %v7453_v37  ;;  %v8857_v37 = vld [vmem:[%s12664_s3 + $0x874] sm:$0xf]  ;;  %v7454_v49 = vld [vmem:[%s12664_s3 + $0x7b8] sm:$0xf0] }
 0x1c4   : > { %v11595_v19 = vpack.c.b16 %v2999_v31, %v3431_v26  ;;  %v11609_v31 = vsel %vm1058_vm7, %v3440_v3, %v3441_v43  ;;  %v7553_v59 = vor.u32 %v8857_v37, %v7550_v29  ;;  %v7465_v3 = vor.u32 %v8835_v52, %v7462_v23  ;;  %v11720_v52 = vpop.f32.mrf.mxu2 }
 0x1c5   : > { %3352 = vmatpush.bf16.msra.mxu3 %v7265_v7  ;;  %3366 = vmatpush.bf16.msrb.mxu0 %v7329_v54  ;;  %v7596_v7 = vld [vmem:[%s12664_s3 + $0x8d0] sm:$0xf]  ;;  %v8869_v54 = vld [vmem:[%s12664_s3 + $0x8d4] sm:$0xf]  ;;  %v7593_v43 = vor.u32 %v8867_v21, %v7590_v55  ;;  %v7585_v29 = vor.u32 %v8865_v5, %v7582_v35  ;;  %v7438_v21 = vld [vmem:[%s12664_s3 + $0x798] sm:$0xf0] }
 0x1c6   : > { %3709 = vmatpush.bf16.msrb.mxu2 %v7501_v14  ;;  %v7598_v14 = vld [vmem:[%s12664_s3 + $0x8d8] sm:$0xf0]  ;;  %v8861_v55 = vld [vmem:[%s12664_s3 + $0x894] sm:$0xf]  ;;  %v8827_v5 = vld [vmem:[%s12664_s3 + $0x784] sm:$0xf] }
 0x1c7   : > { %3694 = vmatpush.bf16.msrb.mxu1 %v7445_v18  ;;  %v7597_v18 = vor.u32 %v8870_v13, %v7596_v7  ;;  %v7601_v22 = vor.u32 %v8869_v54, %v7598_v14  ;;  %v8831_v7 = vld [vmem:[%s12664_s3 + $0x7a4] sm:$0xf]  ;;  %v7574_v54 = vld [vmem:[%s12664_s3 + $0x8a8] sm:$0xf0]  ;;  %v8849_v14 = vld [vmem:[%s12664_s3 + $0x834] sm:$0xf] }
 0x1c8   : > { %v7430_v35 = vld [vmem:[%s12664_s3 + $0x788] sm:$0xf0] }
 0x1c9   : > { %3353 = vmatpush.bf16.msra.mxu3 %v7257_v48  ;;  %3367 = vmatpush.bf16.msrb.mxu0 %v7321_v32  ;;  %v7545_v48 = vor.u32 %v8855_v30, %v7542_v38  ;;  %v2487_v26 = vpop.f32.mrf.mxu0  ;;  %v3379_v38 = vld [vmem:[#allocation3 + $0x20] sm:$0xe] }
 0x1ca   : > { %3710 = vmatpush.bf16.msrb.mxu2 %v7493_v41  ;;  %v8853_v41 = vld [vmem:[%s12664_s3 + $0x854] sm:$0xf]  ;;  %v3433_v12 = vunpack.c.l.b16 %v3379_v38 }
 0x1cb   : > { %3695 = vmatpush.bf16.msrb.mxu1 %v7437_v39 }
 0x1cc   : > { %3354 = vmatmul.bf16.vlgmr.msra.gmra.mxu3 %v11373_v24  ;;  %3368 = vmatmul.bf16.vlgmr.msrb.gmra.mxu0 %v11423_v16  ;;  %v3437_v24 = vrot.slane %v11595_v19, 1  ;;  %v3438_v16 = vrot.slane %v11235_v45, 1  ;;  %v7588_v45 = vld [vmem:[%s12664_s3 + $0x8c0] sm:$0xf] }
 0x1cd   : > { %3717 = vmatpush.bf16.msrb.mxu3 %v7613_v42  ;;  %3731 = vmatpush.bf16.msra.mxu0 %v7489_v4  ;;  %v7534_v42 = vld [vmem:[%s12664_s3 + $0x858] sm:$0xf0]  ;;  %v7589_v4 = vor.u32 %v8868_v28, %v7588_v45  ;;  %v8862_v45 = vld [vmem:[%s12664_s3 + $0x894] sm:$0xf0]  ;;  %v8829_v28 = vld [vmem:[%s12664_s3 + $0x794] sm:$0xf] }
 0x1ce   : > { %3759 = vmatpush.bf16.msra.mxu2 %v7617_v47  ;;  %v11654_v32 = vsel %vm1058_vm7, %v3437_v24, %v3438_v16  ;;  %v8833_v47 = vld [vmem:[%s12664_s3 + $0x7b4] sm:$0xf]  ;;  %v7537_v39 = vor.u32 %v8853_v41, %v7534_v42  ;;  %v7518_v24 = vld [vmem:[%s12664_s3 + $0x838] sm:$0xf0]  ;;  %v8847_v42 = vld [vmem:[%s12664_s3 + $0x824] sm:$0xf] }
 0x1cf   : > { %3711 = vmatmul.bf16.vlgmr.msrb.gmra.mxu2 %v11609_v31  ;;  %3696 = vmatpush.bf16.msrb.mxu1 %v7429_v62  ;;  %v7457_v37 = vor.u32 %v8833_v47, %v7454_v49  ;;  %v8864_v62 = vld [vmem:[%s12664_s3 + $0x8a4] sm:$0xf0]  ;;  %v7521_v23 = vor.u32 %v8849_v14, %v7518_v24  ;;  %v7566_v41 = vld [vmem:[%s12664_s3 + $0x898] sm:$0xf0]  ;;  %v7441_v47 = vor.u32 %v8829_v28, %v7438_v21 }
 0x1d0   : > { %v11788_v14 = vld [vmem:[#allocation3 + $0x30] sm:$0x33] }
 0x1d1   : > { %3718 = vmatpush.bf16.msrb.mxu3 %v7605_v1  ;;  %3732 = vmatpush.bf16.msra.mxu0 %v7481_v27  ;;  %v2473_v1 = vpop.f32.mrf.mxu3  ;;  %v2501_v27 = vpop.f32.mrf.mxu1  ;;  %v8904_v21 = vld [vmem:[%s12664_s3 + $0x9e4] sm:$0xf0] }
 0x1d2   : > { %3760 = vmatpush.bf16.msra.mxu2 %v7609_v36  ;;  %3697 = vmatmul.bf16.vlgmr.msrb.gmra.mxu1 %v11654_v32  ;;  %v7572_v36 = vld [vmem:[%s12664_s3 + $0x8a0] sm:$0xf]  ;;  %v2488_v13 = vadd.f32 %v2487_v26, %v2473_v1  ;;  %v2489_v46 = vpop.f32.mrf.mxu0  ;;  %v8859_v26 = vld [vmem:[%s12664_s3 + $0x884] sm:$0xf]  ;;  %v11766_v1 = vpack.c.b16 %v3001_v11, %v3433_v12  ;;  %v8845_v11 = vld [vmem:[%s12664_s3 + $0x814] sm:$0xf]  ;;  %v11790_v24 = vpop.f32.mrf.mxu2 }
 0x1d3   : > { %3745 = vmatpush.bf16.msra.mxu1 %v7553_v59  ;;  %v7446_v59 = vld [vmem:[%s12664_s3 + $0x7a8] sm:$0xf0]  ;;  %v7573_v30 = vor.u32 %v8864_v62, %v7572_v36  ;;  %v7788_v36 = vld [vmem:[%s12664_s3 + $0x9f0] sm:$0xf]  ;;  %v8906_v62 = vld [vmem:[%s12664_s3 + $0x9f4] sm:$0xf0] }
 0x1d4   : > { %v2502_v16 = vadd.f32 %v2501_v27, %v2488_v13  ;;  %v3443_v38 = vrot.slane %v11766_v1, 1 }
 0x1d5   : > { %3719 = vmatpush.bf16.msrb.mxu3 %v7597_v18  ;;  %3733 = vmatpush.bf16.msra.mxu0 %v7473_v25  ;;  %v7449_v18 = vor.u32 %v8831_v7, %v7446_v59  ;;  %v7577_v25 = vor.u32 %v8863_v2, %v7574_v54  ;;  %v8889_v7 = vld [vmem:[%s12664_s3 + $0x974] sm:$0xf]  ;;  %v7502_v59 = vld [vmem:[%s12664_s3 + $0x818] sm:$0xf0]  ;;  %v7433_v2 = vor.u32 %v8827_v5, %v7430_v35  ;;  %v8886_v5 = vld [vmem:[%s12664_s3 + $0x954] sm:$0xf0] }
 0x1d6   : > { %3761 = vmatpush.bf16.msra.mxu2 %v7601_v22  ;;  %v7564_v22 = vld [vmem:[%s12664_s3 + $0x890] sm:$0xf]  ;;  %v7505_v28 = vor.u32 %v8845_v11, %v7502_v59  ;;  %v8884_v11 = vld [vmem:[%s12664_s3 + $0x944] sm:$0xf0]  ;;  %v7764_v59 = vld [vmem:[%s12664_s3 + $0x9c0] sm:$0xf] }
 0x1d7   : > { %3746 = vmatpush.bf16.msra.mxu1 %v7545_v48  ;;  %v11723_v48 = vadd.f32 %v2502_v16, %v11468_v40  ;;  %v7510_v40 = vld [vmem:[%s12664_s3 + $0x828] sm:$0xf0]  ;;  %v7772_v35 = vld [vmem:[%s12664_s3 + $0x9d0] sm:$0xf] }
 0x1d8   : > { %v7513_v57 = vor.u32 %v8847_v42, %v7510_v40  ;;  %v7494_v42 = vld [vmem:[%s12664_s3 + $0x808] sm:$0xf0]  ;;  %v7852_v40 = vld [vmem:[%s12664_s3 + $0xa70] sm:$0xf] }
 0x1d9   : > { %3720 = vmatpush.bf16.msrb.mxu3 %v7589_v4  ;;  %3734 = vmatpush.bf16.msra.mxu0 %v7465_v3  ;;  %v7565_v4 = vor.u32 %v8862_v45, %v7564_v22  ;;  %v7556_v3 = vld [vmem:[%s12664_s3 + $0x880] sm:$0xf]  ;;  %v2475_v49 = vpop.f32.mrf.mxu3  ;;  %v2503_v27 = vpop.f32.mrf.mxu1  ;;  %v8888_v22 = vld [vmem:[%s12664_s3 + $0x964] sm:$0xf0]  ;;  %v7729_v45 = vor.u32 %v8889_v7, %v7726_v51 }
 0x1da   : > { %3762 = vmatpush.bf16.msra.mxu2 %v7593_v43  ;;  %v8860_v43 = vld [vmem:[%s12664_s3 + $0x884] sm:$0xf0]  ;;  %v2490_v34 = vadd.f32 %v2489_v46, %v2475_v49  ;;  %v7708_v49 = vld [vmem:[%s12664_s3 + $0x950] sm:$0xf]  ;;  %v7700_v51 = vld [vmem:[%s12664_s3 + $0x940] sm:$0xf] }
 0x1db   : > { %3747 = vmatpush.bf16.msra.mxu1 %v7537_v39  ;;  %v7569_v39 = vor.u32 %v8861_v55, %v7566_v41  ;;  %v7718_v55 = vld [vmem:[%s12664_s3 + $0x968] sm:$0xf0]  ;;  %v8843_v41 = vld [vmem:[%s12664_s3 + $0x804] sm:$0xf] }
 0x1dc   : > { %v11777_v13 = vadd.f32 %v2503_v27, %v2490_v34  ;;  %v8902_v34 = vld [vmem:[%s12664_s3 + $0x9d4] sm:$0xf0]  ;;  %v7709_v27 = vor.u32 %v8886_v5, %v7708_v49  ;;  %v1709_v49 = vadd.f32 %v11400_v9, %v11273_v0  ;;  %v8880_v0 = vld [vmem:[%s12664_s3 + $0x924] sm:$0xf0]  ;;  %v7748_v9 = vld [vmem:[%s12664_s3 + $0x9a0] sm:$0xf] }
 0x1dd   : > { %3721 = vmatpush.bf16.msrb.mxu3 %v7581_v60  ;;  %3735 = vmatpush.bf16.msra.mxu0 %v7457_v37  ;;  %v7558_v60 = vld [vmem:[%s12664_s3 + $0x888] sm:$0xf0]  ;;  %v7724_v37 = vld [vmem:[%s12664_s3 + $0x970] sm:$0xf]  ;;  %v7773_v7 = vor.u32 %v8902_v34, %v7772_v35  ;;  %v3858_v34 = vshll.u32 %v11540_v50, 16 }
 0x1de   : > { %3763 = vmatpush.bf16.msra.mxu2 %v7585_v29  ;;  %v8890_v29 = vld [vmem:[%s12664_s3 + $0x974] sm:$0xf0]  ;;  %v7561_v54 = vor.u32 %v8859_v26, %v7558_v60  ;;  %v7710_v60 = vld [vmem:[%s12664_s3 + $0x958] sm:$0xf0] }
 0x1df   : > { %3748 = vmatpush.bf16.msra.mxu1 %v7529_v56  ;;  %v7557_v56 = vor.u32 %v8860_v43, %v7556_v3  ;;  %v7725_v16 = vor.u32 %v8890_v29, %v7724_v37  ;;  %v3830_v3 = vunpack.c.l.b16 %v11788_v14  ;;  %v7844_v37 = vld [vmem:[%s12664_s3 + $0xa60] sm:$0xf] }
 0x1e1   : > { %3722 = vmatpush.bf16.msrb.mxu3 %v7573_v30  ;;  %3736 = vmatpush.bf16.msra.mxu0 %v7449_v18  ;;  %v7789_v30 = vor.u32 %v8906_v62, %v7788_v36  ;;  %v3444_v18 = vrot.slane %v11335_v17, 1  ;;  %v8887_v17 = vld [vmem:[%s12664_s3 + $0x964] sm:$0xf]  ;;  %v3833_v29 = vpack.c.b16 %v3830_v3, %v3830_v3  ;;  %v3838_v36 = vshrl.u32 %v11595_v19, 16  ;;  %v7694_v3 = vld [vmem:[%s12664_s3 + $0x938] sm:$0xf0] }
 0x1e2   : > { %3764 = vmatpush.bf16.msra.mxu2 %v7577_v25  ;;  %v7716_v25 = vld [vmem:[%s12664_s3 + $0x960] sm:$0xf]  ;;  %v3841_v62 = vshll.u32 %v11595_v19, 16 }
 0x1e3   : > { %3749 = vmatpush.bf16.msra.mxu1 %v7521_v23  ;;  %v7780_v23 = vld [vmem:[%s12664_s3 + $0x9e0] sm:$0xf]  ;;  %v7717_v43 = vor.u32 %v8888_v22, %v7716_v25  ;;  %v3445_v46 = vsel %vm1058_vm7, %v3443_v38, %v3444_v18  ;;  %v7836_v38 = vld [vmem:[%s12664_s3 + $0xa50] sm:$0xf]  ;;  %v8918_v18 = vld [vmem:[%s12664_s3 + $0xa54] sm:$0xf0]  ;;  %v3831_v22 = vunpack.c.h.b16 %v11788_v14 }
 0x1e4   : > { %v7781_v12 = vor.u32 %v8904_v21, %v7780_v23  ;;  %v3846_v25 = vshrl.u32 %v3833_v29, 16  ;;  %v11883_v23 = vrot.slane %v3841_v62, 2  ;;  %v3849_v21 = vshll.u32 %v3833_v29, 16  ;;  %v8882_v14 = vld [vmem:[%s12664_s3 + $0x934] sm:$0xf0] }
 0x1e5   : > { %3723 = vmatpush.bf16.msrb.mxu3 %v7565_v4  ;;  %3737 = vmatpush.bf16.msra.mxu0 %v7441_v47  ;;  %v8922_v4 = vld [vmem:[%s12664_s3 + $0xa74] sm:$0xf0]  ;;  %v7721_v47 = vor.u32 %v8887_v17, %v7718_v55 }
 0x1e6   : > { %3765 = vmatpush.bf16.msra.mxu2 %v7569_v39  ;;  %v7497_v39 = vor.u32 %v8843_v41, %v7494_v42  ;;  %v7853_v26 = vor.u32 %v8922_v4, %v7852_v40  ;;  %v7692_v41 = vld [vmem:[%s12664_s3 + $0x930] sm:$0xf]  ;;  %v7837_v42 = vor.u32 %v8918_v18, %v7836_v38  ;;  %v8898_v40 = vld [vmem:[%s12664_s3 + $0x9b4] sm:$0xf0]  ;;  %v8881_v4 = vld [vmem:[%s12664_s3 + $0x934] sm:$0xf] }
 0x1e7   : > { %3750 = vmatpush.bf16.msra.mxu1 %v7513_v57  ;;  %v8885_v57 = vld [vmem:[%s12664_s3 + $0x954] sm:$0xf]  ;;  %v7693_v35 = vor.u32 %v8882_v14, %v7692_v41  ;;  %v8894_v14 = vld [vmem:[%s12664_s3 + $0x994] sm:$0xf0] }
 0x1e9   : > { %3724 = vmatpush.bf16.msrb.mxu3 %v7557_v56  ;;  %3738 = vmatpush.bf16.msra.mxu0 %v7433_v2  ;;  %v7713_v56 = vor.u32 %v8885_v57, %v7710_v60  ;;  %v11862_v2 = vpop.f32.mrf.mxu2  ;;  %v2543_v5 = vpop.f32.mrf.mxu0  ;;  %v11917_v57 = vld [vmem:[#allocation3 + $0x38] sm:$0x3] }
 0x1ea   : > { %3766 = vmatpush.bf16.msra.mxu2 %v7561_v54  ;;  %v8900_v54 = vld [vmem:[%s12664_s3 + $0x9c4] sm:$0xf0] }
 0x1eb   : > { %3751 = vmatpush.bf16.msra.mxu1 %v7505_v28  ;;  %v11881_v28 = vrot.slane %v3838_v36, 1  ;;  %v7765_v17 = vor.u32 %v8900_v54, %v7764_v59  ;;  %v8914_v59 = vld [vmem:[%s12664_s3 + $0xa34] sm:$0xf0] }
 0x1ec   : > { %3725 = vmatmul.bf16.vlgmr.msrb.gmra.mxu3 %v3445_v46  ;;  %3739 = vmatmul.bf16.vlgmr.msra.gmra.mxu0 %v11654_v32  ;;  %v8920_v32 = vld [vmem:[%s12664_s3 + $0xa64] sm:$0xf0] }
 0x1ed   : > { %4131 = vmatpush.bf16.msra.mxu3 %v7725_v16  ;;  %4145 = vmatpush.bf16.msrb.mxu0 %v7789_v30  ;;  %v7845_v19 = vor.u32 %v8920_v32, %v7844_v37  ;;  %v8883_v16 = vld [vmem:[%s12664_s3 + $0x944] sm:$0xf]  ;;  %v7702_v30 = vld [vmem:[%s12664_s3 + $0x948] sm:$0xf0]  ;;  %v7697_v37 = vor.u32 %v8881_v4, %v7694_v3  ;;  %v8912_v4 = vld [vmem:[%s12664_s3 + $0xa24] sm:$0xf0] }
 0x1ee   : > { %4173 = vmatpush.bf16.msrb.mxu2 %v7729_v45  ;;  %v7701_v45 = vor.u32 %v8884_v11, %v7700_v51  ;;  %v7705_v55 = vor.u32 %v8883_v16, %v7702_v30  ;;  %v7686_v51 = vld [vmem:[%s12664_s3 + $0x928] sm:$0xf0]  ;;  %v1723_v16 = vadd.f32 %v11360_v58, %v1709_v49  ;;  %v7740_v58 = vld [vmem:[%s12664_s3 + $0x990] sm:$0xf]  ;;  %v11978_v3 = vrot.slane %v3858_v34, 2 }
 0x1ef   : > { %3767 = vmatmul.bf16.vlgmr.msra.gmra.mxu2 %v3445_v46  ;;  %3752 = vmatpush.bf16.msra.mxu1 %v7497_v39  ;;  %v11909_v46 = vrot.slane %v3846_v25, 1  ;;  %v3855_v39 = vshrl.u32 %v11540_v50, 16  ;;  %v2529_v32 = vpop.f32.mrf.mxu3  ;;  %v2856_v29 = vpop.f32.mrf.mxu1 }
 0x1f0   : > { %v2530_v50 = vadd.f32 %v2529_v32, %v11790_v24  ;;  %v7820_v24 = vld [vmem:[%s12664_s3 + $0xa30] sm:$0xf] }
 0x1f1   : > { %4132 = vmatpush.bf16.msra.mxu3 %v7717_v43  ;;  %4146 = vmatpush.bf16.msrb.mxu0 %v7781_v12  ;;  %v7828_v43 = vld [vmem:[%s12664_s3 + $0xa40] sm:$0xf]  ;;  %v8916_v12 = vld [vmem:[%s12664_s3 + $0xa44] sm:$0xf0]  ;;  %v7821_v41 = vor.u32 %v8914_v59, %v7820_v24  ;;  %v3844_v24 = vor.u32 %v11883_v23, %v11881_v28 }
 0x1f2   : > { %4174 = vmatpush.bf16.msrb.mxu2 %v7721_v47  ;;  %3753 = vmatmul.bf16.vlgmr.msra.gmra.mxu1 %v11609_v31  ;;  %v7756_v31 = vld [vmem:[%s12664_s3 + $0x9b0] sm:$0xf]  ;;  %v3834_v47 = vpack.c.b16 %v3831_v22, %v3831_v22  ;;  %v2870_v36 = vpop.f32.mrf.mxu2  ;;  %v7829_v62 = vor.u32 %v8916_v12, %v7828_v43  ;;  %v2544_v30 = vadd.f32 %v2543_v5, %v2530_v50  ;;  %v3872_v43 = vshrl.u32 %v11766_v1, 16  ;;  %v7670_v50 = vld [vmem:[%s12664_s3 + $0x908] sm:$0xf0] }
 0x1f3   : > { %4159 = vmatpush.bf16.msrb.mxu1 %v7853_v26  ;;  %v11914_v26 = vrot.slane %v3849_v21, 2  ;;  %v7757_v60 = vor.u32 %v8898_v40, %v7756_v31  ;;  %v11938_v11 = vadd.f32 %v2870_v36, %v2856_v29  ;;  %v8878_v21 = vld [vmem:[%s12664_s3 + $0x914] sm:$0xf0]  ;;  %v8877_v31 = vld [vmem:[%s12664_s3 + $0x914] sm:$0xf]  ;;  %v7741_v5 = vor.u32 %v8894_v14, %v7740_v58 }
 0x1f4   : > { %v3863_v54 = vshrl.u32 %v3834_v47, 16  ;;  %v3866_v18 = vshll.u32 %v3834_v47, 16  ;;  %v11970_v40 = vadd.f32 %v2544_v30, %v11496_v61  ;;  %v7668_v61 = vld [vmem:[%s12664_s3 + $0x900] sm:$0xf]  ;;  %v8905_v36 = vld [vmem:[%s12664_s3 + $0x9f4] sm:$0xf] }
 0x1f5   : > { %4133 = vmatpush.bf16.msra.mxu3 %v7709_v27  ;;  %4147 = vmatpush.bf16.msrb.mxu0 %v7773_v7  ;;  %v7684_v27 = vld [vmem:[%s12664_s3 + $0x920] sm:$0xf]  ;;  %v8896_v7 = vld [vmem:[%s12664_s3 + $0x9a4] sm:$0xf0]  ;;  %v7804_v30 = vld [vmem:[%s12664_s3 + $0xa10] sm:$0xf] }
 0x1f6   : > { %4175 = vmatpush.bf16.msrb.mxu2 %v7713_v56  ;;  %v8879_v56 = vld [vmem:[%s12664_s3 + $0x924] sm:$0xf]  ;;  %v7685_v38 = vor.u32 %v8880_v0, %v7684_v27  ;;  %v7749_v25 = vor.u32 %v8896_v7, %v7748_v9  ;;  %v11987_v49 = vrot.slane %v3866_v18, 2  ;;  %v3875_v18 = vshll.u32 %v11766_v1, 16  ;;  %v7782_v14 = vld [vmem:[%s12664_s3 + $0x9e8] sm:$0xf0] }
 0x1f7   : > { %4160 = vmatpush.bf16.msrb.mxu1 %v7845_v19  ;;  %v11946_v19 = vrot.slane %v3855_v39, 1  ;;  %v7689_v22 = vor.u32 %v8879_v56, %v7686_v51  ;;  %v11985_v39 = vrot.slane %v3863_v54, 1  ;;  %v2531_v34 = vpop.f32.mrf.mxu3  ;;  %v8875_v9 = vld [vmem:[%s12664_s3 + $0x904] sm:$0xf]  ;;  %v8921_v56 = vld [vmem:[%s12664_s3 + $0xa74] sm:$0xf] }
 0x1f8   : > { %v2532_v29 = vadd.f32 %v2531_v34, %v11862_v2  ;;  %v7790_v2 = vld [vmem:[%s12664_s3 + $0x9f8] sm:$0xf0]  ;;  %v8903_v58 = vld [vmem:[%s12664_s3 + $0x9e4] sm:$0xf] }
 0x1f9   : > { %4134 = vmatpush.bf16.msra.mxu3 %v7701_v45  ;;  %4148 = vmatpush.bf16.msrb.mxu0 %v7765_v17  ;;  %v7676_v45 = vld [vmem:[%s12664_s3 + $0x910] sm:$0xf]  ;;  %v3832_v17 = vunpack.c.l.b16 %v11917_v57  ;;  %v2858_v57 = vpop.f32.mrf.mxu1  ;;  %v7854_v51 = vld [vmem:[%s12664_s3 + $0xa78] sm:$0xf0]  ;;  %v3861_v1 = vor.u32 %v11978_v3, %v11946_v19  ;;  %v7796_v19 = vld [vmem:[%s12664_s3 + $0xa00] sm:$0xf] }
 0x1fa   : > { %4176 = vmatpush.bf16.msrb.mxu2 %v7705_v55  ;;  %v2081_v55 = vadd.f32 %v11620_v33, %v1723_v16  ;;  %v7812_v33 = vld [vmem:[%s12664_s3 + $0xa20] sm:$0xf]  ;;  %v7677_v47 = vor.u32 %v8878_v21, %v7676_v45  ;;  %v2872_v27 = vpop.f32.mrf.mxu2  ;;  %v7857_v45 = vor.u32 %v8921_v56, %v7854_v51  ;;  %v3852_v21 = vor.u32 %v11914_v26, %v11909_v46  ;;  %v8919_v46 = vld [vmem:[%s12664_s3 + $0xa64] sm:$0xf]  ;;  %v7846_v26 = vld [vmem:[%s12664_s3 + $0xa68] sm:$0xf0] }
 0x1fb   : > { %4161 = vmatpush.bf16.msrb.mxu1 %v7837_v42  ;;  %v7678_v42 = vld [vmem:[%s12664_s3 + $0x918] sm:$0xf0]  ;;  %v3835_v32 = vpack.c.b16 %v3832_v17, %v3832_v17  ;;  %v7813_v0 = vor.u32 %v8912_v4, %v7812_v33  ;;  %v12008_v7 = vadd.f32 %v2872_v27, %v2858_v57  ;;  %v3877_v33 = vrot.slane %v3875_v18, 2  ;;  %v8915_v27 = vld [vmem:[%s12664_s3 + $0xa44] sm:$0xf] }
 0x1fc   : > { %v2095_v12 = vadd.f32 %v11633_v44, %v2081_v55  ;;  %v8876_v44 = vld [vmem:[%s12664_s3 + $0x904] sm:$0xf0]  ;;  %v7838_v34 = vld [vmem:[%s12664_s3 + $0xa58] sm:$0xf0]  ;;  %v7750_v18 = vld [vmem:[%s12664_s3 + $0x9a8] sm:$0xf0] }
 0x1fd   : > { %4135 = vmatpush.bf16.msra.mxu3 %v7693_v35  ;;  %4149 = vmatpush.bf16.msrb.mxu0 %v7757_v60  ;;  %v7681_v35 = vor.u32 %v8877_v31, %v7678_v42  ;;  %v7732_v60 = vld [vmem:[%s12664_s3 + $0x980] sm:$0xf]  ;;  %v7669_v16 = vor.u32 %v8876_v44, %v7668_v61  ;;  %v3880_v28 = vshrl.u32 %v3835_v32, 16  ;;  %v3883_v23 = vshll.u32 %v3835_v32, 16  ;;  %v8908_v31 = vld [vmem:[%s12664_s3 + $0xa04] sm:$0xf0] }
 0x1fe   : > { %4177 = vmatpush.bf16.msrb.mxu2 %v7697_v37  ;;  %v8892_v37 = vld [vmem:[%s12664_s3 + $0x984] sm:$0xf0]  ;;  %v2109_v59 = vadd.f32 %v11720_v52, %v2095_v12  ;;  %v7793_v52 = vor.u32 %v8905_v36, %v7790_v2  ;;  %v3874_v42 = vrot.slane %v3872_v43, 1  ;;  %v3853_v12 = vsel %vm3836_vm13, %v3844_v24, %v3852_v21  ;;  %v7774_v43 = vld [vmem:[%s12664_s3 + $0x9d8] sm:$0xf0] }
 0x1ff   : > { %4162 = vmatpush.bf16.msrb.mxu1 %v7829_v62  ;;  %v2545_v62 = vpop.f32.mrf.mxu0  ;;  %v3882_v4 = vrot.slane %v3880_v28, 1  ;;  %v3885_v3 = vrot.slane %v3883_v23, 2  ;;  %v7849_v61 = vor.u32 %v8919_v46, %v7846_v26  ;;  %v8899_v32 = vld [vmem:[%s12664_s3 + $0x9c4] sm:$0xf]  ;;  %v8897_v2 = vld [vmem:[%s12664_s3 + $0x9b4] sm:$0xf] }
 0x200   : > { %v2546_v54 = vadd.f32 %v2545_v62, %v2532_v29  ;;  %v3878_v57 = vor.u32 %v3877_v33, %v3874_v42  ;;  %v7766_v29 = vld [vmem:[%s12664_s3 + $0x9c8] sm:$0xf0]  ;;  %v7758_v56 = vld [vmem:[%s12664_s3 + $0x9b8] sm:$0xf0]  ;;  %v8913_v24 = vld [vmem:[%s12664_s3 + $0xa34] sm:$0xf] }
 0x201   : > { %4136 = vmatpush.bf16.msra.mxu3 %v7685_v38  ;;  %4150 = vmatpush.bf16.msrb.mxu0 %v7749_v25  ;;  %v8910_v38 = vld [vmem:[%s12664_s3 + $0xa14] sm:$0xf0]  ;;  %v7733_v25 = vor.u32 %v8892_v37, %v7732_v60  ;;  %v3886_v44 = vor.u32 %v3885_v3, %v3882_v4  ;;  %v7769_v36 = vor.u32 %v8899_v32, %v7766_v29  ;;  %v8911_v23 = vld [vmem:[%s12664_s3 + $0xa24] sm:$0xf]  ;;  %v7734_v33 = vld [vmem:[%s12664_s3 + $0x988] sm:$0xf0] }
 0x202   : > { %4178 = vmatpush.bf16.msrb.mxu2 %v7689_v22  ;;  %v7673_v22 = vor.u32 %v8875_v9, %v7670_v50  ;;  %v12034_v17 = vadd.f32 %v2546_v54, %v2109_v59  ;;  %v7805_v55 = vor.u32 %v8910_v38, %v7804_v30  ;;  %v1667_v50 = vadd.f32 %v11207_v63, %v11258_v8  ;;  %v7822_v63 = vld [vmem:[%s12664_s3 + $0xa38] sm:$0xf0]  ;;  %v8895_v38 = vld [vmem:[%s12664_s3 + $0x9a4] sm:$0xf] }
 0x203   : > { %4163 = vmatpush.bf16.msrb.mxu1 %v7821_v41  ;;  %v3869_v41 = vor.u32 %v11987_v49, %v11985_v39  ;;  %v7797_v49 = vor.u32 %v8908_v31, %v7796_v19  ;;  %v12085_v9 = vsel %vm3836_vm13, %v3878_v57, %v3886_v44  ;;  %v7761_v59 = vor.u32 %v8897_v2, %v7758_v56  ;;  %v8942_v2 = vld [vmem:[%s12666_s5 + $0x98] sm:$0xff] }
 0x204   : > { %v1681_v8 = vadd.f32 %v11271_v10, %v1667_v50  ;;  %v7825_v54 = vor.u32 %v8913_v24, %v7822_v63  ;;  %v8930_v56 = vld [vmem:[%s12666_s5 + $0x38] sm:$0xff] }
 0x205   : > { %4137 = vmatpush.bf16.msra.mxu3 %v7677_v47  ;;  %4151 = vmatpush.bf16.msrb.mxu0 %v7741_v5  ;;  %v7785_v47 = vor.u32 %v8903_v58, %v7782_v14  ;;  %v12057_v39 = vsel %vm3836_vm13, %v3861_v1, %v3869_v41  ;;  %v8901_v5 = vld [vmem:[%s12664_s3 + $0x9d4] sm:$0xf]  ;;  %v7753_v58 = vor.u32 %v8895_v38, %v7750_v18  ;;  %v7806_v14 = vld [vmem:[%s12664_s3 + $0xa18] sm:$0xf0]  ;;  %v8952_v38 = vld [vmem:[%s12666_s5 + $0xe8] sm:$0xff] }
 0x206   : > { %4179 = vmatpush.bf16.msrb.mxu2 %v7681_v35  ;;  %v8917_v35 = vld [vmem:[%s12664_s3 + $0xa54] sm:$0xf]  ;;  %v7777_v60 = vor.u32 %v8901_v5, %v7774_v43 }
 0x207   : > { %4164 = vmatpush.bf16.msrb.mxu1 %v7813_v0  ;;  %v7841_v37 = vor.u32 %v8917_v35, %v7838_v34  ;;  %v7830_v0 = vld [vmem:[%s12664_s3 + $0xa48] sm:$0xf0]  ;;  %v8941_v18 = vld [vmem:[%s12666_s5 + $0x90] sm:$0xff] }
 0x208   : > { %v7833_v62 = vor.u32 %v8915_v27, %v7830_v0 }
 0x209   : > { %4138 = vmatpush.bf16.msra.mxu3 %v7669_v16  ;;  %4152 = vmatpush.bf16.msrb.mxu0 %v7733_v25  ;;  %v2898_v51 = vpop.f32.mrf.mxu0  ;;  %v2039_v25 = vadd.f32 %v11402_v53, %v1681_v8 }
 0x20a   : > { %4180 = vmatpush.bf16.msrb.mxu2 %v7673_v22 }
 0x20b   : > { %4165 = vmatpush.bf16.msrb.mxu1 %v7805_v55  ;;  %v7742_v55 = vld [vmem:[%s12664_s3 + $0x998] sm:$0xf0]  ;;  %v2053_v1 = vadd.f32 %v11425_v6, %v2039_v25  ;;  %v8929_v25 = vld [vmem:[%s12666_s5 + $0x30] sm:$0xff] }
 0x20c   : > { %4139 = vmatmul.bf16.vlgmr.msra.gmra.mxu3 %v3853_v12  ;;  %4153 = vmatmul.bf16.vlgmr.msrb.gmra.mxu0 %v12057_v39 }
 0x20d   : > { %4187 = vmatpush.bf16.msrb.mxu3 %v7793_v52  ;;  %4201 = vmatpush.bf16.msra.mxu0 %v7857_v45  ;;  %v7814_v52 = vld [vmem:[%s12664_s3 + $0xa28] sm:$0xf0]  ;;  %v2067_v46 = vadd.f32 %v11631_v20, %v2053_v1 }
 0x20e   : > { %4181 = vmatmul.bf16.vlgmr.msrb.gmra.mxu2 %v3853_v12  ;;  %v7817_v53 = vor.u32 %v8911_v23, %v7814_v52  ;;  %v8907_v12 = vld [vmem:[%s12664_s3 + $0xa04] sm:$0xf]  ;;  %v8940_v23 = vld [vmem:[%s12666_s5 + $0x88] sm:$0xff] }
 0x20f   : > { %4166 = vmatpush.bf16.msrb.mxu1 %v7797_v49  ;;  %v2884_v16 = vpop.f32.mrf.mxu3  ;;  %v2912_v30 = vpop.f32.mrf.mxu1  ;;  %v2550_v4 = vadd.f32 %v11777_v13, %v2067_v46  ;;  %v8928_v52 = vld [vmem:[%s12666_s5 + $0x28] sm:$0xff]  ;;  %v8938_v46 = vld [vmem:[%s12666_s5 + $0x78] sm:$0xff] }
 0x210   : > { %v2885_v22 = vadd.f32 %v2884_v16, %v11938_v11  ;;  %v2913_v28 = vadd.f32 %v2912_v30, %v2898_v51  ;;  %v8893_v11 = vld [vmem:[%s12664_s3 + $0x994] sm:$0xf] }
 0x211   : > { %4188 = vmatpush.bf16.msrb.mxu3 %v7785_v47  ;;  %4202 = vmatpush.bf16.msra.mxu0 %v7849_v61  ;;  %v2900_v26 = vpop.f32.mrf.mxu0  ;;  %v7745_v19 = vor.u32 %v8893_v11, %v7742_v55  ;;  %v7798_v47 = vld [vmem:[%s12664_s3 + $0xa08] sm:$0xf0]  ;;  %v8939_v11 = vld [vmem:[%s12666_s5 + $0x80] sm:$0xff] }
 0x212   : > { %4167 = vmatmul.bf16.vlgmr.msrb.gmra.mxu1 %v12085_v9  ;;  %v2926_v10 = vpop.f32.mrf.mxu2  ;;  %v12118_v45 = vadd.f32 %v2885_v22, %v11723_v48  ;;  %v8909_v48 = vld [vmem:[%s12664_s3 + $0xa14] sm:$0xf]  ;;  %v7801_v35 = vor.u32 %v8907_v12, %v7798_v47  ;;  %v8927_v55 = vld [vmem:[%s12666_s5 + $0x20] sm:$0xff] }
 0x213   : > { %v2927_v21 = vadd.f32 %v2926_v10, %v2913_v28  ;;  %v7809_v31 = vor.u32 %v8909_v48, %v7806_v14  ;;  %4425 = vmatpush.bf16.msra.mxu1 %v8942_v2  ;;  %v8951_v10 = vld [vmem:[%s12666_s5 + $0xe0] sm:$0xff]  ;;  %v8946_v48 = vld [vmem:[%s12666_s5 + $0xb8] sm:$0xff]  ;;  %v8949_v14 = vld [vmem:[%s12666_s5 + $0xd0] sm:$0xff] }
 0x214   : > { %4443 = vmatpush.bf16.msra.mxu2 %v8946_v48 }
 0x215   : > { %4189 = vmatpush.bf16.msrb.mxu3 %v7777_v60  ;;  %4203 = vmatpush.bf16.msra.mxu0 %v7841_v37  ;;  %v12128_v41 = vadd.f32 %v2927_v21, %v11970_v40  ;;  %v8891_v40 = vld [vmem:[%s12664_s3 + $0x984] sm:$0xf] }
 0x216   : > { %v7737_v43 = vor.u32 %v8891_v40, %v7734_v33 }
 0x217   : > { %v2886_v42 = vpop.f32.mrf.mxu3  ;;  %v2914_v6 = vpop.f32.mrf.mxu1  ;;  %4426 = vmatpush.bf16.msra.mxu1 %v8941_v18 }
 0x218   : > { %v2887_v3 = vadd.f32 %v2886_v42, %v12008_v7  ;;  %v2915_v20 = vadd.f32 %v2914_v6, %v2900_v26  ;;  %v8926_v42 = vld [vmem:[%s12666_s5 + $0x18] sm:$0xff]  ;;  %v8945_v6 = vld [vmem:[%s12666_s5 + $0xb0] sm:$0xff] }
 0x219   : > { %4190 = vmatpush.bf16.msrb.mxu3 %v7769_v36  ;;  %4204 = vmatpush.bf16.msra.mxu0 %v7833_v62  ;;  %v8953_v62 = vld [vmem:[%s12666_s5 + $0xf0] sm:$0xff] }
 0x21a   : > { %v2928_v61 = vpop.f32.mrf.mxu2  ;;  %v12151_v49 = vadd.f32 %v2887_v3, %v2550_v4  ;;  %4444 = vmatpush.bf16.msra.mxu2 %v8945_v6 }
 0x21b   : > { %v2929_v5 = vadd.f32 %v2928_v61, %v2915_v20  ;;  %4427 = vmatpush.bf16.msra.mxu1 %v8940_v23  ;;  %v8948_v61 = vld [vmem:[%s12666_s5 + $0xc8] sm:$0xff] }
 0x21d   : > { %4191 = vmatpush.bf16.msrb.mxu3 %v7761_v59  ;;  %4205 = vmatpush.bf16.msra.mxu0 %v7825_v54  ;;  %v12154_v13 = vadd.f32 %v2929_v5, %v12034_v17  ;;  %v8937_v5 = vld [vmem:[%s12666_s5 + $0x70] sm:$0xff] }
 0x21f   : > { %4428 = vmatpush.bf16.msra.mxu1 %v8939_v11 }
 0x221   : > { %4192 = vmatpush.bf16.msrb.mxu3 %v7753_v58  ;;  %4206 = vmatpush.bf16.msra.mxu0 %v7817_v53  ;;  %v8950_v53 = vld [vmem:[%s12666_s5 + $0xd8] sm:$0xff] }
 0x223   : > { %4429 = vmatpush.bf16.msra.mxu1 %v8938_v46 }
 0x225   : > { %4193 = vmatpush.bf16.msrb.mxu3 %v7745_v19  ;;  %4207 = vmatpush.bf16.msra.mxu0 %v7809_v31 }
 0x227   : > { %4430 = vmatpush.bf16.msra.mxu1 %v8937_v5 }
 0x229   : > { %4194 = vmatpush.bf16.msrb.mxu3 %v7737_v43  ;;  %4208 = vmatpush.bf16.msra.mxu0 %v7801_v35  ;;  %v3313_v7 = vpop.f32.mrf.mxu0  ;;  %v8925_v35 = vld [vmem:[%s12666_s5 + $0x10] sm:$0xff] }
 0x22c   : > { %4195 = vmatmul.bf16.vlgmr.msrb.gmra.mxu3 %v12057_v39  ;;  %4209 = vmatmul.bf16.vlgmr.msra.gmra.mxu0 %v12085_v9  ;;  %v8954_v39 = vld [vmem:[%s12666_s5 + $0xf8] sm:$0xff] }
 0x22d   : > { %4682 = vmatpush.bf16.msrb.mxu0 %v8954_v39  ;;  %4541 = vmatpush.bf16.msra.mxu3 %v8930_v56  ;;  %v8947_v39 = vld [vmem:[%s12666_s5 + $0xc0] sm:$0xff]  ;;  %v8990_v56 = vld [vmem:[%s12666_s5 + $0x218] sm:$0xff] }
 0x22f   : > { %v3299_v34 = vpop.f32.mrf.mxu3  ;;  %v3327_v60 = vpop.f32.mrf.mxu1 }
 0x230   : > { %v3314_v58 = vadd.f32 %v3313_v7, %v3299_v34  ;;  %v8944_v7 = vld [vmem:[%s12666_s5 + $0xa8] sm:$0xff] }
 0x231   : > { %v12158_v57 = vpop.f32.mrf.mxu0  ;;  %4683 = vmatpush.bf16.msrb.mxu0 %v8953_v62  ;;  %4542 = vmatpush.bf16.msra.mxu3 %v8929_v25  ;;  %v8935_v25 = vld [vmem:[%s12666_s5 + $0x60] sm:$0xff] }
 0x232   : > { %v3341_v37 = vpop.f32.mrf.mxu2  ;;  %v3328_v40 = vadd.f32 %v3327_v60, %v3314_v58  ;;  %4445 = vmatpush.bf16.msra.mxu2 %v8944_v7  ;;  %v8931_v7 = vld [vmem:[%s12666_s5 + $0x40] sm:$0xff] }
 0x234   : > { %v3374_v34 = vadd.f32 %v3328_v40, %v12118_v45  ;;  %v8936_v45 = vld [vmem:[%s12666_s5 + $0x68] sm:$0xff]  ;;  %v12393_v40 = vld [vmem:[#allocation4 + $0x20] sm:$0x11] }
 0x235   : > { %4684 = vmatpush.bf16.msrb.mxu0 %v8952_v38  ;;  %4543 = vmatpush.bf16.msra.mxu3 %v8928_v52 }
 0x236   : > { %4431 = vmatpush.bf16.msra.mxu1 %v8936_v45 }
 0x237   : > { %v12160_v44 = vpop.f32.mrf.mxu3  ;;  %v12164_v27 = vpop.f32.mrf.mxu1 }
 0x238   : > { %v3316_v20 = vadd.f32 %v12158_v57, %v12160_v44  ;;  %v12257_v44 = vld [vmem:[%s12665_s4] sm:$0x3] }
 0x239   : > { %4685 = vmatpush.bf16.msrb.mxu0 %v8951_v10  ;;  %4544 = vmatpush.bf16.msra.mxu3 %v8927_v55  ;;  %v4222_v18 = vperm.slane %v12257_v44, 1  ;;  %v8923_v10 = vld [vmem:[%s12666_s5] sm:$0xff] }
 0x23a   : > { %v12166_v17 = vpop.f32.mrf.mxu2  ;;  %4432 = vmatpush.bf16.msra.mxu1 %v8935_v25 }
 0x23d   : > { %4686 = vmatpush.bf16.msrb.mxu0 %v8950_v53  ;;  %4545 = vmatpush.bf16.msra.mxu3 %v8926_v42  ;;  %v8933_v53 = vld [vmem:[%s12666_s5 + $0x50] sm:$0xff] }
 0x241   : > { %4687 = vmatpush.bf16.msrb.mxu0 %v8949_v14  ;;  %4546 = vmatpush.bf16.msra.mxu3 %v8925_v35  ;;  %v8968_v35 = vld [vmem:[%s12666_s5 + $0x168] sm:$0xff] }
 0x245   : > { %4688 = vmatpush.bf16.msrb.mxu0 %v8948_v61 }
 0x249   : > { %v12162_v32 = vpop.f32.mrf.mxu0  ;;  %4689 = vmatpush.bf16.msrb.mxu0 %v8947_v39 }
 0x24d   : > { %5157 = vmatpush.bf16.msra.mxu0 %v8990_v56 }
 0x24f   : > { %v3355_v29 = vpop.f32.mrf.mxu3  ;;  %v3698_v50 = vpop.f32.mrf.mxu1 }
 0x250   : > { %v3356_v26 = vadd.f32 %v3355_v29, %v3341_v37  ;;  %v3330_v37 = vadd.f32 %v12164_v27, %v3316_v20 }
 0x251   : > { %v12171_v0 = vpop.f32.mrf.mxu0 }
 0x252   : > { %v3712_v36 = vpop.f32.mrf.mxu2  ;;  %v3370_v43 = vadd.f32 %v12162_v32, %v3356_v26  ;;  %v8988_v26 = vld [vmem:[%s12666_s5 + $0x208] sm:$0xff] }
 0x253   : > { %v3713_v33 = vadd.f32 %v3712_v36, %v3698_v50 }
 0x254   : > { %v3375_v36 = vadd.f32 %v3370_v43, %v12128_v41  ;;  %v8943_v41 = vld [vmem:[%s12666_s5 + $0xa0] sm:$0xff]  ;;  %v8956_v43 = vld [vmem:[%s12666_s5 + $0x108] sm:$0xff] }
 0x255   : > { %4446 = vmatpush.bf16.msra.mxu2 %v8943_v41 }
 0x257   : > { %v12173_v9 = vpop.f32.mrf.mxu3  ;;  %v12184_v63 = vpop.f32.mrf.mxu1 }
 0x258   : > { %v3358_v50 = vadd.f32 %v12173_v9, %v12166_v17  ;;  %v4221_v9 = vperm.slane %v12257_v44, 0  ;;  %v8986_v44 = vld [vmem:[%s12666_s5 + $0x1f8] sm:$0xff] }
 0x25a   : > { %v12186_v8 = vpop.f32.mrf.mxu2 }
 0x25b   : > { %v3715_v27 = vadd.f32 %v12186_v8, %v12184_v63 }
 0x269   : > { %v3740_v51 = vpop.f32.mrf.mxu0 }
 0x26f   : > { %v3726_v24 = vpop.f32.mrf.mxu3  ;;  %v3754_v16 = vpop.f32.mrf.mxu1 }
 0x270   : > { %v3727_v12 = vadd.f32 %v3726_v24, %v3713_v33  ;;  %v3755_v47 = vadd.f32 %v3754_v16, %v3740_v51  ;;  %v8924_v51 = vld [vmem:[%s12666_s5 + $0x8] sm:$0xff]  ;;  %v8934_v16 = vld [vmem:[%s12666_s5 + $0x58] sm:$0xff] }
 0x271   : > { %v12188_v59 = vpop.f32.mrf.mxu0  ;;  %4547 = vmatpush.bf16.msra.mxu3 %v8924_v51  ;;  %4559 = vmatpush.bf16.msrb.mxu2 %v8934_v16 }
 0x272   : > { %v3768_v30 = vpop.f32.mrf.mxu2  ;;  %v3773_v32 = vadd.f32 %v3727_v12, %v3374_v34 }
 0x273   : > { %v3769_v29 = vadd.f32 %v3768_v30, %v3755_v47  ;;  %v8987_v47 = vld [vmem:[%s12666_s5 + $0x200] sm:$0xff] }
 0x275   : > { %v3774_v30 = vadd.f32 %v3769_v29, %v3375_v36  ;;  %4548 = vmatpush.bf16.msra.mxu3 %v8923_v10  ;;  %4560 = vmatpush.bf16.msrb.mxu2 %v8933_v53  ;;  %v8967_v29 = vld [vmem:[%s12666_s5 + $0x160] sm:$0xff]  ;;  %v4569_v36 = vld [vmem:[#allocation4 + $0x8] sm:$0x88] }
 0x277   : > { %v12190_v54 = vpop.f32.mrf.mxu3  ;;  %v12210_v21 = vpop.f32.mrf.mxu1 }
 0x278   : > { %v3729_v8 = vadd.f32 %v12190_v54, %v3715_v27  ;;  %v3757_v38 = vadd.f32 %v12210_v21, %v12188_v59  ;;  %v3372_v54 = vadd.f32 %v12171_v0, %v3358_v50  ;;  %v8989_v59 = vld [vmem:[%s12666_s5 + $0x210] sm:$0xff]  ;;  %v8970_v0 = vld [vmem:[%s12666_s5 + $0x178] sm:$0xff] }
 0x279   : > { %5158 = vmatpush.bf16.msra.mxu0 %v8989_v59  ;;  %4871 = vmatpush.bf16.msrb.mxu3 %v8970_v0  ;;  %v4597_v59 = vunpack.c.h.b16 %v4569_v36 }
 0x27a   : > { %v12221_v1 = vpop.f32.mrf.mxu2  ;;  %v3377_v48 = vadd.f32 %v3372_v54, %v12154_v13  ;;  %v8969_v13 = vld [vmem:[%s12666_s5 + $0x170] sm:$0xff] }
 0x27b   : > { %v3771_v11 = vadd.f32 %v12221_v1, %v3757_v38  ;;  %v8957_v1 = vld [vmem:[%s12666_s5 + $0x110] sm:$0xff] }
 0x27d   : > { %5159 = vmatpush.bf16.msra.mxu0 %v8988_v26  ;;  %4872 = vmatpush.bf16.msrb.mxu3 %v8969_v13 }
 0x281   : > { %5160 = vmatpush.bf16.msra.mxu0 %v8987_v47  ;;  %4873 = vmatpush.bf16.msrb.mxu3 %v8968_v35  ;;  %v8978_v35 = vld [vmem:[%s12666_s5 + $0x1b8] sm:$0xff] }
 0x285   : > { %5161 = vmatpush.bf16.msra.mxu0 %v8986_v44  ;;  %4874 = vmatpush.bf16.msrb.mxu3 %v8967_v29 }
 0x289   : > { %v4154_v22 = vpop.f32.mrf.mxu0 }
 0x28f   : > { %v4140_v28 = vpop.f32.mrf.mxu3  ;;  %v4168_v3 = vpop.f32.mrf.mxu1 }
 0x290   : > { %v4155_v4 = vadd.f32 %v4154_v22, %v4140_v28  ;;  %v3376_v22 = vadd.f32 %v3330_v37, %v12151_v49  ;;  %v8958_v49 = vld [vmem:[%s12666_s5 + $0x118] sm:$0xff] }
 0x291   : > { %v4156_v19 = vpop.f32.mrf.mxu0  ;;  %v4182_v60 = vpop.f32.mrf.mxu2  ;;  %4700 = vmatpush.bf16.msrb.mxu1 %v8958_v49 }
 0x292   : > { %v4169_v57 = vadd.f32 %v4168_v3, %v4155_v4  ;;  %v3775_v58 = vadd.f32 %v3729_v8, %v3376_v22  ;;  %v8932_v4 = vld [vmem:[%s12666_s5 + $0x48] sm:$0xff]  ;;  %v3776_v3 = vadd.f32 %v3771_v11, %v3377_v48  ;;  %v8983_v8 = vld [vmem:[%s12666_s5 + $0x1e0] sm:$0xff] }
 0x293   : > { %4561 = vmatpush.bf16.msrb.mxu2 %v8932_v4 }
 0x294   : > { %v4215_v17 = vadd.f32 %v4169_v57, %v3773_v32  ;;  %v4248_v57 = vld [vmem:[#allocation4 + $0x8] sm:$0xcc]  ;;  %v8955_v32 = vld [vmem:[%s12666_s5 + $0x100] sm:$0xff] }
 0x295   : > { %4701 = vmatpush.bf16.msrb.mxu1 %v8957_v1  ;;  %v4304_v45 = vunpack.c.l.b16 %v4248_v57  ;;  %v4305_v27 = vunpack.c.h.b16 %v4248_v57 }
 0x296   : > { %v4225_v23 = vadd.f32 %v4221_v9, %v4215_v17  ;;  %v4596_v17 = vunpack.c.l.b16 %v4569_v36  ;;  %v8977_v36 = vld [vmem:[%s12666_s5 + $0x1b0] sm:$0xff] }
 0x297   : > { %v4142_v31 = vpop.f32.mrf.mxu3  ;;  %v4170_v28 = vpop.f32.mrf.mxu1  ;;  %4562 = vmatpush.bf16.msrb.mxu2 %v8931_v7  ;;  %v5051_v7 = vunpack.c.l.b16 %v12393_v40 }
 0x298   : > { %v4157_v24 = vadd.f32 %v4156_v19, %v4142_v31  ;;  %v4229_v19 = vmax.f32 %v4225_v23, 0.0 }
 0x299   : > { %v4184_v14 = vpop.f32.mrf.mxu2  ;;  %4702 = vmatpush.bf16.msrb.mxu1 %v8956_v43 }
 0x29a   : > { %v4171_v52 = vadd.f32 %v4170_v28, %v4157_v24  ;;  %v8984_v24 = vld [vmem:[%s12666_s5 + $0x1e8] sm:$0xff] }
 0x29c   : > { %v4217_v31 = vadd.f32 %v4171_v52, %v3775_v58 }
 0x29d   : > { %4703 = vmatpush.bf16.msrb.mxu1 %v8955_v32 }
 0x29e   : > { %v4227_v61 = vadd.f32 %v4221_v9, %v4217_v31  ;;  %v9018_v31 = vld [vmem:[%s12666_s5 + $0x2f8] sm:$0xff] }
 0x2a9   : > { %v4210_v62 = vpop.f32.mrf.mxu0 }
 0x2af   : > { %v4196_v2 = vpop.f32.mrf.mxu3 }
 0x2b0   : > { %v4197_v63 = vadd.f32 %v4196_v2, %v4182_v60  ;;  %v4231_v60 = vmax.f32 %v4227_v61, 0.0 }
 0x2b1   : > { %v4212_v33 = vpop.f32.mrf.mxu0 }
 0x2b2   : > { %v4211_v15 = vadd.f32 %v4210_v62, %v4197_v63  ;;  %v8985_v62 = vld [vmem:[%s12666_s5 + $0x1f0] sm:$0xff] }
 0x2b3   : > { %5162 = vmatpush.bf16.msra.mxu0 %v8985_v62 }
 0x2b4   : > { %v4216_v21 = vadd.f32 %v4211_v15, %v3774_v30 }
 0x2b6   : > { %v4226_v55 = vadd.f32 %v4222_v18, %v4216_v21 }
 0x2b7   : > { %v4198_v46 = vpop.f32.mrf.mxu3  ;;  %5163 = vmatpush.bf16.msra.mxu0 %v8984_v24  ;;  %v8980_v24 = vld [vmem:[%s12666_s5 + $0x1c8] sm:$0xff] }
 0x2b8   : > { %v4230_v42 = vmax.f32 %v4226_v55, 0.0  ;;  %v4199_v6 = vadd.f32 %v4198_v46, %v4184_v14 }
 0x2ba   : > { %v4241_v20 = vpack.c.bf16 %v4230_v42, %v4229_v19  ;;  %v4213_v12 = vadd.f32 %v4212_v33, %v4199_v6  ;;  %v8982_v19 = vld [vmem:[%s12666_s5 + $0x1d8] sm:$0xff] }
 0x2bb   : > { %5164 = vmatpush.bf16.msra.mxu0 %v8983_v8 }
 0x2bc   : > { %4246 = vst.msk [vmem:[#allocation4 + $0x10] sm:$0xff] %vm12323_vm1, %v4241_v20  ;;  %v4218_v5 = vadd.f32 %v4213_v12, %v3776_v3 }
 0x2be   : > { %v4228_v34 = vadd.f32 %v4222_v18, %v4218_v5 }
 0x2c0   : > { %v4232_v37 = vmax.f32 %v4228_v34, 0.0 }
 0x2c2   : > { %v4242_v39 = vpack.c.bf16 %v4232_v37, %v4231_v60  ;;  %v8966_v60 = vld [vmem:[%s12666_s5 + $0x158] sm:$0xff]  ;;  %v8981_v37 = vld [vmem:[%s12666_s5 + $0x1d0] sm:$0xff] }
 0x2c3   : > { %v4249_v50 = vld [vmem:[#allocation4 + $0x10] sm:$0xff] }
 0x2c4   : > { %4247 = vst.msk [vmem:[#allocation4 + $0x18] sm:$0xff] %vm12323_vm1, %v4242_v39  ;;  %v4306_v2 = vunpack.c.l.b16 %v4249_v50  ;;  %v12358_v56 = vunpack.c.h.b16 %v4249_v50  ;;  %v9017_v50 = vld [vmem:[%s12666_s5 + $0x2f0] sm:$0xff] }
 0x2c6   : > { %v4310_v51 = vpack.c.b16 %v4306_v2, %v4304_v45  ;;  %v12361_v9 = vpack.c.b16 %v12358_v56, %v4305_v27  ;;  %v12366_v63 = vpack.c.b16 %v4306_v2, %v4596_v17  ;;  %v12398_v61 = vpack.c.b16 %v12358_v56, %v4597_v59  ;;  %v8965_v17 = vld [vmem:[%s12666_s5 + $0x150] sm:$0xff] }
 0x2c8   : > { %v4315_v41 = vshrl.u32 %v4310_v51, 16  ;;  %v4318_v38 = vshll.u32 %v4310_v51, 16  ;;  %v4332_v15 = vshrl.u32 %v12361_v9, 16  ;;  %v4459_v28 = vrot.slane %v4310_v51, 2 }
 0x2c9   : > { %v4335_v10 = vshll.u32 %v12361_v9, 16  ;;  %v4600_v0 = vrot.slane %v12366_v63, 3  ;;  %v4761_v62 = vshrl.u32 %v12398_v61, 16  ;;  %v12425_v51 = vpack.c.b16 %v5051_v7, %v5051_v7 }
 0x2ca   : > { %v4317_v58 = vrot.slane %v4315_v41, 2  ;;  %v4320_v53 = vrot.slane %v4318_v38, 3  ;;  %v4334_v11 = vrot.slane %v4332_v15, 2  ;;  %v9016_v15 = vld [vmem:[%s12666_s5 + $0x2e8] sm:$0xff] }
 0x2cb   : > { %v12371_v16 = vld [vmem:[#allocation4 + $0x18] sm:$0x33]  ;;  %v4337_v42 = vrot.slane %v4335_v10, 3  ;;  %v5065_v38 = vshll.u32 %v12425_v51, 16 }
 0x2cc   : > { %v4275_v30 = vld [vmem:[#allocation4 + $0x18] sm:$0x77]  ;;  %v4454_v18 = vunpack.c.l.b16 %v12371_v16  ;;  %v4321_v5 = vor.u32 %v4320_v53, %v4317_v58  ;;  %v9015_v53 = vld [vmem:[%s12666_s5 + $0x2e0] sm:$0xff] }
 0x2cd   : > { %v4308_v25 = vunpack.c.l.b16 %v4275_v30  ;;  %v4309_v22 = vunpack.c.h.b16 %v4275_v30  ;;  %v4712_v54 = vld [vmem:[#allocation4 + $0x18] sm:$0xff]  ;;  %v4338_v57 = vor.u32 %v4337_v42, %v4334_v11  ;;  %v5067_v58 = vrot.slane %v5065_v38, 1 }
 0x2ce   : > { %v12376_v23 = vunpack.c.h.b16 %v4712_v54  ;;  %v4456_v52 = vpack.c.b16 %v4454_v18, %v4454_v18  ;;  %v12381_v55 = vunpack.c.l.b16 %v4712_v54  ;;  %v4455_v18 = vunpack.c.h.b16 %v12371_v16  ;;  %v8964_v10 = vld [vmem:[%s12666_s5 + $0x148] sm:$0xff]  ;;  %v8979_v16 = vld [vmem:[%s12666_s5 + $0x1c0] sm:$0xff] }
 0x2cf   : > { %v4312_v21 = vpack.c.b16 %v4308_v25, %v4308_v25  ;;  %v12378_v49 = vpack.c.b16 %v4309_v22, %v4309_v22  ;;  %v12438_v25 = vld [vmem:[#allocation4 + $0x20] sm:$0x33]  ;;  %v8976_v22 = vld [vmem:[%s12666_s5 + $0x1a8] sm:$0xff]  ;;  %v4763_v54 = vrot.slane %v4761_v62, 3 }
 0x2d0   : > { %v4460_v48 = vrot.slane %v4456_v52, 2  ;;  %v4742_v13 = vpack.c.b16 %v12376_v23, %v12376_v23  ;;  %v12405_v34 = vpack.c.b16 %v12381_v55, %v4306_v2  ;;  %v4764_v2 = vshll.u32 %v12398_v61, 16  ;;  %v12450_v52 = vld [vmem:[#allocation4 + $0x10] sm:$0xee]  ;;  %v8960_v62 = vld [vmem:[%s12666_s5 + $0x128] sm:$0xff] }
 0x2d1   : > { %v4601_v14 = vrot.slane %v4312_v21, 3  ;;  %v4323_v46 = vshrl.u32 %v4312_v21, 16  ;;  %v4326_v26 = vshll.u32 %v4312_v21, 16  ;;  %v4340_v6 = vshrl.u32 %v12378_v49, 16 }
 0x2d2   : > { %v4343_v1 = vshll.u32 %v12378_v49, 16  ;;  %v4461_v33 = vsel %vm4458_vm2, %v4459_v28, %v4460_v48  ;;  %v4769_v29 = vshrl.u32 %v4742_v13, 16  ;;  %v4772_v39 = vshll.u32 %v4742_v13, 16 }
 0x2d3   : > { %v4602_v4 = vsel %vm515_vm3, %v4600_v0, %v4601_v14  ;;  %v4325_v3 = vrot.slane %v4323_v46, 2  ;;  %v4328_v20 = vrot.slane %v4326_v26, 3  ;;  %4549 = vmatmul.bf16.vlgmr.msra.gmra.mxu3 %v4461_v33  ;;  %v4342_v12 = vrot.slane %v4340_v6, 2  ;;  %v8975_v46 = vld [vmem:[%s12666_s5 + $0x1a0] sm:$0xff]  ;;  %v9002_v26 = vld [vmem:[%s12666_s5 + $0x278] sm:$0xff] }
 0x2d4   : > { %4690 = vmatmul.bf16.vlgmr.msrb.gmra.mxu0 %v4602_v4  ;;  %v4345_v47 = vrot.slane %v4343_v1, 3  ;;  %5004 = vmatpush.bf16.msra.mxu3 %v8982_v19  ;;  %v5060_v45 = vshll.u32 %v12405_v34, 16  ;;  %v4771_v41 = vrot.slane %v4769_v29, 3  ;;  %v4774_v8 = vrot.slane %v4772_v39, 4 }
 0x2d5   : > { %v4329_v43 = vor.u32 %v4328_v20, %v4325_v3  ;;  %5489 = vmatpush.bf16.msrb.mxu0 %v9018_v31  ;;  %v4766_v28 = vrot.slane %v4764_v2, 4  ;;  %v5058_v59 = vshrl.u32 %v12405_v34, 16  ;;  %v5358_v11 = vunpack.c.h.b16 %v12438_v25  ;;  %v8963_v31 = vld [vmem:[%s12666_s5 + $0x140] sm:$0xff] }
 0x2d6   : > { %v4346_v44 = vor.u32 %v4345_v47, %v4342_v12  ;;  %v5062_v30 = vrot.slane %v5060_v45, 1  ;;  %v4775_v21 = vor.u32 %v4774_v8, %v4771_v41  ;;  %v4457_v48 = vpack.c.b16 %v4455_v18, %v4455_v18  ;;  %v8962_v47 = vld [vmem:[%s12666_s5 + $0x138] sm:$0xff]  ;;  %v8999_v2 = vld [vmem:[%s12666_s5 + $0x260] sm:$0xff] }
 0x2d7   : > { %v4330_v32 = vsel %vm1246_vm10, %v4321_v5, %v4329_v43  ;;  %v4767_v14 = vor.u32 %v4766_v28, %v4763_v54  ;;  %v5215_v19 = vunpack.c.h.b16 %v12450_v52  ;;  %v4604_v42 = vrot.slane %v12378_v49, 3  ;;  %v8974_v49 = vld [vmem:[%s12666_s5 + $0x198] sm:$0xff]  ;;  %v9001_v5 = vld [vmem:[%s12666_s5 + $0x270] sm:$0xff]  ;;  %v8959_v18 = vld [vmem:[%s12666_s5 + $0x120] sm:$0xff] }
 0x2d8   : > { %4433 = vmatmul.bf16.vlgmr.msra.gmra.mxu1 %v4330_v32  ;;  %v4347_v27 = vsel %vm1246_vm10, %v4338_v57, %v4346_v44  ;;  %5005 = vmatpush.bf16.msra.mxu3 %v8981_v37  ;;  %v5063_v0 = vor.u32 %v5062_v30, %v5058_v59  ;;  %v12472_v33 = vpack.c.b16 %v5358_v11, %v5358_v11  ;;  %v4463_v4 = vrot.slane %v4457_v48, 2  ;;  %v8973_v44 = vld [vmem:[%s12666_s5 + $0x190] sm:$0xff]  ;;  %v9000_v37 = vld [vmem:[%s12666_s5 + $0x268] sm:$0xff] }
 0x2d9   : > { %7930 = vmatmul.msk.bf16.vlgmr.msra.gmra.mxu2 %vm4421_vm5, %v4347_v27  ;;  %4986 = vmatpush.bf16.msra.mxu1 %v8978_v35  ;;  %v4776_v6 = vsel %vm352_vm4, %v4767_v14, %v4775_v21  ;;  %v12470_v13 = vpack.c.b16 %v12376_v23, %v5215_v19  ;;  %v4603_v3 = vrot.slane %v12398_v61, 3  ;;  %v4462_v20 = vrot.slane %v12361_v9, 2 }
 0x2da   : > { %4853 = vmatpush.bf16.msra.mxu2 %v8966_v60  ;;  %5490 = vmatpush.bf16.msrb.mxu0 %v9017_v50  ;;  %v5068_v1 = vsel %vm869_vm6, %v5063_v0, %v5067_v58  ;;  %v5387_v35 = vshrl.u32 %v12472_v33, 16  ;;  %v5390_v7 = vshll.u32 %v12472_v33, 16  ;;  %v4741_v57 = vpack.c.b16 %v12381_v55, %v12381_v55  ;;  %v8961_v60 = vld [vmem:[%s12666_s5 + $0x130] sm:$0xff] }
 0x2db   : > { %v4605_v12 = vsel %vm515_vm3, %v4603_v3, %v4604_v42  ;;  %v5379_v61 = vshrl.u32 %v12470_v13, 16  ;;  %v5382_v43 = vshll.u32 %v12470_v13, 16  ;;  %v4464_v9 = vsel %vm4458_vm2, %v4462_v20, %v4463_v4  ;;  %v8997_v0 = vld [vmem:[%s12666_s5 + $0x250] sm:$0xff]  ;;  %v5501_v42 = vld [vmem:[#allocation4 + $0x10] sm:$0xcc]  ;;  %v9026_v20 = vld [vmem:[%s12666_s5 + $0x338] sm:$0xff] }
 0x2dc   : > { %5006 = vmatpush.bf16.msra.mxu3 %v8980_v24  ;;  %v5389_v39 = vrot.slane %v5387_v35, 1  ;;  %v5392_v45 = vrot.slane %v5390_v7, 2  ;;  %v4752_v50 = vshrl.u32 %v4741_v57, 16  ;;  %v4755_v27 = vshll.u32 %v4741_v57, 16  ;;  %v8993_v58 = vld [vmem:[%s12666_s5 + $0x230] sm:$0xff] }
 0x2dd   : > { %4987 = vmatpush.bf16.msra.mxu1 %v8977_v36  ;;  %v5381_v32 = vrot.slane %v5379_v61, 1  ;;  %v5384_v29 = vrot.slane %v5382_v43, 2  ;;  %v8972_v36 = vld [vmem:[%s12666_s5 + $0x188] sm:$0xff]  ;;  %v4747_v24 = vshll.u32 %v12366_v63, 16  ;;  %v5214_v48 = vunpack.c.l.b16 %v12450_v52  ;;  %v9030_v43 = vld [vmem:[%s12666_s5 + $0x358] sm:$0xff] }
 0x2de   : > { %4854 = vmatpush.bf16.msra.mxu2 %v8965_v17  ;;  %5491 = vmatpush.bf16.msrb.mxu0 %v9016_v15  ;;  %v4744_v17 = vshrl.u32 %v12366_v63, 16  ;;  %v5393_v8 = vor.u32 %v5392_v45, %v5389_v39  ;;  %v4754_v30 = vrot.slane %v4752_v50, 3  ;;  %v4757_v38 = vrot.slane %v4755_v27, 4  ;;  %v8971_v15 = vld [vmem:[%s12666_s5 + $0x180] sm:$0xff]  ;;  %v8998_v63 = vld [vmem:[%s12666_s5 + $0x258] sm:$0xff]  ;;  %v9012_v27 = vld [vmem:[%s12666_s5 + $0x2c8] sm:$0xff] }
 0x2df   : > { %v5385_v41 = vor.u32 %v5384_v29, %v5381_v32  ;;  %v4749_v28 = vrot.slane %v4747_v24, 4  ;;  %v5052_v14 = vunpack.c.h.b16 %v12393_v40  ;;  %v12559_v19 = vpack.c.b16 %v12381_v55, %v5214_v48  ;;  %v8995_v40 = vld [vmem:[%s12666_s5 + $0x240] sm:$0xff] }
 0x2e0   : > { %5007 = vmatpush.bf16.msra.mxu3 %v8979_v16  ;;  %v4746_v54 = vrot.slane %v4744_v17, 3  ;;  %v9006_v16 = vld [vmem:[%s12666_s5 + $0x298] sm:$0xff]  ;;  %v5219_v3 = vrot.slane %v12425_v51, 1  ;;  %v5528_v61 = vunpack.c.l.b16 %v5501_v42  ;;  %v9011_v17 = vld [vmem:[%s12666_s5 + $0x2c0] sm:$0xff] }
 0x2e1   : > { %4988 = vmatpush.bf16.msra.mxu1 %v8976_v22  ;;  %v4909_v22 = vpack.c.b16 %v12376_v23, %v12358_v56  ;;  %v5394_v59 = vsel %vm3836_vm13, %v5385_v41, %v5393_v8  ;;  %v4758_v56 = vor.u32 %v4757_v38, %v4754_v30  ;;  %v5218_v4 = vrot.slane %v12559_v19, 1  ;;  %v9023_v24 = vld [vmem:[%s12666_s5 + $0x320] sm:$0xff]  ;;  %v9010_v30 = vld [vmem:[%s12666_s5 + $0x2b8] sm:$0xff] }
 0x2e2   : > { %4855 = vmatpush.bf16.msra.mxu2 %v8964_v10  ;;  %5492 = vmatpush.bf16.msrb.mxu0 %v9015_v53  ;;  %v8994_v10 = vld [vmem:[%s12666_s5 + $0x238] sm:$0xff]  ;;  %v4750_v21 = vor.u32 %v4749_v28, %v4746_v54  ;;  %v9005_v53 = vld [vmem:[%s12666_s5 + $0x290] sm:$0xff]  ;;  %v5530_v57 = vpack.c.b16 %v12381_v55, %v5528_v61  ;;  %v9027_v8 = vld [vmem:[%s12666_s5 + $0x340] sm:$0xff]  ;;  %v5362_v54 = vshrl.u32 %v12559_v19, 16  ;;  %v5365_v28 = vshll.u32 %v12559_v19, 16 }
 0x2e3   : > { %8125 = vmatmul.msk.bf16.vlgmr.msrb.gmra.mxu3 %vm4421_vm5, %v4776_v6  ;;  %v5072_v52 = vshll.u32 %v4909_v22, 16  ;;  %v8991_v6 = vld [vmem:[%s12666_s5 + $0x220] sm:$0xff]  ;;  %v5070_v35 = vshrl.u32 %v4909_v22, 16  ;;  %v5220_v7 = vsel %vm1058_vm7, %v5218_v4, %v5219_v3  ;;  %v9029_v55 = vld [vmem:[%s12666_s5 + $0x350] sm:$0xff]  ;;  %v9022_v38 = vld [vmem:[%s12666_s5 + $0x318] sm:$0xff] }
 0x2e4   : > { %5165 = vmatmul.bf16.vlgmr.msra.gmra.mxu0 %v5068_v1  ;;  %5300 = vmatpush.bf16.msrb.mxu3 %v9002_v26  ;;  %v4759_v11 = vsel %vm352_vm4, %v4750_v21, %v4758_v56  ;;  %v8992_v26 = vld [vmem:[%s12666_s5 + $0x228] sm:$0xff]  ;;  %v9003_v1 = vld [vmem:[%s12666_s5 + $0x280] sm:$0xff]  ;;  %v5532_v39 = vrot.slane %v5530_v57, 2  ;;  %v5364_v56 = vrot.slane %v5362_v54, 1  ;;  %v5367_v21 = vrot.slane %v5365_v28, 2 }
 0x2e5   : > { %4989 = vmatpush.bf16.msra.mxu1 %v8975_v46  ;;  %v8996_v46 = vld [vmem:[%s12666_s5 + $0x248] sm:$0xff] }
 0x2e6   : > { %4856 = vmatpush.bf16.msra.mxu2 %v8963_v31  ;;  %v5056_v31 = vpack.c.b16 %v5052_v14, %v5052_v14  ;;  %v5368_v48 = vor.u32 %v5367_v21, %v5364_v56 }
 0x2e8   : > { %8052 = vmatmul.msk.bf16.vlgmr.msrb.gmra.mxu1 %vm4421_vm5, %v4605_v12  ;;  %5301 = vmatpush.bf16.msrb.mxu3 %v9001_v5  ;;  %v5074_v12 = vrot.slane %v5072_v52, 1  ;;  %v5357_v5 = vunpack.c.l.b16 %v12438_v25  ;;  %v9013_v25 = vld [vmem:[%s12666_s5 + $0x2d0] sm:$0xff]  ;;  %v5222_v32 = vrot.slane %v5056_v31, 1 }
 0x2e9   : > { %7979 = vmatmul.msk.bf16.vlgmr.msrb.gmra.mxu2 %vm4421_vm5, %v4464_v9  ;;  %4990 = vmatpush.bf16.msra.mxu1 %v8974_v49  ;;  %v9014_v49 = vld [vmem:[%s12666_s5 + $0x2d8] sm:$0xff]  ;;  %v5221_v9 = vrot.slane %v12470_v13, 1 }
 0x2ea   : > { %4857 = vmatpush.bf16.msra.mxu2 %v8962_v47  ;;  %v5077_v47 = vshll.u32 %v5056_v31, 16  ;;  %v5359_v51 = vpack.c.b16 %v5357_v5, %v5357_v5 }
 0x2eb   : > { %v5223_v50 = vsel %vm1058_vm7, %v5221_v9, %v5222_v32  ;;  %vm5688_vm7 = vcmask 392192  }
 0x2ec   : > { %5302 = vmatpush.bf16.msrb.mxu3 %v9000_v37  ;;  %v5079_v37 = vrot.slane %v5077_v47, 1  ;;  %v5533_v29 = vrot.slane %v5359_v51, 2 }
 0x2ed   : > { %4991 = vmatpush.bf16.msra.mxu1 %v8973_v44  ;;  %v9025_v44 = vld [vmem:[%s12666_s5 + $0x330] sm:$0xff] }
 0x2ee   : > { %4858 = vmatpush.bf16.msra.mxu2 %v8961_v60  ;;  %v5075_v60 = vor.u32 %v5074_v12, %v5070_v35  ;;  %v5534_v13 = vsel %vm4458_vm2, %v5532_v39, %v5533_v29 }
 0x2f0   : > { %5303 = vmatpush.bf16.msrb.mxu3 %v8999_v2  ;;  %v5080_v45 = vsel %vm869_vm6, %v5075_v60, %v5079_v37  ;;  %v5529_v2 = vunpack.c.h.b16 %v5501_v42 }
 0x2f1   : > { %4992 = vmatpush.bf16.msra.mxu1 %v8972_v36  ;;  %v9024_v36 = vld [vmem:[%s12666_s5 + $0x328] sm:$0xff] }
 0x2f2   : > { %4859 = vmatpush.bf16.msra.mxu2 %v8960_v62  ;;  %v9028_v62 = vld [vmem:[%s12666_s5 + $0x348] sm:$0xff]  ;;  %v5531_v41 = vpack.c.b16 %v12376_v23, %v5529_v2 }
 0x2f3   : > { %8198 = vmatmul.msk.bf16.vlgmr.msra.gmra.mxu3 %vm4421_vm5, %v4909_v22  ;;  %v9009_v22 = vld [vmem:[%s12666_s5 + $0x2b0] sm:$0xff] }
 0x2f4   : > { %8417 = vmatmul.msk.bf16.vlgmr.msrb.gmra.mxu0 %vm4421_vm5, %v5394_v59  ;;  %5304 = vmatpush.bf16.msrb.mxu3 %v8998_v63  ;;  %v9021_v63 = vld [vmem:[%s12666_s5 + $0x310] sm:$0xff]  ;;  %v5373_v59 = vshll.u32 %v5359_v51, 16 }
 0x2f5   : > { %4993 = vmatpush.bf16.msra.mxu1 %v8971_v15  ;;  %v5535_v15 = vrot.slane %v5531_v41, 2 }
 0x2f6   : > { %4860 = vmatpush.bf16.msra.mxu2 %v8959_v18  ;;  %v5536_v18 = vrot.slane %v12472_v33, 2  ;;  %v5370_v33 = vshrl.u32 %v5359_v51, 16 }
 0x2f8   : > { %4994 = vmatmul.bf16.vlgmr.msra.gmra.mxu1 %v12405_v34  ;;  %5305 = vmatpush.bf16.msrb.mxu3 %v8997_v0  ;;  %v9004_v34 = vld [vmem:[%s12666_s5 + $0x288] sm:$0xff]  ;;  %v5537_v23 = vsel %vm4458_vm2, %v5535_v15, %v5536_v18  ;;  %v5372_v0 = vrot.slane %v5370_v33, 1 }
 0x2f9   : > { %5318 = vmatpush.bf16.msrb.mxu1 %v9006_v16  ;;  %4861 = vmatmul.bf16.vlgmr.msra.gmra.mxu2 %v4759_v11  ;;  %v9020_v16 = vld [vmem:[%s12666_s5 + $0x308] sm:$0xff]  ;;  %v9019_v11 = vld [vmem:[%s12666_s5 + $0x300] sm:$0xff] }
 0x2fa   : > { %5175 = vmatpush.bf16.msrb.mxu2 %v8994_v10  ;;  %v9008_v10 = vld [vmem:[%s12666_s5 + $0x2a8] sm:$0xff] }
 0x2fc   : > { %5306 = vmatpush.bf16.msrb.mxu3 %v8996_v46 }
 0x2fd   : > { %5319 = vmatpush.bf16.msrb.mxu1 %v9005_v53  ;;  %v9007_v53 = vld [vmem:[%s12666_s5 + $0x2a0] sm:$0xff] }
 0x2fe   : > { %5176 = vmatpush.bf16.msrb.mxu2 %v8993_v58  ;;  %v5375_v58 = vrot.slane %v5373_v59, 2 }
 0x300   : > { %5307 = vmatpush.bf16.msrb.mxu3 %v8995_v40  ;;  %v5376_v14 = vor.u32 %v5375_v58, %v5372_v0  ;;  %v9048_v58 = vld [vmem:[%s12667_s6] ss:$0 sm:$0xff] }
 0x301   : > { %5320 = vmatpush.bf16.msrb.mxu1 %v9004_v34 }
 0x302   : > { %5177 = vmatpush.bf16.msrb.mxu2 %v8992_v26  ;;  %v5377_v46 = vsel %vm3836_vm13, %v5368_v48, %v5376_v14 }
 0x303   : > { %5308 = vmatmul.bf16.vlgmr.msrb.gmra.mxu3 %v5220_v7 }
 0x304   : > { %5632 = vmatpush.bf16.msra.mxu3 %v9030_v43 }
 0x305   : > { %5321 = vmatpush.bf16.msrb.mxu1 %v9003_v1 }
 0x306   : > { %5178 = vmatpush.bf16.msrb.mxu2 %v8991_v6 }
 0x308   : > { %8344 = vmatmul.msk.bf16.vlgmr.msrb.gmra.mxu1 %vm4421_vm5, %v5223_v50  ;;  %5633 = vmatpush.bf16.msra.mxu3 %v9029_v55 }
 0x309   : > { %5614 = vmatpush.bf16.msra.mxu1 %v9026_v20  ;;  %8271 = vmatmul.msk.bf16.vlgmr.msrb.gmra.mxu2 %vm4421_vm5, %v5080_v45 }
 0x30a   : > { %5471 = vmatpush.bf16.msra.mxu2 %v9014_v49 }
 0x30c   : > { %5634 = vmatpush.bf16.msra.mxu3 %v9028_v62 }
 0x30d   : > { %5615 = vmatpush.bf16.msra.mxu1 %v9025_v44 }
 0x30e   : > { %5472 = vmatpush.bf16.msra.mxu2 %v9013_v25 }
 0x310   : > { %5635 = vmatpush.bf16.msra.mxu3 %v9027_v8 }
 0x311   : > { %5616 = vmatpush.bf16.msra.mxu1 %v9024_v36 }
 0x312   : > { %5473 = vmatpush.bf16.msra.mxu2 %v9012_v27 }
 0x313   : > { %8490 = vmatmul.msk.bf16.vlgmr.msra.gmra.mxu3 %vm4421_vm5, %v5537_v23 }
 0x315   : > { %5617 = vmatpush.bf16.msra.mxu1 %v9023_v24 }
 0x316   : > { %5474 = vmatpush.bf16.msra.mxu2 %v9011_v17 }
 0x319   : > { %5618 = vmatpush.bf16.msra.mxu1 %v9022_v38 }
 0x31a   : > { %5475 = vmatpush.bf16.msra.mxu2 %v9010_v30 }
 0x31d   : > { %5619 = vmatpush.bf16.msra.mxu1 %v9021_v63 }
 0x31e   : > { %5476 = vmatpush.bf16.msra.mxu2 %v9009_v22 }
 0x321   : > { %5620 = vmatpush.bf16.msra.mxu1 %v9020_v16 }
 0x322   : > { %5477 = vmatpush.bf16.msra.mxu2 %v9008_v10 }
 0x325   : > { %5621 = vmatpush.bf16.msra.mxu1 %v9019_v11 }
 0x326   : > { %5478 = vmatpush.bf16.msra.mxu2 %v9007_v53 }
 0x328   : > { %5622 = vmatmul.bf16.vlgmr.msra.gmra.mxu1 %v5534_v13 }
 0x329   : > { %5479 = vmatmul.bf16.vlgmr.msra.gmra.mxu2 %v5377_v46 }
 0x351   : > { %v4691_v20 = vpop.f32.mrf.mxu0 }
 0x355   : > { %v4434_v26 = vpop.f32.mrf.mxu1 }
 0x356   : > { %v4550_v34 = vpop.f32.mrf.mxu3 }
 0x359   : > { %v4693_v61 = vpop.f32.mrf.mxu0 }
 0x35c   : > { %v4448_v19 = vpop.f32.mrf.mxu2 }
 0x35d   : > { %v4436_v52 = vpop.f32.mrf.mxu1  ;;  %v4449_v9 = vadd.f32 %v4448_v19, %v4434_v26 }
 0x35e   : > { %v4552_v40 = vpop.f32.mrf.mxu3 }
 0x35f   : > { %v4551_v60 = vadd.f32 %v4550_v34, %v4449_v9 }
 0x361   : > { %v5166_v7 = vpop.f32.mrf.mxu0 }
 0x364   : > { %v4450_v31 = vpop.f32.mrf.mxu2 }
 0x365   : > { %v4705_v42 = vpop.f32.mrf.mxu1  ;;  %v4451_v32 = vadd.f32 %v4450_v31, %v4436_v52 }
 0x366   : > { %v4876_v6 = vpop.f32.mrf.mxu3  ;;  %v4706_v29 = vadd.f32 %v4705_v42, %v4691_v20 }
 0x367   : > { %v4553_v27 = vadd.f32 %v4552_v40, %v4451_v32 }
 0x369   : > { %v5168_v39 = vpop.f32.mrf.mxu0 }
 0x36c   : > { %v4564_v1 = vpop.f32.mrf.mxu2 }
 0x36d   : > { %v4707_v4 = vpop.f32.mrf.mxu1  ;;  %v4565_v37 = vadd.f32 %v4564_v1, %v4551_v60 }
 0x36e   : > { %v4878_v3 = vpop.f32.mrf.mxu3  ;;  %v4708_v41 = vadd.f32 %v4707_v4, %v4693_v61 }
 0x36f   : > { %v4710_v13 = vadd.f32 %v4706_v29, %v4565_v37 }
 0x371   : > { %v5494_v38 = vpop.f32.mrf.mxu0 }
 0x374   : > { %v4566_v49 = vpop.f32.mrf.mxu2 }
 0x375   : > { %v4995_v12 = vpop.f32.mrf.mxu1  ;;  %v4567_v2 = vadd.f32 %v4566_v49, %v4553_v27 }
 0x376   : > { %v5009_v47 = vpop.f32.mrf.mxu3 }
 0x377   : > { %v5010_v17 = vadd.f32 %v5009_v47, %v4995_v12  ;;  %v4711_v15 = vadd.f32 %v4708_v41, %v4567_v2 }
 0x379   : > { %v5496_v48 = vpop.f32.mrf.mxu0 }
 0x37c   : > { %v4862_v5 = vpop.f32.mrf.mxu2 }
 0x37d   : > { %v4997_v43 = vpop.f32.mrf.mxu1  ;;  %v4877_v55 = vadd.f32 %v4876_v6, %v4862_v5 }
 0x37e   : > { %v5011_v35 = vpop.f32.mrf.mxu3 }
 0x37f   : > { %v4881_v36 = vadd.f32 %v4877_v55, %v4710_v13  ;;  %v5012_v33 = vadd.f32 %v5011_v35, %v4997_v43 }
 0x381   : > { %v5014_v30 = vadd.f32 %v5010_v17, %v4881_v36 }
 0x384   : > { %v4864_v51 = vpop.f32.mrf.mxu2 }
 0x385   : > { %v5323_v57 = vpop.f32.mrf.mxu1  ;;  %v4879_v8 = vadd.f32 %v4878_v3, %v4864_v51 }
 0x386   : > { %v5309_v25 = vpop.f32.mrf.mxu3 }
 0x387   : > { %v4882_v22 = vadd.f32 %v4879_v8, %v4711_v15  ;;  %v5324_v63 = vadd.f32 %v5323_v57, %v5309_v25 }
 0x389   : > { %v5015_v56 = vadd.f32 %v5012_v33, %v4882_v22 }
 0x38c   : > { %v5180_v44 = vpop.f32.mrf.mxu2 }
 0x38d   : > { %v5325_v45 = vpop.f32.mrf.mxu1  ;;  %v5181_v24 = vadd.f32 %v5180_v44, %v5166_v7 }
 0x38e   : > { %v5311_v50 = vpop.f32.mrf.mxu3 }
 0x38f   : > { %v5185_v18 = vadd.f32 %v5181_v24, %v5014_v30  ;;  %v5326_v14 = vadd.f32 %v5325_v45, %v5311_v50 }
 0x391   : > { %v5328_v10 = vadd.f32 %v5324_v63, %v5185_v18 }
 0x394   : > { %v5182_v62 = vpop.f32.mrf.mxu2 }
 0x395   : > { %v5183_v59 = vadd.f32 %v5182_v62, %v5168_v39 }
 0x396   : > { %v5637_v54 = vpop.f32.mrf.mxu3 }
 0x397   : > { %v5186_v53 = vadd.f32 %v5183_v59, %v5015_v56 }
 0x399   : > { %v5329_v52 = vadd.f32 %v5326_v14, %v5186_v53 }
 0x39e   : > { %v5639_v31 = vpop.f32.mrf.mxu3 }
 0x3a5   : > { %v5623_v23 = vpop.f32.mrf.mxu1 }
 0x3a6   : > { %v5638_v21 = vadd.f32 %v5637_v54, %v5623_v23 }
 0x3ac   : > { %v5480_v28 = vpop.f32.mrf.mxu2 }
 0x3ad   : > { %v5495_v16 = vadd.f32 %v5494_v38, %v5480_v28  ;;  %v5625_v26 = vpop.f32.mrf.mxu1 }
 0x3ae   : > { %v5640_v42 = vadd.f32 %v5639_v31, %v5625_v26 }
 0x3af   : > { %v5499_v0 = vadd.f32 %v5495_v16, %v5328_v10 }
 0x3b1   : > { %v5642_v11 = vadd.f32 %v5638_v21, %v5499_v0 }
 0x3b3   : > { %v5648_v46 = vadd.f32 %v9048_v58, %v5642_v11 }
 0x3b4   : > { %v5482_v34 = vpop.f32.mrf.mxu2 }
 0x3b5   : > { %v8491_v19 = vmul.f32 -1.442695, %v5648_v46  ;;  %v5497_v40 = vadd.f32 %v5496_v48, %v5482_v34 }
 0x3b7   : > { %9049 = vpow2.f32 %v8491_v19  ;;  %v5500_v6 = vadd.f32 %v5497_v40, %v5329_v52 }
 0x3b9   : > { %v5643_v1 = vadd.f32 %v5640_v42, %v5500_v6 }
 0x3bb   : > { %v5649_v4 = vadd.f32 %v9048_v58, %v5643_v1 }
 0x3bd   : > { %v9050_v3 = vpop.eup %9049  ;;  %v8492_v49 = vmul.f32 -1.442695, %v5649_v4 }
 0x3be   : > { %v5656_v20 = vadd.f32 1.0, %v9050_v3 }
 0x3bf   : > { %9051 = vpow2.f32 %v8492_v49 }
 0x3c0   : > { %9053 = vrcp.f32 %v5656_v20  ;;  %v5669_v35 = vand.u32 2147483648, %v5656_v20  ;;  %v5667_v7 = vand.u32 2147483647, %v5656_v20  ;;  %vm5663_vm4 = vweird.f32 %v5656_v20 }
 0x3c2   : > { %v5670_v25 = vor.u32 1.1754944e-38, %v5669_v35  ;;  %vm5668_vm9 = vcmp.eq.f32.partialorder %v5667_v7, 8.507059e+37 }
 0x3c5   : > { %v9052_v12 = vpop.eup %9051 }
 0x3c6   : > { %v9054_v47 = vpop.eup %9053  ;;  %v5657_v5 = vadd.f32 1.0, %v9052_v12 }
 0x3c7   : > { %v5659_v61 = vmul.f32 %v9054_v47, %v5656_v20  ;;  %vm5664_vm3 = vweird.f32 %v9054_v47 }
 0x3c8   : > { %9055 = vrcp.f32 %v5657_v5  ;;  %vm5665_vm6 = vmor %vm5663_vm4, %vm5664_vm3  ;;  %v5684_v29 = vand.u32 2147483648, %v5657_v5  ;;  %v5682_v55 = vand.u32 2147483647, %v5657_v5  ;;  %vm5678_vm11 = vweird.f32 %v5657_v5 }
 0x3c9   : > { %v5660_v43 = vsub.f32 1.0, %v5659_v61 }
 0x3ca   : > { %v5685_v45 = vor.u32 1.1754944e-38, %v5684_v29  ;;  %vm5683_vm13 = vcmp.eq.f32.partialorder %v5682_v55, 8.507059e+37 }
 0x3cb   : > { %v5661_v51 = vmul.f32 %v9054_v47, %v5660_v43 }
 0x3cd   : > { %v5662_v9 = vadd.f32 %v9054_v47, %v5661_v51 }
 0x3ce   : > { %v9056_v57 = vpop.eup %9055 }
 0x3cf   : > { %v5666_v44 = vsel %vm5665_vm6, %v9054_v47, %v5662_v9  ;;  %v5674_v60 = vmul.f32 %v9056_v57, %v5657_v5  ;;  %vm5679_vm10 = vweird.f32 %v9056_v57 }
 0x3d0   : > { %v5671_v37 = vsel %vm5668_vm9, %v5670_v25, %v5666_v44  ;;  %vm5680_vm12 = vmor %vm5678_vm11, %vm5679_vm10 }
 0x3d1   : > { %5689 = vst.msk [vmem:[%s278_s9] sm:$0xff] %vm5688_vm7, %v5671_v37  ;;  %v5675_v32 = vsub.f32 1.0, %v5674_v60 }
 0x3d3   : > { %v5676_v39 = vmul.f32 %v9056_v57, %v5675_v32 }
 0x3d5   : > { %v5677_v13 = vadd.f32 %v9056_v57, %v5676_v39 }
 0x3d7   : > { %v5681_v50 = vsel %vm5680_vm12, %v9056_v57, %v5677_v13 }
 0x3d8   : > { %v5686_v27 = vsel %vm5683_vm13, %v5685_v45, %v5681_v50 }
 0x3d9   : > { %5690 = vst.msk [vmem:[%s278_s9 + $0x8] sm:$0xff] %vm5688_vm7, %v5686_v27 }
 0x3da PF: > { %s17_s24 = sadd.s32 1, %s9068_s24  }
 0x3db   : > { %p14_p4 = scmp.ge.s32.totalorder %s17_s24, 4  }
 0x3dd   :  { %16 = sbr.rel (!%p14_p4) target bundleno = 1 (0x1), region = 96 }

</bundles_post_ra>
